<compile_context>
chip_gen: v7x
topology: tpu7x:2x2x1
jax: 0.10.0
libtpu: 0.0.40
codegen_flags: <defaults>
</compile_context>

<pallas_src>
import functools

import jax
import jax.numpy as jnp
from jax.experimental import pallas as pl
from jax.experimental.pallas import tpu as pltpu


# ---------------- exact GELU (erf-based, PyTorch nn.GELU default) -------------
_P_OVER_SQRT2 = 0.3275911 * 0.7071067811865476  # A&S p folded with 1/sqrt(2)


def _gelu_exact(x):
    # gelu(x) = 0.5 * x * (1 + erf(x / sqrt(2))), erf via Abramowitz & Stegun
    # 7.1.26. Constants are folded so that:
    #   * sign() disappears (x*sign(x) == |x|),
    #   * the divide runs on the EUP (approx reciprocal), not the VALU,
    #   * exp argument is simply -0.5*x*x (== -(x/sqrt(2))^2).
    a1 = 0.254829592
    a2 = -0.284496736
    a3 = 1.421413741
    a4 = -1.453152027
    a5 = 1.061405429
    ax = jnp.abs(x)
    t = pl.reciprocal(1.0 + _P_OVER_SQRT2 * ax, approx=True)      # EUP
    poly = ((((a5 * t + a4) * t + a3) * t + a2) * t + a1) * t
    e = jnp.exp(-0.5 * x * x)                                      # EUP
    half_ax = 0.5 * ax
    # x>0: x - 0.5*x*poly*e ; x<0: 0.5*x*poly*e  (== 0.5*x*(1+erf(x/sqrt2)))
    return (0.5 * x + half_ax) - half_ax * poly * e


# ---------------- fused MLP kernel --------------------------------------------
def _mlp_kernel(x_ref, w1_ref, w2_ref, o_ref):
    # x_ref: (TM, D) native dtype   w1_ref: (D, H) bf16   w2_ref: (H, D) bf16
    x = x_ref[...].astype(jnp.bfloat16)                 # in-kernel cast (no-op if bf16)
    h = jnp.dot(x, w1_ref[...], preferred_element_type=jnp.float32)
    h = _gelu_exact(h)                                  # f32 epilogue
    y = jnp.dot(h.astype(jnp.bfloat16), w2_ref[...],
                preferred_element_type=jnp.float32)
    o_ref[...] = y.astype(o_ref.dtype)


@functools.lru_cache(maxsize=None)
def _build_mlp_call(mp: int, tm: int, d: int, h: int,
                    in_dtype_name: str, out_dtype_name: str):
    in_dtype = jnp.dtype(in_dtype_name)
    out_dtype = jnp.dtype(out_dtype_name)
    bytes_accessed = (mp * d * in_dtype.itemsize      # x
                      + (d * h + h * d) * 2           # bf16 weights
                      + mp * d * out_dtype.itemsize)  # output
    return pl.pallas_call(
        _mlp_kernel,
        out_shape=jax.ShapeDtypeStruct((mp, d), out_dtype),
        grid=(mp // tm,),
        in_specs=[
            pl.BlockSpec((tm, d), lambda i: (i, 0)),   # x tile, streamed
            pl.BlockSpec((d, h), lambda i: (0, 0)),    # W1, VMEM-resident
            pl.BlockSpec((h, d), lambda i: (0, 0)),    # W2, VMEM-resident
        ],
        out_specs=pl.BlockSpec((tm, d), lambda i: (i, 0)),
        compiler_params=pltpu.CompilerParams(
            dimension_semantics=("parallel",),
            vmem_limit_bytes=48 * 1024 * 1024,         # < 64 MiB v7x physical
        ),
        cost_estimate=pl.CostEstimate(
            flops=4 * mp * d * h,
            transcendentals=2 * mp * h,                # exp + reciprocal
            bytes_accessed=bytes_accessed,
        ),
    )


def _choose_tm(m: int) -> int:
    # Large tiles amortize the ~0.35 us per-grid-step overhead. Prefer >= 4
    # grid steps (2 per TensorCore after megacore split on v7x), else >= 2
    # (keeps BlockSpec double-buffering), else a single 128-row tile.
    candidates = (2048, 1024, 512, 256, 128)
    for tm in candidates:
        if m >= 4 * tm:
            return tm
    for tm in candidates:
        if m >= 2 * tm:
            return tm
    return 128


def mlp_forward(x, w_fc, w_proj):
    """x: (..., dim); w_fc: (dim, 4*dim); w_proj: (4*dim, dim).

    Weights are ideally pre-cast to bf16 once at parameter setup; f32 weights
    are accepted and cast here (one extra small pass per call).
    """
    d = x.shape[-1]
    hdim = w_fc.shape[-1]
    d_out = w_proj.shape[-1]

    xm = x.reshape(-1, d)
    m = xm.shape[0]
    tm = _choose_tm(m)
    mp = pl.cdiv(m, tm) * tm
    if mp != m:
        xm = jnp.pad(xm, ((0, mp - m), (0, 0)))

    w1 = w_fc if w_fc.dtype == jnp.bfloat16 else w_fc.astype(jnp.bfloat16)
    w2 = w_proj if w_proj.dtype == jnp.bfloat16 else w_proj.astype(jnp.bfloat16)

    call = _build_mlp_call(mp, tm, d, hdim,
                           jnp.dtype(xm.dtype).name, jnp.dtype(x.dtype).name)
    out = call(xm, w1, w2)
    out = out[:m]
    return out.reshape(x.shape[:-1] + (d_out,))


# ---------------- smoke test ---------------------------------------------------
if __name__ == "__main__":
    DIM = 128          # ModelConfig.dim
    HIDDEN = 4 * DIM   # 512
    B, T = 2, 128      # batch=2, seq=block_size=128 -> M=256 -> TM=128, grid=(2,)

    key = jax.random.PRNGKey(0)
    kx, k1, k2 = jax.random.split(key, 3)
    x = jax.random.normal(kx, (B, T, DIM), dtype=jnp.float32)
    # nn.Linear(bias=False) weights, stored already transposed for x @ W.
    w_fc_f32 = jax.random.normal(k1, (DIM, HIDDEN), dtype=jnp.float32) * (DIM ** -0.5)
    w_proj_f32 = jax.random.normal(k2, (HIDDEN, DIM), dtype=jnp.float32) * (HIDDEN ** -0.5)

    # Parameter-setup-time cast (done once, not per forward call).
    w_fc = w_fc_f32.astype(jnp.bfloat16)
    w_proj = w_proj_f32.astype(jnp.bfloat16)

    out = mlp_forward(x, w_fc, w_proj)
    out = jax.block_until_ready(out)

    # f32 reference with PyTorch semantics (exact GELU, no bias, dropout p=0).
    ref = jnp.dot(x, w_fc_f32)
    ref = jax.nn.gelu(ref, approximate=False)
    ref = jnp.dot(ref, w_proj_f32)

    assert out.shape == (B, T, DIM), out.shape
    assert out.dtype == x.dtype, out.dtype
    assert bool(jnp.all(jnp.isfinite(out)))
    max_err = float(jnp.max(jnp.abs(out.astype(jnp.float32) - ref)))
    # Loose tolerance: bf16 MXU inputs/weights + approx reciprocal in erf.
    assert max_err < 0.15, max_err
    print("KERNEL_OK")
</pallas_src>

<mosaic_0001>
module attributes {stable_mosaic.version = 11 : i64} {
  func.func @_mlp_kernel(%arg0: i32, %arg1: memref<128x128xf32, #tpu.memory_space<vmem>>, %arg2: memref<128x512xbf16, #tpu.memory_space<vmem>>, %arg3: memref<512x128xbf16, #tpu.memory_space<vmem>>, %arg4: memref<128x128xf32, #tpu.memory_space<vmem>>) attributes {dimension_semantics = [#tpu.dimension_semantics<parallel>], iteration_bounds = array<i64: 2>, scalar_prefetch = 0 : i64, scratch_operands = 0 : i64, tpu.core_type = #tpu.core_type<tc>, window_params = [{transform_indices = @transform_0, window_bounds = array<i64: 128, 128>}, {pipeline_mode = #tpu.pipeline_mode<synchronous>, transform_indices = @transform_1, window_bounds = array<i64: 128, 512>}, {pipeline_mode = #tpu.pipeline_mode<synchronous>, transform_indices = @transform_2, window_bounds = array<i64: 512, 128>}, {transform_indices = @transform_3, window_bounds = array<i64: 128, 128>}]} {
    %c0 = arith.constant 0 : index
    %c0_0 = arith.constant 0 : index
    %0 = vector.load %arg1[%c0, %c0_0] : memref<128x128xf32, #tpu.memory_space<vmem>>, vector<128x128xf32>
    %1 = arith.truncf %0 : vector<128x128xf32> to vector<128x128xbf16>
    %c0_1 = arith.constant 0 : index
    %c0_2 = arith.constant 0 : index
    %2 = vector.load %arg2[%c0_1, %c0_2] : memref<128x512xbf16, #tpu.memory_space<vmem>>, vector<128x512xbf16>
    %cst = arith.constant dense<0.000000e+00> : vector<128x512xf32>
    %3 = tpu.matmul %1, %2, %cst {dimension_numbers = #tpu.dot_dimension_numbers<[1], [0], [0], [1], [0, 0, 1, 1], [], []>} : vector<128x128xbf16>, vector<128x512xbf16>, vector<128x512xf32> -> vector<128x512xf32>
    %4 = math.absf %3 : vector<128x512xf32>
    %cst_3 = arith.constant 0.231641889 : f32
    %5 = vector.broadcast %cst_3 : f32 to vector<128x512xf32>
    %6 = arith.mulf %5, %4 : vector<128x512xf32>
    %cst_4 = arith.constant 1.000000e+00 : f32
    %7 = vector.broadcast %cst_4 : f32 to vector<128x512xf32>
    %8 = arith.addf %7, %6 : vector<128x512xf32>
    %9 = tpu.reciprocal %8 {approx = true} : vector<128x512xf32> -> vector<128x512xf32>
    %cst_5 = arith.constant 1.06140542 : f32
    %10 = vector.broadcast %cst_5 : f32 to vector<128x512xf32>
    %11 = arith.mulf %10, %9 : vector<128x512xf32>
    %cst_6 = arith.constant -1.45315206 : f32
    %12 = vector.broadcast %cst_6 : f32 to vector<128x512xf32>
    %13 = arith.addf %11, %12 : vector<128x512xf32>
    %14 = arith.mulf %13, %9 : vector<128x512xf32>
    %cst_7 = arith.constant 1.42141378 : f32
    %15 = vector.broadcast %cst_7 : f32 to vector<128x512xf32>
    %16 = arith.addf %14, %15 : vector<128x512xf32>
    %17 = arith.mulf %16, %9 : vector<128x512xf32>
    %cst_8 = arith.constant -0.284496725 : f32
    %18 = vector.broadcast %cst_8 : f32 to vector<128x512xf32>
    %19 = arith.addf %17, %18 : vector<128x512xf32>
    %20 = arith.mulf %19, %9 : vector<128x512xf32>
    %cst_9 = arith.constant 0.254829586 : f32
    %21 = vector.broadcast %cst_9 : f32 to vector<128x512xf32>
    %22 = arith.addf %20, %21 : vector<128x512xf32>
    %23 = arith.mulf %22, %9 : vector<128x512xf32>
    %cst_10 = arith.constant -5.000000e-01 : f32
    %24 = vector.broadcast %cst_10 : f32 to vector<128x512xf32>
    %25 = arith.mulf %24, %3 : vector<128x512xf32>
    %26 = arith.mulf %25, %3 : vector<128x512xf32>
    %27 = math.exp %26 : vector<128x512xf32>
    %cst_11 = arith.constant 5.000000e-01 : f32
    %28 = vector.broadcast %cst_11 : f32 to vector<128x512xf32>
    %29 = arith.mulf %28, %4 : vector<128x512xf32>
    %cst_12 = arith.constant 5.000000e-01 : f32
    %30 = vector.broadcast %cst_12 : f32 to vector<128x512xf32>
    %31 = arith.mulf %30, %3 : vector<128x512xf32>
    %32 = arith.addf %31, %29 : vector<128x512xf32>
    %33 = arith.mulf %29, %23 : vector<128x512xf32>
    %34 = arith.mulf %33, %27 : vector<128x512xf32>
    %35 = arith.subf %32, %34 : vector<128x512xf32>
    %36 = arith.truncf %35 : vector<128x512xf32> to vector<128x512xbf16>
    %c0_13 = arith.constant 0 : index
    %c0_14 = arith.constant 0 : index
    %37 = vector.load %arg3[%c0_13, %c0_14] : memref<512x128xbf16, #tpu.memory_space<vmem>>, vector<512x128xbf16>
    %cst_15 = arith.constant dense<0.000000e+00> : vector<128x128xf32>
    %38 = tpu.matmul %36, %37, %cst_15 {dimension_numbers = #tpu.dot_dimension_numbers<[1], [0], [0], [1], [0, 0, 1, 1], [], []>} : vector<128x512xbf16>, vector<512x128xbf16>, vector<128x128xf32> -> vector<128x128xf32>
    %c0_16 = arith.constant 0 : index
    %c0_17 = arith.constant 0 : index
    %39 = vector.load %arg4[%c0_16, %c0_17] : memref<128x128xf32, #tpu.memory_space<vmem>>, vector<128x128xf32>
    tpu.vector_store %arg4[%c0_16, %c0_17], %38 {strides = array<i32>} : memref<128x128xf32, #tpu.memory_space<vmem>>, vector<128x128xf32>,
    return
  }
  func.func @transform_0(%arg0: i32) -> (i32, i32) {
    %c0_i32 = arith.constant 0 : i32
    %c0_i32_0 = arith.constant 0 : i32
    return %arg0, %c0_i32 : i32, i32
  }
  func.func @transform_1(%arg0: i32) -> (i32, i32) {
    %c0_i32 = arith.constant 0 : i32
    %c0_i32_0 = arith.constant 0 : i32
    %c0_i32_1 = arith.constant 0 : i32
    return %c0_i32, %c0_i32_0 : i32, i32
  }
  func.func @transform_2(%arg0: i32) -> (i32, i32) {
    %c0_i32 = arith.constant 0 : i32
    %c0_i32_0 = arith.constant 0 : i32
    %c0_i32_1 = arith.constant 0 : i32
    return %c0_i32, %c0_i32_0 : i32, i32
  }
  func.func @transform_3(%arg0: i32) -> (i32, i32) {
    %c0_i32 = arith.constant 0 : i32
    %c0_i32_0 = arith.constant 0 : i32
    return %arg0, %c0_i32 : i32, i32
  }
}

</mosaic_0001>

<bundles_post_ra>
// kernel: tpu_custom_call.1
= control target key start
LH: loop header
LB: loop body
LE: loop exit
PB: predicated region body
PF: predicated region fallthrough
CT: control target
= control target key end

     0   :  { %8 = vsyncpa [#allocation3], 0  ;;  %s5495_s0 = inlined_call_operand.hbm [shape: f32[256,128], index: 0, kind: input, shape index: {}]   ;;  %s5496_s1 = inlined_call_operand.hbm [shape: bf16[128,512], index: 1, kind: input, shape index: {}]   ;;  %s5497_s2 = inlined_call_operand.hbm [shape: bf16[512,128], index: 2, kind: input, shape index: {}]   ;;  %s5498_s3 = inlined_call_operand.hbm [shape: f32[256,128], index: 3, kind: output, shape index: {}]  }
   0x1   :  { %10 = vsyncpa [#allocation3 + $0x1], 0 }
   0x2   :  { %11 = vsyncpa [#allocation6], 0 }
   0x3   :  { %12 = vsyncpa [#allocation4], 0 }
   0x4   :  { %14 = vsyncpa [#allocation4 + $0x1], 0  ;;  %s3554_s12 = smov 0   ;;  %s3556_s13 = smov 0  }
   0x5   :  { %s3558_s14 = smov 0   ;;  %s3560_s15 = smov 0  }
   0x6 LB: > { %s3575_s16 = sadd.s32 4294967295, %s3519_s15   ;;  %s2739_s17 = sadd.s32 4294967294, %s3519_s15   ;;  %s3519_s15 = sphi %s3560_s15, %s5821_s15   ;;  %s3515_s14 = sphi %s3558_s14, %s5820_s14   ;;  %s3511_s13 = sphi %s3556_s13, %s5819_s13   ;;  %s3507_s12 = sphi %s3554_s12, %s5818_s12  }
   0x7   : > { %p40_p0 = scmp.ne.s32.totalorder %s3511_s13, %s3507_s12  ;;  %p5499_p1 = scmp.eq.s32.totalorder %s3575_s16, 0 }
   0x8   : > { %p112_p3 = scmp.eq.s32.totalorder %s2739_s17, 1  ;;  %p2740_p5 = scmp.ge.s32.totalorder %s3519_s15, 1 }
   0x9   : > { %p3584_p4 = por %p5499_p1, %p40_p0  ;;  %p119_p7 = scmp.lt.s32.totalorder %s3519_s15, 3 }
   0xa   : > { %p3589_p6 = por %p112_p3, %p40_p0  ;;  %s3521_s21 = smov [#allocation5]  }
   0xb   : > { %s5512_s18 = scalar_select %p3584_p4, 1, 0 }
   0xc   : > { %s5513_s19 = scalar_select %p3589_p6, 1, 0 }
   0xd   : > { %p3594_p8 = pnand %p2740_p5, %p119_p7  ;;  %s131_s22 = sshll.u32 %s3521_s21, 4  ;;  %s3598_s22 = int_to_ptr.vmem [resolvable:$true] %s131_s22 }
   0xe   : > { %s3522_s24 = smov [#allocation7]   ;;  %s3363_s28 = scalar_lea.hbm %s5496_s1, 4096 }
   0xf   : > { %p2963_p9 = pneg %p3594_p8  ;;  %s144_s25 = sshll.u32 %s3522_s24, 4  ;;  %s3609_s25 = int_to_ptr.vmem [resolvable:$true] %s144_s25 }
  0x10   : > { %p3364_p12 = scmp.ne.s32.totalorder %s5496_s1, %s3363_s28  ;;  %p3370_p5 = scmp.lt.u32.totalorder %s3363_s28, %s5496_s1 }
  0x11   : > { %p3605_p11 = pnand %p2963_p9, %p5499_p1 }
  0x13   : > { %p3365_p13 = pneg %p3605_p11 }
  0x15   : > { %p3366_p0 = pnand %p3365_p13, %p3364_p12 }
  0x17   : > { %p3367_p3 = pneg %p3366_p0 }
  0x19   : > { %p3372_p7 = pnand %p3370_p5, %p3367_p3 }
  0x1b   : > { %3375 = shalt.err (!%p3372_p7)
}
  0x1c   : > { %s3376_s6 = scalar_lea.vmem %s3598_s22, 4096  ;;  %p3384_p2 = scmp.lt.s32.totalorder %s3598_s22, %s3598_s22 }
  0x1d   : > { %p3377_p9 = scmp.ne.s32.totalorder %s3598_s22, %s3376_s6  ;;  %p3385_p12 = scmp.lt.s32.totalorder %s3376_s6, %s3376_s6 }
  0x1f   : > { %p3379_p10 = pnand %p3377_p9, %p3365_p13  ;;  %p3386_p0 = por %p3385_p12, %p3384_p2 }
  0x21   : > { %p3380_p1 = pneg %p3379_p10 }
  0x23   : > { %p3387_p6 = pnand %p3386_p0, %p3380_p1 }
  0x25   : > { %3390 = shalt.err (!%p3387_p6)
}
  0x26   : > { %s3523_s7 = smov 256   ;;  %s3524_s8 = smov 16  }
  0x27   : > { %2966 = dma.hbm_to_vmem [thread:$0]  (!%p3605_p11), %s5496_s1, 4096, %s3598_s22, [#allocation6], %s3523_s7, %s3523_s7, %s3524_s8  }
  0x28   : > { %s3391_s21 = scalar_lea.hbm %s5497_s2, 4096 }
  0x29   : > { %p3392_p2 = scmp.ne.s32.totalorder %s5497_s2, %s3391_s21  ;;  %p3398_p10 = scmp.lt.u32.totalorder %s3391_s21, %s5497_s2 }
  0x2b   : > { %p3394_p1 = pnand %p3392_p2, %p3365_p13 }
  0x2d   : > { %p3395_p6 = pneg %p3394_p1 }
  0x2f   : > { %p3400_p3 = pnand %p3398_p10, %p3395_p6 }
  0x31   : > { %3403 = shalt.err (!%p3400_p3)
}
  0x32   : > { %s3404_s22 = scalar_lea.vmem %s3609_s25, 4096  ;;  %p3412_p12 = scmp.lt.s32.totalorder %s3609_s25, %s3609_s25 }
  0x33   : > { %p3405_p5 = scmp.ne.s32.totalorder %s3609_s25, %s3404_s22  ;;  %p3413_p0 = scmp.lt.s32.totalorder %s3404_s22, %s3404_s22 }
  0x35   : > { %p3407_p7 = pnand %p3405_p5, %p3365_p13  ;;  %p3414_p2 = por %p3413_p0, %p3412_p12 }
  0x37   : > { %p3408_p9 = pneg %p3407_p7 }
  0x39   : > { %p3415_p1 = pnand %p3414_p2, %p3408_p9 }
  0x3b   : > { %3418 = shalt.err (!%p3415_p1)
}
  0x3c   : > { %s3525_s29 = smov 64   ;;  %s3526_s30 = smov 4  }
  0x3d   : > { %2969 = dma.hbm_to_vmem [thread:$0]  (!%p3605_p11), %s5497_s2, 4096, %s3609_s25, [#allocation6], %s3525_s29, %s3525_s29, %s3526_s30  }
  0x3e   : > { %s3664_s6 = sadd.s32 1, %s3519_s15   ;;  %s27_s8 = sadd.s32 1, %s3515_s14 }
  0x3f   : > { %s24_s7 = ssub.s32 %s3519_s15, %s3664_s6  ;;  %p34_p6 = scmp.ne.s32.totalorder %s3515_s14, %s3511_s13 }
  0x40   : > { %p25_p13 = scmp.eq.s32.totalorder %s24_s7, 0  ;;  %p35_p10 = scmp.eq.s32.totalorder %s3519_s15, 0 }
  0x41   : > { %p5516_p5 = scmp.eq.s32.totalorder %s3575_s16, 1  ;;  %p2980_p9 = scmp.lt.s32.totalorder %s3519_s15, 2 }
  0x42   : > { %s3673_s9 = scalar_select %p25_p13, %s3515_s14, %s27_s8  }
  0x43   : > { %p36_p3 = por %p35_p10, %p34_p6  ;;  %p3677_p7 = por %p5516_p5, %p34_p6 }
  0x44   : > { %s158_s23 = sand.u32 1, %s3515_s14   ;;  %s2821_s25 = sshll.u32 %s3519_s15, 11 }
  0x45   : > { %s5517_s10 = scalar_select %p3677_p7, 1, 0 }
  0x46   : > { %s2744_s11 = sshll.u32 %s158_s23, 7  ;;  %s3687_s24 = scalar_lea.hbm %s5495_s0, %s2821_s25 }
  0x47   : > { %s162_s26 = scalar_lea.vmem [#allocation2], %s2744_s11  ;;  %p3691_p11 = pnand %p2980_p9, %p36_p3 }
  0x48   : > { %s169_s27 = sshll.u32 %s162_s26, 4  ;;  %s3695_s22 = scalar_lea.sflag [#allocation3], %s158_s23  ;;  %s3689_s27 = int_to_ptr.vmem [resolvable:$true] %s169_s27 }
  0x49   : > { %s3419_s29 = scalar_lea.hbm %s3687_s24, 2048  ;;  %p3421_p0 = pneg %p3691_p11 }
  0x4a   : > { %p3420_p12 = scmp.ne.s32.totalorder %s3687_s24, %s3419_s29  ;;  %s3424_s5 = scalar_lea.hbm %s5495_s0, 4096 }
  0x4b   : > { %p3425_p13 = scmp.lt.u32.totalorder %s3687_s24, %s5495_s0  ;;  %p3426_p6 = scmp.lt.u32.totalorder %s3424_s5, %s3419_s29 }
  0x4c   : > { %p3422_p2 = pnand %p3421_p0, %p3420_p12  ;;  %p3428_p3 = scmp.lt.u32.totalorder %s3419_s29, %s3687_s24 }
  0x4d   : > { %p3427_p10 = por %p3426_p6, %p3425_p13 }
  0x4e   : > { %p3423_p1 = pneg %p3422_p2 }
  0x4f   : > { %p3429_p5 = por %p3428_p3, %p3427_p10 }
  0x51   : > { %p3430_p9 = pnand %p3429_p5, %p3423_p1 }
  0x53   : > { %3433 = shalt.err (!%p3430_p9)
}
  0x54   : > { %s3434_s23 = scalar_lea.vmem %s3689_s27, 2048  ;;  %s3527_s11 = smov [#allocation2]  }
  0x55   : > { %p3435_p12 = scmp.ne.s32.totalorder %s3689_s27, %s3434_s23  ;;  %s3439_s25 = sshll.u32 %s3527_s11, 4  ;;  %s3440_s25 = int_to_ptr.vmem [resolvable:$false] %s3439_s25 }
  0x56   : > { %s3441_s17 = scalar_lea.vmem %s3440_s25, 4096  ;;  %p3442_p4 = scmp.lt.s32.totalorder %s3689_s27, %s3440_s25 }
  0x57   : > { %p3437_p2 = pnand %p3435_p12, %p3421_p0  ;;  %p3443_p13 = scmp.lt.s32.totalorder %s3441_s17, %s3434_s23 }
  0x59   : > { %p3438_p7 = pneg %p3437_p2  ;;  %p3444_p6 = por %p3443_p13, %p3442_p4 }
  0x5b   : > { %p3445_p10 = pnand %p3444_p6, %p3438_p7 }
  0x5d   : > { %3448 = shalt.err (!%p3445_p10)
}
  0x5e   : > { %s3528_s21 = smov 128   ;;  %s3529_s26 = smov 8  }
  0x5f   : > { %2973 = dma.hbm_to_vmem [thread:$0]  (!%p3691_p11), %s3687_s24, 2048, %s3689_s27, %s3695_s22, %s3528_s21, %s3528_s21, %s3529_s26  }
  0x60   : > { %181 = sbr.rel (%p3594_p8) target bundleno = 983 (0x3d7), region = 32 }
  0x67   : > { %s3726_s29 = sand.u32 1, %s3511_s13   ;;  %p5519_p4 = scmp.ne.s32.totalorder %s5512_s18, 0 }
  0x68   : > { %s2748_s30 = sshll.u32 %s3726_s29, 7  ;;  %s184_s4 = scalar_lea.sflag [#allocation3], %s3726_s29 }
  0x69   : > { %s3732_s5 = scalar_lea.vmem [#allocation2], %s2748_s30 }
  0x6a   : > { %3494 = dma.done.wait (%p5519_p4), %s184_s4, 2048  }
  0x6b   : > { %3496 = vsyncadd (%p5519_p4), %s184_s4, 4294965248  ;;  %p5520_p7 = scmp.eq.s32.totalorder %s3575_s16, 0 }
  0x6d   : > { %3498 = dma.done.wait (%p5520_p7), [#allocation6], 8192   ;;  %p5521_p8 = pmov %p5520_p7 }
  0x6e   : > { %v3530_v0 = vmov 0   ;;  %v3027_v1 = vld [vmem:[#allocation5 + $0x4] ss:$16 sps:$4 sm:$0xff]   ;;  %v3029_v2 = vld [vmem:[#allocation5 + $0xc] ss:$16 sps:$4 sm:$0xff]   ;;  %s5426_s18 = scalar_lea.vmem [#allocation8], %s2748_s30 }
  0x6f   : > { %3500 = vsyncadd (%p5521_p8), [#allocation6], 4294959104  ;;  %469 = vmatprep.mubr.bf16.mxu0 %v3530_v0  ;;  %582 = vmatprep.mubr.bf16.mxu1 %v3530_v0  ;;  %v3031_v3 = vld [vmem:[#allocation5] ss:$16 sps:$4 sm:$0xff]   ;;  %v3032_v4 = vld [vmem:[#allocation5 + $0x8] ss:$16 sps:$4 sm:$0xff]  }
  0x70   : > { %437 = vmatprep.subr.bf16.mxu0 %v3027_v1  ;;  %550 = vmatprep.subr.bf16.mxu1 %v3029_v2  ;;  %v3033_v5 = vld [vmem:[#allocation5 + $0x24] ss:$16 sps:$4 sm:$0xff]   ;;  %v3035_v6 = vld [vmem:[#allocation5 + $0x2c] ss:$16 sps:$4 sm:$0xff]   ;;  %v3037_v7 = vld [vmem:[#allocation5 + $0x20] ss:$16 sps:$4 sm:$0xff]  }
  0x71   : > { %438 = vmatpush1.bf16.msra.mxu0 %v3031_v3  ;;  %551 = vmatpush1.bf16.msra.mxu1 %v3032_v4  ;;  %v3038_v8 = vld [vmem:[#allocation5 + $0x28] ss:$16 sps:$4 sm:$0xff]   ;;  %v3039_v9 = vld [vmem:[#allocation5 + $0x44] ss:$16 sps:$4 sm:$0xff]   ;;  %v3041_v10 = vld [vmem:[#allocation5 + $0x4c] ss:$16 sps:$4 sm:$0xff]  }
  0x72   : > { %439 = vmatprep.subr.bf16.mxu0 %v3033_v5  ;;  %552 = vmatprep.subr.bf16.mxu1 %v3035_v6  ;;  %v3043_v11 = vld [vmem:[#allocation5 + $0x40] ss:$16 sps:$4 sm:$0xff]   ;;  %v3044_v12 = vld [vmem:[#allocation5 + $0x48] ss:$16 sps:$4 sm:$0xff]   ;;  %v3045_v13 = vld [vmem:[#allocation5 + $0x64] ss:$16 sps:$4 sm:$0xff]  }
  0x73   : > { %v3047_v14 = vld [vmem:[#allocation5 + $0x6c] ss:$16 sps:$4 sm:$0xff]   ;;  %v3049_v15 = vld [vmem:[#allocation5 + $0x60] ss:$16 sps:$4 sm:$0xff]   ;;  %v3050_v16 = vld [vmem:[#allocation5 + $0x68] ss:$16 sps:$4 sm:$0xff]  }
  0x74   : > { %v3051_v17 = vld [vmem:[#allocation5 + $0x84] ss:$16 sps:$4 sm:$0xff]   ;;  %v3053_v18 = vld [vmem:[#allocation5 + $0x8c] ss:$16 sps:$4 sm:$0xff]   ;;  %v3055_v19 = vld [vmem:[#allocation5 + $0x80] ss:$16 sps:$4 sm:$0xff]  }
  0x75   : > { %440 = vmatpush1.bf16.msra.mxu0 %v3037_v7  ;;  %553 = vmatpush1.bf16.msra.mxu1 %v3038_v8  ;;  %v3056_v20 = vld [vmem:[#allocation5 + $0x88] ss:$16 sps:$4 sm:$0xff]   ;;  %v3057_v21 = vld [vmem:[#allocation5 + $0xa4] ss:$16 sps:$4 sm:$0xff]   ;;  %v3059_v22 = vld [vmem:[#allocation5 + $0xac] ss:$16 sps:$4 sm:$0xff]  }
  0x76   : > { %441 = vmatprep.subr.bf16.mxu0 %v3039_v9  ;;  %554 = vmatprep.subr.bf16.mxu1 %v3041_v10  ;;  %v3061_v23 = vld [vmem:[#allocation5 + $0xa0] ss:$16 sps:$4 sm:$0xff]   ;;  %v3062_v24 = vld [vmem:[#allocation5 + $0xa8] ss:$16 sps:$4 sm:$0xff]   ;;  %v3063_v25 = vld [vmem:[#allocation5 + $0xc4] ss:$16 sps:$4 sm:$0xff]  }
  0x77   : > { %v3065_v26 = vld [vmem:[#allocation5 + $0xcc] ss:$16 sps:$4 sm:$0xff]   ;;  %v3067_v27 = vld [vmem:[#allocation5 + $0xc0] ss:$16 sps:$4 sm:$0xff]   ;;  %v3068_v28 = vld [vmem:[#allocation5 + $0xc8] ss:$16 sps:$4 sm:$0xff]  }
  0x78   : > { %v3069_v29 = vld [vmem:[#allocation5 + $0xe4] ss:$16 sps:$4 sm:$0xff]   ;;  %v3071_v30 = vld [vmem:[#allocation5 + $0xec] ss:$16 sps:$4 sm:$0xff]   ;;  %v3073_v31 = vld [vmem:[#allocation5 + $0xe0] ss:$16 sps:$4 sm:$0xff]  }
  0x79   : > { %442 = vmatpush1.bf16.msra.mxu0 %v3043_v11  ;;  %555 = vmatpush1.bf16.msra.mxu1 %v3044_v12  ;;  %v3074_v32 = vld [vmem:[#allocation5 + $0xe8] ss:$16 sps:$4 sm:$0xff]   ;;  %v221_v33 = vld [vmem:[%s3732_s5] sm:$0xff]  ;;  %v223_v41 = vld [vmem:[%s3732_s5 + $0x10] sm:$0xff]  ;;  %s2822_s20 = sshll.u32 %s3575_s16, 11  ;;  %s2647_s24 = sshll.u32 %s5426_s18, 4  ;;  %s5449_s24 = int_to_ptr.vmem [resolvable:$true] %s2647_s24 }
  0x7a   : > { %443 = vmatprep.subr.bf16.mxu0 %v3045_v13  ;;  %556 = vmatprep.subr.bf16.mxu1 %v3047_v14  ;;  %v222_v34 = vld [vmem:[%s3732_s5 + $0x8] sm:$0xff]  ;;  %v3075_v35 = vld [vmem:[#allocation7 + $0x40] sm:$0xff]   ;;  %v224_v42 = vld [vmem:[%s3732_s5 + $0x18] sm:$0xff]  ;;  %s5447_s22 = scalar_lea.hbm %s5498_s3, %s2822_s20  ;;  %s2634_s7 = scalar_lea.sflag [#allocation4], %s3726_s29 }
  0x7b   : > { %v3076_v36 = vld [vmem:[#allocation7 + $0xc0] sm:$0xff]   ;;  %v237_v37 = vpack.c.bf16 %v222_v34, %v221_v33  ;;  %v3079_v40 = vld [vmem:[#allocation7 + $0x48] sm:$0xff]   ;;  %v3083_v46 = vld [vmem:[#allocation7 + $0x50] sm:$0xff]   ;;  %v238_v48 = vpack.c.bf16 %v224_v42, %v223_v41  ;;  %s3449_s16 = scalar_lea.vmem %s5449_s24, 2048  ;;  %p5815_p0 = scmp.ne.s32.totalorder %s5517_s10, 0 }
  0x7c   : > { %v3077_v38 = vld [vmem:[#allocation7] sm:$0xff]   ;;  %v3080_v43 = vld [vmem:[#allocation7 + $0xc8] sm:$0xff]   ;;  %v3084_v47 = vld [vmem:[#allocation7 + $0xd0] sm:$0xff]   ;;  %p3450_p11 = scmp.ne.s32.totalorder %s5449_s24, %s3449_s16  ;;  %s3531_s8 = smov [#allocation8]  }
  0x7d   : > { %444 = vmatpush1.bf16.msra.mxu0 %v3049_v15  ;;  %557 = vmatpush1.bf16.msra.mxu1 %v3050_v16  ;;  %v3078_v39 = vld [vmem:[#allocation7 + $0x80] sm:$0xff]   ;;  %v3081_v44 = vld [vmem:[#allocation7 + $0x8] sm:$0xff]   ;;  %v227_v52 = vld [vmem:[%s3732_s5 + $0x30] sm:$0xff]  ;;  %s3453_s23 = sshll.u32 %s3531_s8, 4  ;;  %s3454_s23 = int_to_ptr.vmem [resolvable:$false] %s3453_s23 }
  0x7e   : > { %445 = vmatprep.subr.bf16.mxu0 %v3051_v17  ;;  %558 = vmatprep.subr.bf16.mxu1 %v3053_v18  ;;  %v3082_v45 = vld [vmem:[#allocation7 + $0x88] sm:$0xff]   ;;  %v225_v49 = vld [vmem:[%s3732_s5 + $0x20] sm:$0xff]  ;;  %v228_v53 = vld [vmem:[%s3732_s5 + $0x38] sm:$0xff]  ;;  %p3451_p1 = pnand %p3450_p11, %p5815_p0  ;;  %s3455_s11 = scalar_lea.vmem %s3454_s23, 4096 }
  0x7f   : > { %v226_v50 = vld [vmem:[%s3732_s5 + $0x28] sm:$0xff]  ;;  %v240_v54 = vpack.c.bf16 %v228_v53, %v227_v52  ;;  %v229_v55 = vld [vmem:[%s3732_s5 + $0x40] sm:$0xff]  ;;  %v231_v58 = vld [vmem:[%s3732_s5 + $0x50] sm:$0xff]  ;;  %p3456_p5 = scmp.lt.s32.totalorder %s5449_s24, %s3454_s23  ;;  %p3457_p9 = scmp.lt.s32.totalorder %s3455_s11, %s3449_s16 }
  0x80   : > { %v239_v51 = vpack.c.bf16 %v226_v50, %v225_v49  ;;  %v230_v56 = vld [vmem:[%s3732_s5 + $0x48] sm:$0xff]  ;;  %v232_v59 = vld [vmem:[%s3732_s5 + $0x58] sm:$0xff]  ;;  %v233_v61 = vld [vmem:[%s3732_s5 + $0x60] sm:$0xff]  ;;  %p3452_p3 = pneg %p3451_p1 }
  0x81   : > { %446 = vmatpush1.bf16.msra.mxu0 %v3055_v19  ;;  %559 = vmatpush1.bf16.msra.mxu1 %v3056_v20  ;;  %v241_v57 = vpack.c.bf16 %v230_v56, %v229_v55  ;;  %v242_v60 = vpack.c.bf16 %v232_v59, %v231_v58  ;;  %v234_v62 = vld [vmem:[%s3732_s5 + $0x68] sm:$0xff]  ;;  %v235_v1 = vld [vmem:[%s3732_s5 + $0x70] sm:$0xff]  ;;  %v236_v2 = vld [vmem:[%s3732_s5 + $0x78] sm:$0xff]  ;;  %p3458_p12 = por %p3457_p9, %p3456_p5 }
  0x82   : > { %447 = vmatprep.subr.bf16.mxu0 %v3057_v21  ;;  %560 = vmatprep.subr.bf16.mxu1 %v3059_v22  ;;  %v243_v63 = vpack.c.bf16 %v234_v62, %v233_v61  ;;  %v244_v3 = vpack.c.bf16 %v236_v2, %v235_v1  ;;  %v3085_v4 = vld [vmem:[#allocation7 + $0x10] sm:$0xff]   ;;  %v3087_v6 = vld [vmem:[#allocation7 + $0x58] sm:$0xff]   ;;  %v3091_v10 = vld [vmem:[#allocation7 + $0x60] sm:$0xff]  }
  0x83   : > { %v3086_v5 = vld [vmem:[#allocation7 + $0x90] sm:$0xff]   ;;  %v3088_v7 = vld [vmem:[#allocation7 + $0xd8] sm:$0xff]   ;;  %v3092_v11 = vld [vmem:[#allocation7 + $0xe0] sm:$0xff]   ;;  %p3459_p2 = pnand %p3458_p12, %p3452_p3 }
  0x84   : > { %v3089_v8 = vld [vmem:[#allocation7 + $0x18] sm:$0xff]   ;;  %v3094_v12 = vld [vmem:[#allocation7 + $0xa0] sm:$0xff]   ;;  %v3095_v21 = vld [vmem:[#allocation7 + $0x68] sm:$0xff]  }
  0x85   : > { %448 = vmatpush1.bf16.msra.mxu0 %v3061_v23  ;;  %561 = vmatpush1.bf16.msra.mxu1 %v3062_v24  ;;  %v3090_v9 = vld [vmem:[#allocation7 + $0x98] sm:$0xff]   ;;  %v3096_v22 = vld [vmem:[#allocation7 + $0xe8] sm:$0xff]  }
  0x86   : > { %449 = vmatprep.subr.bf16.mxu0 %v3063_v25  ;;  %562 = vmatprep.subr.bf16.mxu1 %v3065_v26  ;;  %v3097_v55 = vld [vmem:[#allocation7 + $0x28] sm:$0xff]  }
  0x87   : > { %v3098_v61 = vld [vmem:[#allocation7 + $0xa8] sm:$0xff]  }
  0x89   : > { %450 = vmatpush1.bf16.msra.mxu0 %v3067_v27  ;;  %563 = vmatpush1.bf16.msra.mxu1 %v3068_v28 }
  0x8a   : > { %451 = vmatprep.subr.bf16.mxu0 %v3069_v29  ;;  %564 = vmatprep.subr.bf16.mxu1 %v3071_v30 }
  0x8d   : > { %452 = vmatpush1.bf16.msra.mxu0 %v3073_v31  ;;  %565 = vmatpush1.bf16.msra.mxu1 %v3074_v32 }
  0x8e   : > { %2823 = vmatprep.subr.bf16.mxu0 %v3075_v35  ;;  %2887 = vmatprep.subr.bf16.mxu1 %v3076_v36 }
  0x90   : > { %470 = vmatmul.mubr.bf16.vlgmr.msra.gmra.mrb[0].mxu0 %v237_v37  ;;  %583 = vmatmul.mubr.bf16.vlgmr.msra.gmra.mrb[0].mxu1 %v237_v37 }
  0x91   : > { %479 = vmatprep.mubr.bf16.mxu0 %v3530_v0  ;;  %592 = vmatprep.mubr.bf16.mxu1 %v3530_v0 }
  0x92   : > { %2824 = vmatpush3.bf16.msra.mxu0 %v3077_v38  ;;  %2888 = vmatpush3.bf16.msra.mxu1 %v3078_v39 }
  0x93   : > { %2825 = vmatprep.subr.bf16.mxu0 %v3079_v40  ;;  %2889 = vmatprep.subr.bf16.mxu1 %v3080_v43 }
  0x96   : > { %2826 = vmatpush3.bf16.msra.mxu0 %v3081_v44  ;;  %2890 = vmatpush3.bf16.msra.mxu1 %v3082_v45 }
  0x97   : > { %2827 = vmatprep.subr.bf16.mxu0 %v3083_v46  ;;  %2891 = vmatprep.subr.bf16.mxu1 %v3084_v47 }
  0x98   : > { %480 = vmatmul.mubr.bf16.gmra.mrb[4].mxu0 %v238_v48  ;;  %593 = vmatmul.mubr.bf16.gmra.mrb[4].mxu1 %v238_v48 }
  0x99   : > { %489 = vmatprep.mubr.bf16.mxu0 %v3530_v0  ;;  %602 = vmatprep.mubr.bf16.mxu1 %v3530_v0 }
  0x9a   : > { %2828 = vmatpush3.bf16.msra.mxu0 %v3085_v4  ;;  %2892 = vmatpush3.bf16.msra.mxu1 %v3086_v5 }
  0x9b   : > { %2829 = vmatprep.subr.bf16.mxu0 %v3087_v6  ;;  %2893 = vmatprep.subr.bf16.mxu1 %v3088_v7 }
  0x9e   : > { %2830 = vmatpush3.bf16.msra.mxu0 %v3089_v8  ;;  %2894 = vmatpush3.bf16.msra.mxu1 %v3090_v9 }
  0x9f   : > { %2831 = vmatprep.subr.bf16.mxu0 %v3091_v10  ;;  %2895 = vmatprep.subr.bf16.mxu1 %v3092_v11 }
  0xa0   : > { %490 = vmatmul.mubr.bf16.gmra.mrb[8].mxu0 %v239_v51  ;;  %603 = vmatmul.mubr.bf16.gmra.mrb[8].mxu1 %v239_v51 }
  0xa1   : > { %499 = vmatprep.mubr.bf16.mxu0 %v3530_v0  ;;  %612 = vmatprep.mubr.bf16.mxu1 %v3530_v0 }
  0xa2   : > { %2896 = vmatpush3.bf16.msra.mxu1 %v3094_v12 }
  0xa3   : > { %2897 = vmatprep.subr.bf16.mxu1 %v3096_v22 }
  0xa6   : > { %2898 = vmatpush3.bf16.msra.mxu1 %v3098_v61 }
  0xa8   : > { %500 = vmatmul.mubr.bf16.gmra.mrb[12].mxu0 %v240_v54  ;;  %613 = vmatmul.mubr.bf16.gmra.mrb[12].mxu1 %v240_v54 }
  0xa9   : > { %509 = vmatprep.mubr.bf16.mxu0 %v3530_v0  ;;  %622 = vmatprep.mubr.bf16.mxu1 %v3530_v0 }
  0xb0   : > { %510 = vmatmul.mubr.bf16.gmra.mrb[16].mxu0 %v241_v57  ;;  %623 = vmatmul.mubr.bf16.gmra.mrb[16].mxu1 %v241_v57 }
  0xb1   : > { %519 = vmatprep.mubr.bf16.mxu0 %v3530_v0  ;;  %632 = vmatprep.mubr.bf16.mxu1 %v3530_v0 }
  0xb8   : > { %520 = vmatmul.mubr.bf16.gmra.mrb[20].mxu0 %v242_v60  ;;  %633 = vmatmul.mubr.bf16.gmra.mrb[20].mxu1 %v242_v60 }
  0xb9   : > { %529 = vmatprep.mubr.bf16.mxu0 %v3530_v0  ;;  %642 = vmatprep.mubr.bf16.mxu1 %v3530_v0 }
  0xc0   : > { %530 = vmatmul.mubr.bf16.gmra.mrb[24].mxu0 %v243_v63  ;;  %643 = vmatmul.mubr.bf16.gmra.mrb[24].mxu1 %v243_v63 }
  0xc1   : > { %539 = vmatprep.mubr.bf16.mxu0 %v3530_v0  ;;  %652 = vmatprep.mubr.bf16.mxu1 %v3530_v0  ;;  %v3093_v0 = vld [vmem:[#allocation7 + $0x20] sm:$0xff]  }
  0xc2   : > { %2832 = vmatpush3.bf16.msra.mxu0 %v3093_v0 }
  0xc3   : > { %2833 = vmatprep.subr.bf16.mxu0 %v3095_v21 }
  0xc6   : > { %2834 = vmatpush3.bf16.msra.mxu0 %v3097_v55 }
  0xc8   : > { %540 = vmatmul.mubr.bf16.gmra.mrb[28].mxu0 %v244_v3  ;;  %653 = vmatmul.mubr.bf16.gmra.mrb[28].mxu1 %v244_v3 }
 0x163   : > { %v471_v13 = vpop.f32.mrb[0].mxu0  ;;  %v584_v14 = vpop.f32.mrb[0].mxu1 }
 0x164   : > { %v663_v15 = vand.u32 2147483647, %v471_v13  ;;  %v1495_v16 = vmul.f32 -0.5, %v471_v13  ;;  %v665_v17 = vand.u32 2147483647, %v584_v14  ;;  %v1497_v18 = vmul.f32 -0.5, %v584_v14 }
 0x165   : > { %v473_v19 = vpop.f32.mrb[1].mxu0  ;;  %v586_v20 = vpop.f32.mrb[1].mxu1  ;;  %v1815_v27 = vmul.f32 0.5, %v471_v13  ;;  %v1817_v39 = vmul.f32 0.5, %v584_v14 }
 0x166   : > { %v727_v23 = vmul.f32 0.23164189, %v663_v15  ;;  %v1559_v24 = vmul.f32 %v1495_v16, %v471_v13  ;;  %v729_v25 = vmul.f32 0.23164189, %v665_v17  ;;  %v475_v26 = vpop.f32.mrb[2].mxu0  ;;  %v1561_v28 = vmul.f32 %v1497_v18, %v584_v14  ;;  %v3774_v31 = vpop.f32.mrb[2].mxu1 }
 0x167   : > { %v664_v29 = vand.u32 2147483647, %v473_v19  ;;  %v1496_v30 = vmul.f32 -0.5, %v473_v19  ;;  %v3776_v32 = vpop.f32.mrb[3].mxu0  ;;  %v3778_v34 = vmul.f32 0.5, %v663_v15  ;;  %v3780_v36 = vmul.f32 0.5, %v665_v17 }
 0x168   : > { %v791_v33 = vadd.f32 1.0, %v727_v23  ;;  %v793_v35 = vadd.f32 1.0, %v729_v25  ;;  %v3782_v37 = vpop.f32.mrb[3].mxu1  ;;  %v1623_v38 = vmul.f32 1.442695, %v1559_v24  ;;  %v1498_v47 = vmul.f32 -0.5, %v586_v20 }
 0x169   : > { %v728_v40 = vmul.f32 0.23164189, %v664_v29  ;;  %v1560_v41 = vmul.f32 %v1496_v30, %v473_v19  ;;  %v1627_v42 = vmul.f32 1.442695, %v1561_v28  ;;  %v3784_v43 = vmul.f32 0.5, %v664_v29 }
 0x16a   : > { %3107 = vrcp.f32 %v791_v33  ;;  %v666_v44 = vand.u32 2147483647, %v586_v20  ;;  %v3791_v50 = vadd.f32 %v1815_v27, %v3778_v34  ;;  %v3794_v51 = vadd.f32 %v1817_v39, %v3780_v36 }
 0x16b   : > { %v792_v45 = vadd.f32 1.0, %v728_v40  ;;  %v1625_v46 = vmul.f32 1.442695, %v1560_v41  ;;  %v3786_v48 = vpop.f32.mrb[4].mxu0  ;;  %v3788_v49 = vpop.f32.mrb[4].mxu1  ;;  %3109 = vrcp.f32 %v793_v35  ;;  %v1816_v56 = vmul.f32 0.5, %v473_v19 }
 0x16c   : > { %v730_v52 = vmul.f32 0.23164189, %v666_v44  ;;  %v3796_v53 = vpop.f32.mrb[5].mxu0  ;;  %v3798_v54 = vpop.f32.mrb[5].mxu1  ;;  %3111 = vpow2.f32 %v1623_v38  ;;  %v1562_v57 = vmul.f32 %v1498_v47, %v586_v20  ;;  %v667_v58 = vand.u32 2147483647, %v475_v26 }
 0x16d   : > { %v3800_v59 = vpop.f32.mrb[6].mxu0  ;;  %v3802_v60 = vpop.f32.mrb[6].mxu1  ;;  %3113 = vrcp.f32 %v792_v45  ;;  %v3804_v63 = vmul.f32 0.5, %v666_v44  ;;  %v1499_v1 = vmul.f32 -0.5, %v475_v26  ;;  %v3811_v4 = vadd.f32 %v1816_v56, %v3784_v43 }
 0x16e   : > { %v794_v62 = vadd.f32 1.0, %v730_v52  ;;  %v3806_v2 = vpop.f32.mrb[7].mxu0  ;;  %v3808_v3 = vpop.f32.mrb[7].mxu1  ;;  %3115 = vpow2.f32 %v1627_v42  ;;  %v1818_v5 = vmul.f32 0.5, %v586_v20  ;;  %v731_v6 = vmul.f32 0.23164189, %v667_v58 }
 0x16f   : > { %5522 = vst [vmem:[#allocation12_spill] sm:$0xff] %v3811_v4  ;;  %v1629_v7 = vmul.f32 1.442695, %v1562_v57  ;;  %v1563_v8 = vmul.f32 %v1499_v1, %v475_v26  ;;  %v669_v9 = vand.u32 2147483647, %v3774_v31  ;;  %v3814_v11 = vmul.f32 0.5, %v667_v58 }
 0x170   : > { %3117 = vrcp.f32 %v794_v62  ;;  %v795_v10 = vadd.f32 1.0, %v731_v6  ;;  %v1819_v0 = vmul.f32 0.5, %v475_v26  ;;  %v1501_v12 = vmul.f32 -0.5, %v3774_v31 }
 0x171   : > { %3119 = vpow2.f32 %v1625_v46  ;;  %v3818_v13 = vadd.f32 %v1818_v5, %v3804_v63  ;;  %v1631_v14 = vmul.f32 1.442695, %v1563_v8  ;;  %v733_v15 = vmul.f32 0.23164189, %v669_v9 }
 0x172   : > { %3121 = vrcp.f32 %v795_v10  ;;  %v1565_v16 = vmul.f32 %v1501_v12, %v3774_v31  ;;  %v668_v17 = vand.u32 2147483647, %v3776_v32  ;;  %v1500_v18 = vmul.f32 -0.5, %v3776_v32 }
 0x173   : > { %5523 = vst [vmem:[#allocation13_spill] sm:$0xff] %v3818_v13  ;;  %v3823_v19 = vpop.f32.mrb[8].mxu0  ;;  %v3825_v20 = vpop.f32.mrb[8].mxu1  ;;  %3123 = vpow2.f32 %v1629_v7  ;;  %v797_v22 = vadd.f32 1.0, %v733_v15  ;;  %v3829_v23 = vmul.f32 0.5, %v669_v9  ;;  %v1821_v24 = vmul.f32 0.5, %v3774_v31 }
 0x174   : > { %v3827_v21 = vpop.eup %3107  ;;  %v3832_v25 = vpop.f32.mrb[9].mxu0  ;;  %v3838_v28 = vadd.f32 %v1819_v0, %v3814_v11  ;;  %v1635_v29 = vmul.f32 1.442695, %v1565_v16  ;;  %v732_v30 = vmul.f32 0.23164189, %v668_v17  ;;  %v1564_v35 = vmul.f32 %v1500_v18, %v3776_v32 }
 0x175   : > { %v3834_v26 = vpop.f32.mrb[9].mxu1  ;;  %v919_v27 = vmul.f32 1.0614054, %v3827_v21  ;;  %v3840_v33 = vpop.eup %3109  ;;  %3125 = vrcp.f32 %v797_v22  ;;  %v670_v38 = vand.u32 2147483647, %v3782_v37  ;;  %v1502_v31 = vmul.f32 -0.5, %v3782_v37 }
 0x176   : > { %v3845_v39 = vpop.f32.mrb[10].mxu0  ;;  %v3847_v40 = vpop.f32.mrb[10].mxu1  ;;  %v921_v44 = vmul.f32 1.0614054, %v3840_v33  ;;  %3127 = vpow2.f32 %v1631_v14  ;;  %v796_v45 = vadd.f32 1.0, %v732_v30  ;;  %v3857_v52 = vadd.f32 %v1821_v24, %v3829_v23 }
 0x177   : > { %v3849_v41 = vpop.eup %3111  ;;  %v983_v42 = vadd.f32 -1.4531521, %v919_v27  ;;  %v3852_v46 = vpop.f32.mrb[11].mxu0  ;;  %v3859_v55 = vmul.f32 0.5, %v668_v17  ;;  %v734_v56 = vmul.f32 0.23164189, %v670_v38  ;;  %v1566_v57 = vmul.f32 %v1502_v31, %v3782_v37 }
 0x178   : > { %v3854_v47 = vpop.eup %3113  ;;  %v3862_v58 = vpop.f32.mrb[11].mxu1  ;;  %v985_v1 = vadd.f32 -1.4531521, %v921_v44  ;;  %3129 = vrcp.f32 %v796_v45  ;;  %v1633_v7 = vmul.f32 1.442695, %v1564_v35  ;;  %v1820_v16 = vmul.f32 0.5, %v3776_v32 }
 0x179   : > { %v3864_v61 = vpop.eup %3115  ;;  %v1047_v62 = vmul.f32 %v3827_v21, %v983_v42  ;;  %v920_v5 = vmul.f32 1.0614054, %v3854_v47  ;;  %3131 = vpow2.f32 %v1635_v29  ;;  %v798_v8 = vadd.f32 1.0, %v734_v56 }
 0x17a   : > { %v3868_v6 = vpop.eup %3117  ;;  %v1637_v9 = vmul.f32 1.442695, %v1566_v57  ;;  %v1049_v0 = vmul.f32 %v3840_v33, %v985_v1  ;;  %v5502_v17 = vand.u32 2147483647, %v3786_v48  ;;  %v1503_v18 = vmul.f32 -0.5, %v3786_v48 }
 0x17b   : > { %v1111_v10 = vadd.f32 1.4214138, %v1047_v62  ;;  %v984_v12 = vadd.f32 -1.4531521, %v920_v5  ;;  %v922_v14 = vmul.f32 1.0614054, %v3868_v6  ;;  %v3872_v15 = vpop.eup %3119  ;;  %3133 = vrcp.f32 %v798_v8 }
 0x17c   : > { %5524 = vst [vmem:[#allocation14_spill] sm:$0xff] %v3872_v15  ;;  %v3877_v22 = vpop.f32.mrb[12].mxu0  ;;  %v3879_v24 = vpop.f32.mrb[12].mxu1  ;;  %v1113_v30 = vadd.f32 1.4214138, %v1049_v0  ;;  %3135 = vpow2.f32 %v1633_v7  ;;  %v3893_v56 = vadd.f32 %v1820_v16, %v3859_v55  ;;  %v3909_v13 = vmul.f32 0.5, %v670_v38 }
 0x17d   : > { %v3881_v27 = vpop.eup %3121  ;;  %v1175_v29 = vmul.f32 %v3827_v21, %v1111_v10  ;;  %v1048_v35 = vmul.f32 %v3854_v47, %v984_v12  ;;  %v986_v31 = vadd.f32 -1.4531521, %v922_v14  ;;  %v3885_v42 = vpop.f32.mrb[13].mxu0  ;;  %v735_v57 = vmul.f32 0.23164189, %v5502_v17 }
 0x17e   : > { %v3887_v32 = vpop.f32.mrb[13].mxu1  ;;  %v3889_v44 = vpop.eup %3123  ;;  %v923_v45 = vmul.f32 1.0614054, %v3881_v27  ;;  %5527 = vst [vmem:[#allocation17_spill] sm:$0xff] %v3893_v56  ;;  %v1177_v8 = vmul.f32 %v3840_v33, %v1113_v30  ;;  %v1822_v17 = vmul.f32 0.5, %v3782_v37 }
 0x17f   : > { %5525 = vst [vmem:[#allocation15_spill] sm:$0xff] %v3887_v32  ;;  %5526 = vst [vmem:[#allocation16_spill] sm:$0xff] %v3889_v44  ;;  %v3897_v62 = vpop.f32.mrb[14].mxu0  ;;  %v3899_v1 = vpop.f32.mrb[14].mxu1  ;;  %v1239_v5 = vadd.f32 -0.28449672, %v1175_v29  ;;  %v1050_v0 = vmul.f32 %v3868_v6, %v986_v31 }
 0x180   : > { %5528 = vst [vmem:[#allocation18_spill] sm:$0xff] %v3897_v62  ;;  %5529 = vst [vmem:[#allocation19_spill] sm:$0xff] %v3899_v1  ;;  %v1112_v10 = vadd.f32 1.4214138, %v1048_v35  ;;  %v3903_v12 = vpop.f32.mrb[15].mxu0  ;;  %v3905_v14 = vpop.f32.mrb[15].mxu1 }
 0x181   : > { %5530 = vst [vmem:[#allocation20_spill] sm:$0xff] %v3903_v12  ;;  %5531 = vst [vmem:[#allocation21_spill] sm:$0xff] %v3905_v14  ;;  %v3907_v7 = vpop.eup %3125  ;;  %v987_v16 = vadd.f32 -1.4531521, %v923_v45  ;;  %v799_v44 = vadd.f32 1.0, %v735_v57  ;;  %v1303_v29 = vmul.f32 %v3827_v21, %v1239_v5  ;;  %v1567_v45 = vmul.f32 %v1503_v18, %v3786_v48 }
 0x182   : > { %v3912_v56 = vpop.eup %3127  ;;  %v1241_v30 = vadd.f32 -0.28449672, %v1177_v8  ;;  %v1176_v35 = vmul.f32 %v3854_v47, %v1112_v10  ;;  %v1114_v31 = vadd.f32 1.4214138, %v1050_v0  ;;  %v925_v14 = vmul.f32 1.0614054, %v3907_v7 }
 0x183   : > { %v1051_v4 = vmul.f32 %v3881_v27, %v987_v16  ;;  %3137 = vrcp.f32 %v799_v44  ;;  %v3919_v38 = vpop.eup %3129  ;;  %v1367_v12 = vadd.f32 0.2548296, %v1303_v29  ;;  %v3932_v32 = vpop.f32.mrb[16].mxu0 }
 0x184   : > { %v1305_v37 = vmul.f32 %v3840_v33, %v1241_v30  ;;  %v1240_v57 = vadd.f32 -0.28449672, %v1176_v35  ;;  %v1178_v1 = vmul.f32 %v3868_v6, %v1114_v31  ;;  %v3923_v5 = vpop.eup %3131  ;;  %v989_v10 = vadd.f32 -1.4531521, %v925_v14 }
 0x185   : > { %v1115_v8 = vadd.f32 1.4214138, %v1051_v4  ;;  %v924_v0 = vmul.f32 1.0614054, %v3919_v38  ;;  %3139 = vpow2.f32 %v1637_v9  ;;  %v1431_v16 = vmul.f32 %v3827_v21, %v1367_v12  ;;  %v3928_v15 = vpop.eup %3133  ;;  %v3934_v4 = vpop.f32.mrb[16].mxu1 }
 0x186   : > { %v1369_v44 = vadd.f32 0.2548296, %v1305_v37  ;;  %v1304_v18 = vmul.f32 %v3854_v47, %v1240_v57  ;;  %v1242_v62 = vadd.f32 -0.28449672, %v1178_v1  ;;  %v1053_v30 = vmul.f32 %v3907_v7, %v989_v10  ;;  %v3939_v1 = vpop.eup %3135 }
 0x187   : > { %v1179_v29 = vmul.f32 %v3881_v27, %v1115_v8  ;;  %v988_v35 = vadd.f32 -1.4531521, %v924_v0  ;;  %v1639_v31 = vmul.f32 1.442695, %v1567_v45  ;;  %v1943_v9 = vmul.f32 %v3778_v34, %v1431_v16 }
 0x188   : > { %v1433_v21 = vmul.f32 %v3840_v33, %v1369_v44  ;;  %v1368_v12 = vadd.f32 0.2548296, %v1304_v18  ;;  %v1306_v14 = vmul.f32 %v3868_v6, %v1242_v62  ;;  %v1117_v57 = vadd.f32 1.4214138, %v1053_v30 }
 0x189   : > { %v1243_v37 = vadd.f32 -0.28449672, %v1179_v29  ;;  %v1052_v8 = vmul.f32 %v3919_v38, %v988_v35  ;;  %v926_v10 = vmul.f32 1.0614054, %v3928_v15  ;;  %v3944_v45 = vmul.f32 %v3849_v41, %v1943_v9 }
 0x18a   : > { %v1945_v0 = vmul.f32 %v3780_v36, %v1433_v21  ;;  %v1432_v34 = vmul.f32 %v3854_v47, %v1368_v12  ;;  %v3949_v33 = vadd.f32 %v1822_v17, %v3909_v13  ;;  %v1181_v16 = vmul.f32 %v3907_v7, %v1117_v57  ;;  %v3099_v12 = vld [vmem:[#allocation7 + $0x70] sm:$0xff]  }
 0x18b   : > { %v1307_v62 = vmul.f32 %v3881_v27, %v1243_v37  ;;  %v1116_v44 = vadd.f32 1.4214138, %v1052_v8  ;;  %v990_v18 = vadd.f32 -1.4531521, %v926_v10  ;;  %v1370_v29 = vadd.f32 0.2548296, %v1306_v14  ;;  %2835 = vmatprep.subr.bf16.mxu0 %v3099_v12 }
 0x18c   : > { %5532 = vst [vmem:[#allocation22_spill] sm:$0xff] %v3949_v33  ;;  %3141 = vpow2.f32 %v1639_v31  ;;  %v5533_v30 = vand.u32 2147483647, %v3786_v48  ;;  %v3958_v41 = vmul.f32 0.5, %v3786_v48  ;;  %v1245_v17 = vadd.f32 -0.28449672, %v1181_v16 }
 0x18d   : > { %v3960_v36 = vpop.eup %3137  ;;  %v1371_v47 = vadd.f32 0.2548296, %v1307_v62  ;;  %v1180_v9 = vmul.f32 %v3919_v38, %v1116_v44  ;;  %v1054_v21 = vmul.f32 %v3928_v15, %v990_v18  ;;  %v3100_v37 = vld [vmem:[#allocation7 + $0xf0] sm:$0xff]   ;;  %v2071_v31 = vsub.f32 %v3791_v50, %v3944_v45  ;;  %v3973_v8 = vpop.f32.mrb[17].mxu0 }
 0x18e   : > { %v3955_v35 = vmul.f32 0.5, %v5533_v30  ;;  %v3967_v14 = vmul.f32 %v3864_v61, %v1945_v0  ;;  %v3970_v57 = vmul.f32 %v3784_v43, %v1432_v34  ;;  %v927_v48 = vmul.f32 1.0614054, %v3960_v36  ;;  %2899 = vmatprep.subr.bf16.mxu1 %v3100_v37  ;;  %v3102_v33 = vld [vmem:[#allocation7 + $0xb0] sm:$0xff]  }
 0x18f   : > { %v3975_v10 = vpop.eup %3139  ;;  %v1435_v62 = vmul.f32 %v3881_v27, %v1371_v47  ;;  %v1309_v16 = vmul.f32 %v3907_v7, %v1245_v17  ;;  %v1244_v44 = vadd.f32 -0.28449672, %v1180_v9  ;;  %v1118_v18 = vadd.f32 1.4214138, %v1054_v21  ;;  %v3985_v47 = vpop.f32.mrb[17].mxu1  ;;  %2900 = vmatpush3.bf16.msra.mxu1 %v3102_v33 }
 0x190   : > { %5534 = vst [vmem:[#allocation23_spill] sm:$0xff] %v3975_v10  ;;  %v1434_v50 = vmul.f32 %v3868_v6, %v1370_v29  ;;  %v991_v61 = vadd.f32 -1.4531521, %v927_v48  ;;  %v673_v43 = vand.u32 2147483647, %v3788_v49  ;;  %v1505_v45 = vmul.f32 -0.5, %v3788_v49 }
 0x191   : > { %v1947_v0 = vmul.f32 %v3814_v11, %v1435_v62  ;;  %v1373_v34 = vadd.f32 0.2548296, %v1309_v16  ;;  %v1308_v30 = vmul.f32 %v3919_v38, %v1244_v44  ;;  %v1182_v27 = vmul.f32 %v3928_v15, %v1118_v18  ;;  %v3101_v18 = vld [vmem:[#allocation7 + $0x30] sm:$0xff]  }
 0x192   : > { %v2073_v17 = vsub.f32 %v3794_v51, %v3967_v14  ;;  %v1055_v9 = vmul.f32 %v3960_v36, %v991_v61  ;;  %v737_v6 = vmul.f32 0.23164189, %v673_v43  ;;  %v1569_v29 = vmul.f32 %v1505_v45, %v3788_v49  ;;  %2836 = vmatpush3.bf16.msra.mxu0 %v3101_v18 }
 0x193   : > { %v2011_v21 = vmul.f32 %v3912_v56, %v1947_v0  ;;  %v1437_v12 = vmul.f32 %v3907_v7, %v1373_v34  ;;  %v1372_v11 = vadd.f32 0.2548296, %v1308_v30  ;;  %v1246_v37 = vadd.f32 -0.28449672, %v1182_v27 }
 0x194   : > { %v1119_v48 = vadd.f32 1.4214138, %v1055_v9  ;;  %v801_v62 = vadd.f32 1.0, %v737_v6  ;;  %v3993_v16 = vmul.f32 0.5, %v673_v43  ;;  %v1825_v44 = vmul.f32 0.5, %v3788_v49 }
 0x195   : > { %v2075_v51 = vsub.f32 %v3838_v28, %v2011_v21  ;;  %v1949_v14 = vmul.f32 %v3829_v23, %v1437_v12  ;;  %v1310_v61 = vmul.f32 %v3928_v15, %v1246_v37  ;;  %v1643_v45 = vmul.f32 1.442695, %v1569_v29  ;;  %v4012_v29 = vpop.f32.mrb[18].mxu0 }
 0x196   : > { %v3999_v56 = vpop.eup %3141  ;;  %v1183_v7 = vmul.f32 %v3960_v36, %v1119_v48  ;;  %3143 = vrcp.f32 %v801_v62  ;;  %v672_v0 = vand.u32 2147483647, %v3796_v53  ;;  %v1504_v43 = vmul.f32 -0.5, %v3796_v53  ;;  %v4033_v62 = vpop.f32.mrb[18].mxu1 }
 0x197   : > { %5535 = vst [vmem:[#allocation24_spill] sm:$0xff] %v3999_v56  ;;  %v4004_v49 = vpack.c.bf16 %v2075_v51, %v2071_v31  ;;  %v2013_v28 = vmul.f32 %v3923_v5, %v1949_v14  ;;  %v1436_v23 = vmul.f32 %v3919_v38, %v1372_v11  ;;  %v1374_v34 = vadd.f32 0.2548296, %v1310_v61 }
 0x198   : > { %v4009_v30 = vmul.f32 %v3804_v63, %v1434_v50  ;;  %v1247_v27 = vadd.f32 -0.28449672, %v1183_v7  ;;  %v736_v9 = vmul.f32 0.23164189, %v672_v0  ;;  %v1568_v6 = vmul.f32 %v1504_v43, %v3796_v53 }
 0x199   : > { %v2077_v21 = vsub.f32 %v3857_v52, %v2013_v28  ;;  %v1438_v31 = vmul.f32 %v3928_v15, %v1374_v34  ;;  %v4018_v5 = vadd.f32 %v3958_v41, %v3955_v35  ;;  %v4021_v38 = vadd.f32 %v1825_v44, %v3993_v16 }
 0x19a   : > { %v1311_v63 = vmul.f32 %v3960_v36, %v1247_v27  ;;  %v800_v33 = vadd.f32 1.0, %v736_v9  ;;  %v1641_v50 = vmul.f32 1.442695, %v1568_v6  ;;  %v674_v12 = vand.u32 2147483647, %v3798_v54 }
 0x19b   : > { %5536 = vst [vmem:[#allocation25_spill] sm:$0xff] %v4018_v5  ;;  %5537 = vst [vmem:[#allocation26_spill] sm:$0xff] %v4021_v38  ;;  %v4025_v11 = vpack.c.bf16 %v2077_v21, %v2073_v17  ;;  %v4028_v37 = vmul.f32 %v3859_v55, %v1436_v23  ;;  %3145 = vpow2.f32 %v1643_v45  ;;  %v1506_v52 = vmul.f32 -0.5, %v3798_v54 }
 0x19c   : > { %v1375_v15 = vadd.f32 0.2548296, %v1311_v63  ;;  %3147 = vrcp.f32 %v800_v33  ;;  %v4031_v41 = vmul.f32 0.5, %v672_v0  ;;  %v738_v48 = vmul.f32 0.23164189, %v674_v12 }
 0x19d   : > { %5538 = vst [vmem:[#allocation27_spill] sm:$0xff] %v4025_v11  ;;  %v1824_v44 = vmul.f32 0.5, %v3796_v53  ;;  %v1570_v18 = vmul.f32 %v1506_v52, %v3798_v54  ;;  %v4037_v51 = vmul.f32 0.5, %v674_v12  ;;  %v675_v17 = vand.u32 2147483647, %v3800_v59 }
 0x19e   : > { %v4041_v55 = vmul.f32 %v3909_v13, %v1438_v31  ;;  %3149 = vpow2.f32 %v1641_v50  ;;  %v802_v14 = vadd.f32 1.0, %v738_v48  ;;  %v1507_v61 = vmul.f32 -0.5, %v3800_v59 }
 0x19f   : > { %v1439_v45 = vmul.f32 %v3960_v36, %v1375_v15  ;;  %v1645_v7 = vmul.f32 1.442695, %v1570_v18  ;;  %v1826_v0 = vmul.f32 0.5, %v3798_v54  ;;  %v739_v43 = vmul.f32 0.23164189, %v675_v17 }
 0x1a0   : > { %v4046_v53 = vpop.eup %3143  ;;  %v4049_v28 = vadd.f32 %v1824_v44, %v4031_v41  ;;  %3151 = vrcp.f32 %v802_v14  ;;  %v1571_v23 = vmul.f32 %v1507_v61, %v3800_v59  ;;  %v677_v13 = vand.u32 2147483647, %v3802_v60 }
 0x1a1   : > { %v929_v34 = vmul.f32 1.0614054, %v4046_v53  ;;  %v4055_v27 = vadd.f32 %v1826_v0, %v4037_v51  ;;  %v803_v36 = vadd.f32 1.0, %v739_v43  ;;  %v1827_v9 = vmul.f32 0.5, %v3800_v59  ;;  %v4067_v59 = vpop.f32.mrb[19].mxu0 }
 0x1a2   : > { %5539 = vst [vmem:[#allocation28_spill] sm:$0xff] %v4049_v28  ;;  %3153 = vpow2.f32 %v1645_v7  ;;  %v4058_v54 = vmul.f32 0.5, %v675_v17  ;;  %v741_v6 = vmul.f32 0.23164189, %v677_v13  ;;  %v1509_v21 = vmul.f32 -0.5, %v3802_v60 }
 0x1a3   : > { %5540 = vst [vmem:[#allocation29_spill] sm:$0xff] %v4055_v27  ;;  %v4062_v31 = vmul.f32 %v3955_v35, %v1439_v45  ;;  %v993_v63 = vadd.f32 -1.4531521, %v929_v34  ;;  %3155 = vrcp.f32 %v803_v36  ;;  %v676_v33 = vand.u32 2147483647, %v3806_v2 }
 0x1a4   : > { %v1647_v50 = vmul.f32 1.442695, %v1571_v23  ;;  %v805_v12 = vadd.f32 1.0, %v741_v6  ;;  %v1573_v52 = vmul.f32 %v1509_v21, %v3802_v60  ;;  %v1508_v15 = vmul.f32 -0.5, %v3806_v2  ;;  %v4089_v21 = vpop.f32.mrb[19].mxu1 }
 0x1a5   : > { %5541 = vst [vmem:[#allocation30_spill] sm:$0xff] %v4062_v31  ;;  %v4069_v48 = vpop.eup %3145  ;;  %v1057_v44 = vmul.f32 %v4046_v53, %v993_v63  ;;  %v4072_v18 = vmul.f32 0.5, %v677_v13  ;;  %v1829_v35 = vmul.f32 0.5, %v3802_v60  ;;  %v740_v17 = vmul.f32 0.23164189, %v676_v33 }
 0x1a6   : > { %5542 = vst [vmem:[#allocation31_spill] sm:$0xff] %v4069_v48  ;;  %v4075_v14 = vpop.eup %3147  ;;  %3157 = vrcp.f32 %v805_v12  ;;  %v1651_v61 = vmul.f32 1.442695, %v1573_v52  ;;  %v1572_v45 = vmul.f32 %v1508_v15, %v3806_v2  ;;  %v4078_v7 = vmul.f32 0.5, %v676_v33 }
 0x1a7   : > { %v1121_v0 = vadd.f32 1.4214138, %v1057_v44  ;;  %v928_v43 = vmul.f32 1.0614054, %v4075_v14  ;;  %v804_v23 = vadd.f32 1.0, %v740_v17  ;;  %v1510_v34 = vmul.f32 -0.5, %v3808_v3 }
 0x1a8   : > { %v4082_v36 = vpop.eup %3149  ;;  %3159 = vpow2.f32 %v1647_v50  ;;  %v4085_v60 = vadd.f32 %v1827_v9, %v4058_v54  ;;  %v1828_v13 = vmul.f32 0.5, %v3806_v2  ;;  %v678_v6 = vand.u32 2147483647, %v3808_v3 }
 0x1a9   : > { %5543 = vst [vmem:[#allocation32_spill] sm:$0xff] %v4082_v36  ;;  %v1185_v63 = vmul.f32 %v4046_v53, %v1121_v0  ;;  %v992_v33 = vadd.f32 -1.4531521, %v928_v43  ;;  %v4093_v12 = vadd.f32 %v1829_v35, %v4072_v18  ;;  %3161 = vrcp.f32 %v804_v23 }
 0x1aa   : > { %5544 = vst [vmem:[#allocation33_spill] sm:$0xff] %v4085_v60  ;;  %v4095_v52 = vpop.eup %3151  ;;  %3163 = vpow2.f32 %v1651_v61  ;;  %v1649_v50 = vmul.f32 1.442695, %v1572_v45  ;;  %v4098_v9 = vadd.f32 %v1828_v13, %v4078_v7  ;;  %v742_v15 = vmul.f32 0.23164189, %v678_v6 }
 0x1ab   : > { %5545 = vst [vmem:[#allocation34_spill] sm:$0xff] %v4093_v12  ;;  %v1249_v2 = vadd.f32 -0.28449672, %v1185_v63  ;;  %v1056_v44 = vmul.f32 %v4075_v14, %v992_v33  ;;  %v930_v17 = vmul.f32 1.0614054, %v4095_v52  ;;  %v1574_v0 = vmul.f32 %v1510_v34, %v3808_v3 }
 0x1ac   : > { %5546 = vst [vmem:[#allocation35_spill] sm:$0xff] %v4098_v9  ;;  %v4103_v43 = vpop.eup %3153  ;;  %v806_v35 = vadd.f32 1.0, %v742_v15  ;;  %v4105_v12 = vmul.f32 0.5, %v678_v6  ;;  %v679_v23 = vand.u32 2147483647, %v3823_v19  ;;  %v1511_v61 = vmul.f32 -0.5, %v3823_v19 }
 0x1ad   : > { %5547 = vst [vmem:[#allocation36_spill] sm:$0xff] %v4103_v43  ;;  %v4109_v45 = vpop.eup %3155  ;;  %v1313_v13 = vmul.f32 %v4046_v53, %v1249_v2  ;;  %v1120_v63 = vadd.f32 1.4214138, %v1056_v44  ;;  %v994_v38 = vadd.f32 -1.4531521, %v930_v17  ;;  %v1830_v33 = vmul.f32 0.5, %v3808_v3 }
 0x1ae   : > { %v931_v48 = vmul.f32 1.0614054, %v4109_v45  ;;  %3165 = vrcp.f32 %v806_v35  ;;  %v743_v34 = vmul.f32 0.23164189, %v679_v23  ;;  %v1575_v15 = vmul.f32 %v1511_v61, %v3823_v19 }
 0x1af   : > { %v1377_v6 = vadd.f32 0.2548296, %v1313_v13  ;;  %v1184_v60 = vmul.f32 %v4075_v14, %v1120_v63  ;;  %v1058_v5 = vmul.f32 %v4095_v52, %v994_v38  ;;  %v1653_v56 = vmul.f32 1.442695, %v1574_v0  ;;  %v4127_v13 = vpop.f32.mrb[20].mxu0 }
 0x1b0   : > { %v4117_v31 = vpop.eup %3157  ;;  %v995_v27 = vadd.f32 -1.4531521, %v931_v48  ;;  %v807_v2 = vadd.f32 1.0, %v743_v34  ;;  %v1655_v44 = vmul.f32 1.442695, %v1575_v15  ;;  %v4119_v17 = vmul.f32 0.5, %v679_v23 }
 0x1b1   : > { %v1248_v3 = vadd.f32 -0.28449672, %v1184_v60  ;;  %v1122_v43 = vadd.f32 1.4214138, %v1058_v5  ;;  %v933_v35 = vmul.f32 1.0614054, %v4117_v31  ;;  %3167 = vpow2.f32 %v1649_v50 }
 0x1b2   : > { %v4122_v9 = vpop.eup %3159  ;;  %v1059_v61 = vmul.f32 %v4109_v45, %v995_v27  ;;  %3169 = vrcp.f32 %v807_v2  ;;  %v1831_v38 = vmul.f32 0.5, %v3823_v19  ;;  %v681_v0 = vand.u32 2147483647, %v3825_v20  ;;  %v4129_v48 = vpop.f32.mrb[20].mxu1 }
 0x1b3   : > { %5548 = vst [vmem:[#allocation37_spill] sm:$0xff] %v4122_v9  ;;  %v4131_v23 = vpop.eup %3161  ;;  %v1441_v5 = vmul.f32 %v4046_v53, %v1377_v6  ;;  %v1312_v60 = vmul.f32 %v4075_v14, %v1248_v3  ;;  %v1186_v50 = vmul.f32 %v4095_v52, %v1122_v43  ;;  %v997_v63 = vadd.f32 -1.4531521, %v933_v35  ;;  %v3103_v6 = vld [vmem:[#allocation7 + $0x78] sm:$0xff]  }
 0x1b4   : > { %v4136_v34 = vpop.eup %3163  ;;  %v1123_v27 = vadd.f32 1.4214138, %v1059_v61  ;;  %v932_v19 = vmul.f32 1.0614054, %v4131_v23  ;;  %v4140_v15 = vadd.f32 %v1830_v33, %v4105_v12  ;;  %v745_v2 = vmul.f32 0.23164189, %v681_v0  ;;  %2837 = vmatprep.subr.bf16.mxu0 %v3103_v6 }
 0x1b5   : > { %5549 = vst [vmem:[#allocation38_spill] sm:$0xff] %v4136_v34  ;;  %v1376_v9 = vadd.f32 0.2548296, %v1312_v60  ;;  %v1250_v28 = vadd.f32 -0.28449672, %v1186_v50  ;;  %v1061_v36 = vmul.f32 %v4117_v31, %v997_v63  ;;  %v1513_v53 = vmul.f32 -0.5, %v3825_v20 }
 0x1b6   : > { %5550 = vst [vmem:[#allocation39_spill] sm:$0xff] %v4140_v15  ;;  %v1187_v3 = vmul.f32 %v4109_v45, %v1123_v27  ;;  %v996_v43 = vadd.f32 -1.4531521, %v932_v19  ;;  %3171 = vpow2.f32 %v1653_v56  ;;  %v809_v35 = vadd.f32 1.0, %v745_v2  ;;  %v3104_v34 = vld [vmem:[#allocation7 + $0xf8] sm:$0xff]   ;;  %v4145_v61 = vpop.f32.mrb[21].mxu0 }
 0x1b7   : > { %v4148_v11 = vmul.f32 %v3993_v16, %v1441_v5  ;;  %v1314_v33 = vmul.f32 %v4095_v52, %v1250_v28  ;;  %v1125_v60 = vadd.f32 1.4214138, %v1061_v36  ;;  %v4152_v50 = vadd.f32 %v1831_v38, %v4119_v17  ;;  %2901 = vmatprep.subr.bf16.mxu1 %v3104_v34  ;;  %v3105_v19 = vld [vmem:[#allocation7 + $0x38] sm:$0xff]  }
 0x1b8   : > { %v4154_v63 = vpop.eup %3165  ;;  %v1251_v15 = vadd.f32 -0.28449672, %v1187_v3  ;;  %v1060_v27 = vmul.f32 %v4131_v23, %v996_v43  ;;  %3173 = vrcp.f32 %v809_v35  ;;  %v1577_v56 = vmul.f32 %v1513_v53, %v3825_v20  ;;  %v3106_v2 = vld [vmem:[#allocation7 + $0xb8] sm:$0xff]   ;;  %2838 = vmatpush3.bf16.msra.mxu0 %v3105_v19 }
 0x1b9   : > { %5551 = vst [vmem:[#allocation40_spill] sm:$0xff] %v4148_v11  ;;  %5552 = vst [vmem:[#allocation41_spill] sm:$0xff] %v4152_v50  ;;  %v1440_v16 = vmul.f32 %v4075_v14, %v1376_v9  ;;  %v1189_v28 = vmul.f32 %v4117_v31, %v1125_v60  ;;  %v934_v36 = vmul.f32 1.0614054, %v4154_v63  ;;  %v4161_v38 = vmul.f32 0.5, %v681_v0  ;;  %2902 = vmatpush3.bf16.msra.mxu1 %v3106_v2 }
 0x1ba   : > { %v1378_v5 = vadd.f32 0.2548296, %v1314_v33  ;;  %v1315_v6 = vmul.f32 %v4109_v45, %v1251_v15  ;;  %v1124_v3 = vadd.f32 1.4214138, %v1060_v27  ;;  %v1833_v43 = vmul.f32 0.5, %v3825_v20  ;;  %v4172_v27 = vpop.f32.mrb[21].mxu1 }
 0x1bb   : > { %v4165_v53 = vpop.eup %3167  ;;  %v1253_v34 = vadd.f32 -0.28449672, %v1189_v28  ;;  %v998_v35 = vadd.f32 -1.4531521, %v934_v36  ;;  %3175 = vpow2.f32 %v1655_v44  ;;  %v680_v14 = vand.u32 2147483647, %v3832_v25 }
 0x1bc   : > { %5553 = vst [vmem:[#allocation42_spill] sm:$0xff] %v4165_v53  ;;  %v4168_v9 = vpop.eup %3169  ;;  %v1379_v60 = vadd.f32 0.2548296, %v1315_v6  ;;  %v1188_v0 = vmul.f32 %v4131_v23, %v1124_v3  ;;  %v1659_v33 = vmul.f32 1.442695, %v1577_v56  ;;  %v1512_v15 = vmul.f32 -0.5, %v3832_v25 }
 0x1bd   : > { %v4175_v20 = vmul.f32 %v4031_v41, %v1440_v16  ;;  %v1317_v19 = vmul.f32 %v4117_v31, %v1253_v34  ;;  %v1062_v2 = vmul.f32 %v4154_v63, %v998_v35  ;;  %v935_v44 = vmul.f32 1.0614054, %v4168_v9 }
 0x1be   : > { %v1442_v28 = vmul.f32 %v4095_v52, %v1378_v5  ;;  %v1252_v36 = vadd.f32 -0.28449672, %v1188_v0  ;;  %v744_v6 = vmul.f32 0.23164189, %v680_v14  ;;  %v1576_v3 = vmul.f32 %v1512_v15, %v3832_v25 }
 0x1bf   : > { %v1443_v56 = vmul.f32 %v4109_v45, %v1379_v60  ;;  %v1381_v50 = vadd.f32 0.2548296, %v1317_v19  ;;  %v1126_v11 = vadd.f32 1.4214138, %v1062_v2  ;;  %v999_v53 = vadd.f32 -1.4531521, %v935_v44 }
 0x1c0   : > { %v4183_v10 = vpop.eup %3171  ;;  %v1316_v41 = vmul.f32 %v4131_v23, %v1252_v36  ;;  %3177 = vpow2.f32 %v1659_v33  ;;  %v4187_v16 = vadd.f32 %v1833_v43, %v4161_v38  ;;  %v808_v34 = vadd.f32 1.0, %v744_v6  ;;  %v4198_v19 = vpop.f32.mrb[22].mxu0 }
 0x1c1   : > { %5554 = vst [vmem:[#allocation43_spill] sm:$0xff] %v4183_v10  ;;  %v1445_v52 = vmul.f32 %v4117_v31, %v1381_v50  ;;  %v1190_v5 = vmul.f32 %v4154_v63, %v1126_v11  ;;  %v1063_v35 = vmul.f32 %v4168_v9, %v999_v53  ;;  %v1657_v0 = vmul.f32 1.442695, %v1576_v3 }
 0x1c2   : > { %5555 = vst [vmem:[#allocation44_spill] sm:$0xff] %v4187_v16  ;;  %v4192_v45 = vpop.eup %3173  ;;  %v4195_v60 = vmul.f32 %v4037_v51, %v1442_v28  ;;  %v1380_v15 = vadd.f32 0.2548296, %v1316_v41  ;;  %3179 = vrcp.f32 %v808_v34  ;;  %v682_v33 = vand.u32 2147483647, %v3834_v26 }
 0x1c3   : > { %v4201_v43 = vmul.f32 %v4058_v54, %v1443_v56  ;;  %v1254_v31 = vadd.f32 -0.28449672, %v1190_v5  ;;  %v1127_v50 = vadd.f32 1.4214138, %v1063_v35  ;;  %v937_v11 = vmul.f32 1.0614054, %v4192_v45 }
 0x1c4   : > { %v4205_v53 = vmul.f32 %v4072_v18, %v1445_v52  ;;  %v4207_v2 = vmul.f32 0.5, %v680_v14  ;;  %v1832_v51 = vmul.f32 0.5, %v3832_v25  ;;  %v746_v44 = vmul.f32 0.23164189, %v682_v33  ;;  %v4220_v5 = vpop.f32.mrb[22].mxu1 }
 0x1c5   : > { %5556 = vst [vmem:[#allocation45_spill] sm:$0xff] %v4201_v43  ;;  %v4210_v28 = vpop.eup %3175  ;;  %v1318_v36 = vmul.f32 %v4154_v63, %v1254_v31  ;;  %v1191_v6 = vmul.f32 %v4168_v9, %v1127_v50  ;;  %v1001_v54 = vadd.f32 -1.4531521, %v937_v11  ;;  %v1514_v3 = vmul.f32 -0.5, %v3834_v26 }
 0x1c6   : > { %5557 = vst [vmem:[#allocation46_spill] sm:$0xff] %v4205_v53  ;;  %5558 = vst [vmem:[#allocation47_spill] sm:$0xff] %v4210_v28  ;;  %v1444_v56 = vmul.f32 %v4131_v23, %v1380_v15  ;;  %3181 = vpow2.f32 %v1657_v0  ;;  %v810_v41 = vadd.f32 1.0, %v746_v44  ;;  %v4216_v18 = vmul.f32 0.5, %v682_v33 }
 0x1c7   : > { %v1382_v14 = vadd.f32 0.2548296, %v1318_v36  ;;  %v1255_v34 = vadd.f32 -0.28449672, %v1191_v6  ;;  %v1065_v25 = vmul.f32 %v4192_v45, %v1001_v54  ;;  %v1578_v52 = vmul.f32 %v1514_v3, %v3834_v26 }
 0x1c8   : > { %v4223_v35 = vadd.f32 %v1832_v51, %v4207_v2  ;;  %3183 = vrcp.f32 %v810_v41  ;;  %v683_v31 = vand.u32 2147483647, %v3845_v39  ;;  %v1515_v23 = vmul.f32 -0.5, %v3845_v39 }
 0x1c9   : > { %v1319_v0 = vmul.f32 %v4168_v9, %v1255_v34  ;;  %v1129_v15 = vadd.f32 1.4214138, %v1065_v25  ;;  %v1661_v33 = vmul.f32 1.442695, %v1578_v52  ;;  %v1834_v50 = vmul.f32 0.5, %v3834_v26 }
 0x1ca   : > { %5559 = vst [vmem:[#allocation48_spill] sm:$0xff] %v4223_v35  ;;  %v4229_v11 = vpop.eup %3177  ;;  %v4232_v44 = vmul.f32 %v4078_v7, %v1444_v56  ;;  %v1446_v36 = vmul.f32 %v4154_v63, %v1382_v14  ;;  %v747_v51 = vmul.f32 0.23164189, %v683_v31  ;;  %v1579_v6 = vmul.f32 %v1515_v23, %v3845_v39 }
 0x1cb   : > { %5560 = vst [vmem:[#allocation49_spill] sm:$0xff] %v4229_v11  ;;  %v1383_v54 = vadd.f32 0.2548296, %v1319_v0  ;;  %v1193_v3 = vmul.f32 %v4192_v45, %v1129_v15  ;;  %v4238_v41 = vadd.f32 %v1834_v50, %v4216_v18  ;;  %v4240_v34 = vmul.f32 0.5, %v683_v31  ;;  %v4252_v50 = vpop.f32.mrb[23].mxu0 }
 0x1cc   : > { %v4242_v25 = vpop.eup %3179  ;;  %3185 = vpow2.f32 %v1661_v33  ;;  %v811_v26 = vadd.f32 1.0, %v747_v51  ;;  %v1835_v7 = vmul.f32 0.5, %v3845_v39  ;;  %v685_v56 = vand.u32 2147483647, %v3847_v40 }
 0x1cd   : > { %5561 = vst [vmem:[#allocation50_spill] sm:$0xff] %v4238_v41  ;;  %v1447_v63 = vmul.f32 %v4168_v9, %v1383_v54  ;;  %v1257_v14 = vadd.f32 -0.28449672, %v1193_v3  ;;  %v936_v52 = vmul.f32 1.0614054, %v4242_v25  ;;  %v1517_v23 = vmul.f32 -0.5, %v3847_v40 }
 0x1ce   : > { %v4250_v0 = vmul.f32 %v4105_v12, %v1446_v36  ;;  %3187 = vrcp.f32 %v811_v26  ;;  %v1663_v31 = vmul.f32 1.442695, %v1579_v6  ;;  %v749_v15 = vmul.f32 0.23164189, %v685_v56 }
 0x1cf   : > { %v1321_v33 = vmul.f32 %v4192_v45, %v1257_v14  ;;  %v1000_v39 = vadd.f32 -1.4531521, %v936_v52  ;;  %v4256_v51 = vadd.f32 %v1835_v7, %v4240_v34  ;;  %v4258_v9 = vmul.f32 0.5, %v685_v56 }
 0x1d0   : > { %5562 = vst [vmem:[#allocation51_spill] sm:$0xff] %v4250_v0  ;;  %v4260_v54 = vpop.eup %3181  ;;  %v813_v3 = vadd.f32 1.0, %v749_v15  ;;  %v1581_v16 = vmul.f32 %v1517_v23, %v3847_v40  ;;  %v1837_v12 = vmul.f32 0.5, %v3847_v40  ;;  %v684_v36 = vand.u32 2147483647, %v3852_v46 }
 0x1d1   : > { %5563 = vst [vmem:[#allocation52_spill] sm:$0xff] %v4256_v51  ;;  %5564 = vst [vmem:[#allocation53_spill] sm:$0xff] %v4260_v54  ;;  %v4266_v6 = vmul.f32 %v4119_v17, %v1447_v63  ;;  %v1385_v26 = vadd.f32 0.2548296, %v1321_v33  ;;  %v1064_v14 = vmul.f32 %v4242_v25, %v1000_v39  ;;  %v1516_v7 = vmul.f32 -0.5, %v3852_v46  ;;  %v4276_v17 = vpop.f32.mrb[23].mxu1 }
 0x1d2   : > { %v4270_v52 = vpop.eup %3183  ;;  %3189 = vrcp.f32 %v813_v3  ;;  %v1667_v56 = vmul.f32 1.442695, %v1581_v16  ;;  %v748_v11 = vmul.f32 0.23164189, %v684_v36  ;;  %v4272_v15 = vmul.f32 0.5, %v684_v36 }
 0x1d3   : > { %5565 = vst [vmem:[#allocation54_spill] sm:$0xff] %v4266_v6  ;;  %v1128_v23 = vadd.f32 1.4214138, %v1064_v14  ;;  %v938_v40 = vmul.f32 1.0614054, %v4270_v52  ;;  %3191 = vpow2.f32 %v1663_v31  ;;  %v1580_v51 = vmul.f32 %v1516_v7, %v3852_v46 }
 0x1d4   : > { %v4279_v63 = vadd.f32 %v1837_v12, %v4258_v9  ;;  %v812_v33 = vadd.f32 1.0, %v748_v11  ;;  %v1836_v39 = vmul.f32 0.5, %v3852_v46  ;;  %v686_v3 = vand.u32 2147483647, %v3862_v58 }
 0x1d5   : > { %v1449_v16 = vmul.f32 %v4192_v45, %v1385_v26  ;;  %v1192_v36 = vmul.f32 %v4242_v25, %v1128_v23  ;;  %v1002_v14 = vadd.f32 -1.4531521, %v938_v40  ;;  %3193 = vpow2.f32 %v1667_v56 }
 0x1d6   : > { %5566 = vst [vmem:[#allocation55_spill] sm:$0xff] %v4279_v63  ;;  %v4285_v28 = vpop.eup %3185  ;;  %3195 = vrcp.f32 %v812_v33  ;;  %v4288_v31 = vadd.f32 %v1836_v39, %v4272_v15  ;;  %v750_v7 = vmul.f32 0.23164189, %v686_v3  ;;  %v1518_v12 = vmul.f32 -0.5, %v3862_v58 }
 0x1d7   : > { %5567 = vst [vmem:[#allocation56_spill] sm:$0xff] %v4285_v28  ;;  %v1256_v11 = vadd.f32 -0.28449672, %v1192_v36  ;;  %v1066_v46 = vmul.f32 %v4270_v52, %v1002_v14  ;;  %v1665_v63 = vmul.f32 1.442695, %v1580_v51  ;;  %v4292_v6 = vmul.f32 0.5, %v686_v3 }
 0x1d8   : > { %5568 = vst [vmem:[#allocation57_spill] sm:$0xff] %v4288_v31  ;;  %v4294_v45 = vpop.eup %3187  ;;  %v814_v26 = vadd.f32 1.0, %v750_v7  ;;  %v1582_v56 = vmul.f32 %v1518_v12, %v3862_v58  ;;  %v687_v23 = vand.u32 2147483647, %v3877_v22  ;;  %v1519_v40 = vmul.f32 -0.5, %v3877_v22 }
 0x1d9   : > { %v4300_v33 = vmul.f32 %v4161_v38, %v1449_v16  ;;  %v1320_v39 = vmul.f32 %v4242_v25, %v1256_v11  ;;  %v1130_v36 = vadd.f32 1.4214138, %v1066_v46  ;;  %v939_v14 = vmul.f32 1.0614054, %v4294_v45 }
 0x1da   : > { %3197 = vrcp.f32 %v814_v26  ;;  %v1669_v51 = vmul.f32 1.442695, %v1582_v56  ;;  %v1838_v3 = vmul.f32 0.5, %v3862_v58  ;;  %v751_v41 = vmul.f32 0.23164189, %v687_v23 }
 0x1db   : > { %5569 = vst [vmem:[#allocation58_spill] sm:$0xff] %v4300_v33  ;;  %v1384_v7 = vadd.f32 0.2548296, %v1320_v39  ;;  %v1194_v12 = vmul.f32 %v4270_v52, %v1130_v36  ;;  %v1003_v31 = vadd.f32 -1.4531521, %v939_v14  ;;  %3199 = vpow2.f32 %v1665_v63 }
 0x1dc   : > { %v4306_v28 = vpop.eup %3189  ;;  %v4309_v38 = vadd.f32 %v1838_v3, %v4292_v6  ;;  %v815_v16 = vadd.f32 1.0, %v751_v41  ;;  %v1583_v11 = vmul.f32 %v1519_v40, %v3877_v22  ;;  %v4312_v46 = vmul.f32 0.5, %v687_v23 }
 0x1dd   : > { %v4314_v26 = vpop.eup %3191  ;;  %v1258_v56 = vadd.f32 -0.28449672, %v1194_v12  ;;  %v1067_v58 = vmul.f32 %v4294_v45, %v1003_v31  ;;  %v941_v39 = vmul.f32 1.0614054, %v4306_v28  ;;  %3201 = vpow2.f32 %v1669_v51 }
 0x1de   : > { %5570 = vst [vmem:[#allocation59_spill] sm:$0xff] %v4309_v38  ;;  %5571 = vst [vmem:[#allocation60_spill] sm:$0xff] %v4314_v26  ;;  %3203 = vrcp.f32 %v815_v16  ;;  %v1839_v63 = vmul.f32 0.5, %v3877_v22  ;;  %v689_v36 = vand.u32 2147483647, %v3879_v24  ;;  %v1521_v14 = vmul.f32 -0.5, %v3879_v24 }
 0x1df   : > { %v4321_v41 = vpop.eup %3193  ;;  %v1448_v23 = vmul.f32 %v4242_v25, %v1384_v7  ;;  %v1322_v40 = vmul.f32 %v4270_v52, %v1258_v56  ;;  %v1131_v3 = vadd.f32 1.4214138, %v1067_v58  ;;  %v1005_v12 = vadd.f32 -1.4531521, %v941_v39 }
 0x1e0   : > { %5572 = vst [vmem:[#allocation61_spill] sm:$0xff] %v4321_v41  ;;  %v4325_v33 = vpop.eup %3195  ;;  %v1671_v31 = vmul.f32 1.442695, %v1583_v11  ;;  %v4328_v51 = vadd.f32 %v1839_v63, %v4312_v46  ;;  %v753_v16 = vmul.f32 0.23164189, %v689_v36  ;;  %v1585_v22 = vmul.f32 %v1521_v14, %v3879_v24 }
 0x1e1   : > { %v1386_v26 = vadd.f32 0.2548296, %v1322_v40  ;;  %v1195_v38 = vmul.f32 %v4294_v45, %v1131_v3  ;;  %v1069_v41 = vmul.f32 %v4306_v28, %v1005_v12  ;;  %v940_v25 = vmul.f32 1.0614054, %v4325_v33 }
 0x1e2   : > { %5573 = vst [vmem:[#allocation62_spill] sm:$0xff] %v4328_v51  ;;  %v817_v7 = vadd.f32 1.0, %v753_v16  ;;  %v1675_v56 = vmul.f32 1.442695, %v1585_v22  ;;  %v4334_v58 = vmul.f32 0.5, %v689_v36  ;;  %v4338_v11 = vmul.f32 %v4207_v2, %v1448_v23  ;;  %v4344_v16 = vpop.f32.mrb[24].mxu0 }
 0x1e3   : > { %v688_v39 = vand.u32 2147483647, %v3885_v42  ;;  %v1259_v63 = vadd.f32 -0.28449672, %v1195_v38  ;;  %v1133_v51 = vadd.f32 1.4214138, %v1069_v41  ;;  %v1450_v40 = vmul.f32 %v4270_v52, %v1386_v26 }
 0x1e4   : > { %5574 = vst [vmem:[#allocation63_spill] sm:$0xff] %v4338_v11  ;;  %v1004_v35 = vadd.f32 -1.4531521, %v940_v25  ;;  %v4340_v14 = vpop.eup %3197  ;;  %3205 = vrcp.f32 %v817_v7  ;;  %v1520_v12 = vmul.f32 -0.5, %v3885_v42  ;;  %v4346_v36 = vpop.f32.mrb[24].mxu1  ;;  %v1841_v23 = vmul.f32 0.5, %v3879_v24 }
 0x1e5   : > { %v752_v3 = vmul.f32 0.23164189, %v688_v39  ;;  %v4348_v22 = vpop.eup %3199  ;;  %v1323_v2 = vmul.f32 %v4294_v45, %v1259_v63  ;;  %v1197_v38 = vmul.f32 %v4306_v28, %v1133_v51  ;;  %v4354_v25 = vpop.f32.mrb[25].mxu0  ;;  %v942_v52 = vmul.f32 1.0614054, %v4340_v14 }
 0x1e6   : > { %5575 = vst [vmem:[#allocation64_spill] sm:$0xff] %v4348_v22  ;;  %v1068_v41 = vmul.f32 %v4325_v33, %v1004_v35  ;;  %3207 = vpow2.f32 %v1671_v31  ;;  %v1584_v7 = vmul.f32 %v1520_v12, %v3885_v42  ;;  %v4361_v63 = vadd.f32 %v1841_v23, %v4334_v58  ;;  %v5579_v23 = vld [vmem:[#allocation15_spill] sm:$0xff] }
 0x1e7   : > { %v816_v26 = vadd.f32 1.0, %v752_v3  ;;  %v4358_v54 = vpop.eup %3201  ;;  %v1387_v11 = vadd.f32 0.2548296, %v1323_v2  ;;  %v1261_v22 = vadd.f32 -0.28449672, %v1197_v38  ;;  %v4366_v24 = vmul.f32 %v4216_v18, %v1450_v40  ;;  %v4371_v2 = vpop.f32.mrb[25].mxu1 }
 0x1e8   : > { %5576 = vst [vmem:[#allocation65_spill] sm:$0xff] %v4358_v54  ;;  %v1132_v53 = vadd.f32 1.4214138, %v1068_v41  ;;  %5577 = vst [vmem:[#allocation66_spill] sm:$0xff] %v4361_v63  ;;  %v4363_v51 = vpop.eup %3203  ;;  %v1006_v35 = vadd.f32 -1.4531521, %v942_v52 }
 0x1e9   : > { %5578 = vst [vmem:[#allocation67_spill] sm:$0xff] %v4366_v24  ;;  %3209 = vrcp.f32 %v816_v26  ;;  %v1673_v43 = vmul.f32 1.442695, %v1584_v7  ;;  %v1325_v31 = vmul.f32 %v4306_v28, %v1261_v22  ;;  %v943_v12 = vmul.f32 1.0614054, %v4363_v51  ;;  %v5580_v18 = vld [vmem:[#allocation14_spill] sm:$0xff] }
 0x1ea   : > { %v1196_v3 = vmul.f32 %v4325_v33, %v1132_v53  ;;  %3211 = vpow2.f32 %v1675_v56  ;;  %v1070_v38 = vmul.f32 %v4340_v14, %v1006_v35  ;;  %v4374_v41 = vmul.f32 0.5, %v688_v39 }
 0x1eb   : > { %v690_v63 = vand.u32 2147483647, %v5579_v23  ;;  %v4379_v40 = vmul.f32 %v5580_v18, %v3970_v57  ;;  %v1451_v52 = vmul.f32 %v4294_v45, %v1387_v11  ;;  %v1389_v22 = vadd.f32 0.2548296, %v1325_v31 }
 0x1ec   : > { %v1260_v26 = vadd.f32 -0.28449672, %v1196_v3  ;;  %v1007_v53 = vadd.f32 -1.4531521, %v943_v12  ;;  %v1134_v7 = vadd.f32 1.4214138, %v1070_v38  ;;  %3213 = vpow2.f32 %v1673_v43 }
 0x1ed   : > { %v754_v56 = vmul.f32 0.23164189, %v690_v63  ;;  %v1522_v54 = vmul.f32 -0.5, %v5579_v23  ;;  %v1453_v35 = vmul.f32 %v4306_v28, %v1389_v22  ;;  %v1840_v10 = vmul.f32 0.5, %v3885_v42  ;;  %v4393_v43 = vpop.f32.mrb[26].mxu0 }
 0x1ee   : > { %v1324_v39 = vmul.f32 %v4325_v33, %v1260_v26  ;;  %v1071_v24 = vmul.f32 %v4363_v51, %v1007_v53  ;;  %v4387_v57 = vpop.eup %3205  ;;  %v1198_v45 = vmul.f32 %v4340_v14, %v1134_v7  ;;  %v4391_v3 = vmul.f32 0.5, %v690_v63 }
 0x1ef   : > { %v818_v11 = vadd.f32 1.0, %v754_v56  ;;  %v1586_v31 = vmul.f32 %v1522_v54, %v5579_v23  ;;  %v4396_v12 = vmul.f32 %v4240_v34, %v1451_v52  ;;  %v945_v18 = vmul.f32 1.0614054, %v4387_v57  ;;  %v5585_v52 = vld [vmem:[#allocation18_spill] sm:$0xff] }
 0x1f0   : > { %v1388_v28 = vadd.f32 0.2548296, %v1324_v39  ;;  %v1135_v38 = vadd.f32 1.4214138, %v1071_v24  ;;  %v4399_v22 = vpop.eup %3207  ;;  %v1262_v42 = vadd.f32 -0.28449672, %v1198_v45  ;;  %v4402_v26 = vadd.f32 %v1840_v10, %v4374_v41 }
 0x1f1   : > { %5581 = vst [vmem:[#allocation15_spill] sm:$0xff] %v4396_v12  ;;  %5582 = vst [vmem:[#allocation14_spill] sm:$0xff] %v4399_v22  ;;  %3215 = vrcp.f32 %v818_v11  ;;  %v1842_v54 = vmul.f32 0.5, %v5579_v23  ;;  %v4406_v63 = vmul.f32 %v4258_v9, %v1453_v35  ;;  %v1009_v34 = vadd.f32 -1.4531521, %v945_v18  ;;  %v4422_v18 = vpop.f32.mrb[26].mxu1 }
 0x1f2   : > { %5583 = vst [vmem:[#allocation68_spill] sm:$0xff] %v4402_v26  ;;  %v1199_v53 = vmul.f32 %v4363_v51, %v1135_v38  ;;  %v691_v7 = vand.u32 2147483647, %v5585_v52  ;;  %v1326_v56 = vmul.f32 %v4340_v14, %v1262_v42  ;;  %v1677_v39 = vmul.f32 1.442695, %v1586_v31 }
 0x1f3   : > { %5584 = vst [vmem:[#allocation69_spill] sm:$0xff] %v4406_v63  ;;  %v4410_v24 = vpop.eup %3209  ;;  %v4414_v45 = vadd.f32 %v1842_v54, %v4391_v3  ;;  %v1523_v10 = vmul.f32 -0.5, %v5585_v52  ;;  %v1452_v9 = vmul.f32 %v4325_v33, %v1388_v28  ;;  %v1073_v35 = vmul.f32 %v4387_v57, %v1009_v34 }
 0x1f4   : > { %v4417_v11 = vpop.eup %3211  ;;  %v1263_v23 = vadd.f32 -0.28449672, %v1199_v53  ;;  %v944_v38 = vmul.f32 1.0614054, %v4410_v24  ;;  %v1390_v22 = vadd.f32 0.2548296, %v1326_v56  ;;  %3217 = vpow2.f32 %v1677_v39 }
 0x1f5   : > { %5586 = vst [vmem:[#allocation18_spill] sm:$0xff] %v4414_v45  ;;  %5587 = vst [vmem:[#allocation70_spill] sm:$0xff] %v4417_v11  ;;  %v755_v26 = vmul.f32 0.23164189, %v691_v7  ;;  %v1587_v31 = vmul.f32 %v1523_v10, %v5585_v52  ;;  %v4425_v42 = vmul.f32 0.5, %v691_v7  ;;  %v5588_v11 = vld [vmem:[#allocation19_spill] sm:$0xff] }
 0x1f6   : > { %v1327_v54 = vmul.f32 %v4363_v51, %v1263_v23  ;;  %v1137_v45 = vadd.f32 1.4214138, %v1073_v35  ;;  %v1008_v63 = vadd.f32 -1.4531521, %v944_v38  ;;  %v693_v12 = vand.u32 2147483647, %v5588_v11  ;;  %v4429_v33 = vpop.eup %3213 }
 0x1f7   : > { %5589 = vst [vmem:[#allocation19_spill] sm:$0xff] %v4429_v33  ;;  %v1454_v28 = vmul.f32 %v4340_v14, %v1390_v22  ;;  %v819_v53 = vadd.f32 1.0, %v755_v26  ;;  %v1843_v34 = vmul.f32 0.5, %v5585_v52  ;;  %v4436_v23 = vmul.f32 %v4272_v15, %v1452_v9  ;;  %v4439_v33 = vpop.f32.mrb[27].mxu0  ;;  %v5592_v9 = vld [vmem:[#allocation20_spill] sm:$0xff] }
 0x1f8   : > { %v1391_v56 = vadd.f32 0.2548296, %v1327_v54  ;;  %v1201_v0 = vmul.f32 %v4387_v57, %v1137_v45  ;;  %v1072_v7 = vmul.f32 %v4410_v24, %v1008_v63  ;;  %v757_v10 = vmul.f32 0.23164189, %v693_v12 }
 0x1f9   : > { %5590 = vst [vmem:[#allocation71_spill] sm:$0xff] %v4436_v23  ;;  %3219 = vrcp.f32 %v819_v53  ;;  %v1679_v35 = vmul.f32 1.442695, %v1587_v31  ;;  %v1525_v38 = vmul.f32 -0.5, %v5588_v11  ;;  %v4442_v26 = vadd.f32 %v1843_v34, %v4425_v42 }
 0x1fa   : > { %v1265_v14 = vadd.f32 -0.28449672, %v1201_v0  ;;  %v1136_v22 = vadd.f32 1.4214138, %v1072_v7  ;;  %v4444_v52 = vmul.f32 0.5, %v693_v12  ;;  %v1455_v63 = vmul.f32 %v4363_v51, %v1391_v56 }
 0x1fb   : > { %5591 = vst [vmem:[#allocation72_spill] sm:$0xff] %v4442_v26  ;;  %v4446_v39 = vpop.eup %3215  ;;  %v821_v45 = vadd.f32 1.0, %v757_v10  ;;  %v1589_v15 = vmul.f32 %v1525_v38, %v5588_v11  ;;  %v692_v31 = vand.u32 2147483647, %v5592_v9  ;;  %v4452_v54 = vmul.f32 %v4292_v6, %v1454_v28 }
 0x1fc   : > { %v1329_v0 = vmul.f32 %v4387_v57, %v1265_v14  ;;  %v1200_v53 = vmul.f32 %v4410_v24, %v1136_v22  ;;  %v946_v34 = vmul.f32 1.0614054, %v4446_v39  ;;  %v1845_v7 = vmul.f32 0.5, %v5588_v11  ;;  %v4465_v22 = vpop.f32.mrb[27].mxu1 }
 0x1fd   : > { %5593 = vst [vmem:[#allocation20_spill] sm:$0xff] %v4452_v54  ;;  %3221 = vrcp.f32 %v821_v45  ;;  %v1683_v12 = vmul.f32 1.442695, %v1589_v15  ;;  %v756_v26 = vmul.f32 0.23164189, %v692_v31  ;;  %v4459_v38 = vmul.f32 %v4312_v46, %v1455_v63  ;;  %v5597_v63 = vld [vmem:[#allocation21_spill] sm:$0xff] }
 0x1fe   : > { %v1393_v51 = vadd.f32 0.2548296, %v1329_v0  ;;  %v1264_v56 = vadd.f32 -0.28449672, %v1200_v53  ;;  %v1010_v10 = vadd.f32 -1.4531521, %v946_v34  ;;  %3223 = vpow2.f32 %v1679_v35  ;;  %v4472_v35 = vpop.eup %3217 }
 0x1ff   : > { %5594 = vst [vmem:[#allocation73_spill] sm:$0xff] %v4459_v38  ;;  %v4462_v6 = vadd.f32 %v1845_v7, %v4444_v52  ;;  %v820_v28 = vadd.f32 1.0, %v756_v26  ;;  %v1524_v14 = vmul.f32 -0.5, %v5592_v9  ;;  %v4470_v0 = vmul.f32 0.5, %v692_v31  ;;  %5596 = vst [vmem:[#allocation75_spill] sm:$0xff] %v4472_v35  ;;  %v4552_v54 = vpop.f32.mrb[28].mxu0 }
 0x200   : > { %v1457_v45 = vmul.f32 %v4387_v57, %v1393_v51  ;;  %v1328_v11 = vmul.f32 %v4410_v24, %v1264_v56  ;;  %v1074_v15 = vmul.f32 %v4446_v39, %v1010_v10  ;;  %v694_v53 = vand.u32 2147483647, %v5597_v63 }
 0x201   : > { %5595 = vst [vmem:[#allocation74_spill] sm:$0xff] %v4462_v6  ;;  %3225 = vrcp.f32 %v820_v28  ;;  %v1588_v46 = vmul.f32 %v1524_v14, %v5592_v9  ;;  %v1526_v26 = vmul.f32 -0.5, %v5597_v63  ;;  %v4479_v57 = vmul.f32 %v3939_v1, %v4028_v37 }
 0x202   : > { %v1392_v34 = vadd.f32 0.2548296, %v1328_v11  ;;  %v1138_v7 = vadd.f32 1.4214138, %v1074_v15  ;;  %3227 = vpow2.f32 %v1683_v12  ;;  %v1844_v56 = vmul.f32 0.5, %v5592_v9 }
 0x203   : > { %v4481_v51 = vpop.eup %3219  ;;  %v1681_v31 = vmul.f32 1.442695, %v1588_v46  ;;  %v758_v10 = vmul.f32 0.23164189, %v694_v53  ;;  %v1590_v28 = vmul.f32 %v1526_v26, %v5597_v63  ;;  %v4486_v14 = vmul.f32 %v4334_v58, %v1457_v45 }
 0x204   : > { %v1456_v6 = vmul.f32 %v4410_v24, %v1392_v34  ;;  %v1202_v11 = vmul.f32 %v4446_v39, %v1138_v7  ;;  %v947_v12 = vmul.f32 1.0614054, %v4481_v51  ;;  %v4492_v1 = vadd.f32 %v1844_v56, %v4470_v0 }
 0x205   : > { %5598 = vst [vmem:[#allocation21_spill] sm:$0xff] %v4486_v14  ;;  %v822_v37 = vadd.f32 1.0, %v758_v10  ;;  %v4494_v15 = vmul.f32 0.5, %v694_v53  ;;  %v695_v9 = vand.u32 2147483647, %v3932_v32  ;;  %3229 = vpow2.f32 %v1681_v31 }
 0x206   : > { %5599 = vst [vmem:[#allocation76_spill] sm:$0xff] %v4492_v1  ;;  %v1266_v46 = vadd.f32 -0.28449672, %v1202_v11  ;;  %v1011_v38 = vadd.f32 -1.4531521, %v947_v12  ;;  %v1846_v24 = vmul.f32 0.5, %v5597_v63  ;;  %v4504_v56 = vmul.f32 %v4374_v41, %v1456_v6 }
 0x207   : > { %v1685_v26 = vmul.f32 1.442695, %v1590_v28  ;;  %v4497_v58 = vpop.eup %3221  ;;  %3231 = vrcp.f32 %v822_v37  ;;  %v759_v45 = vmul.f32 0.23164189, %v695_v9  ;;  %v1527_v34 = vmul.f32 -0.5, %v3932_v32 }
 0x208   : > { %v4501_v7 = vpop.eup %3223  ;;  %5601 = vst [vmem:[#allocation78_spill] sm:$0xff] %v4504_v56  ;;  %v1330_v53 = vmul.f32 %v4446_v39, %v1266_v46  ;;  %v1075_v10 = vmul.f32 %v4481_v51, %v1011_v38  ;;  %v949_v31 = vmul.f32 1.0614054, %v4497_v58  ;;  %v4510_v12 = vmul.f32 0.5, %v695_v9 }
 0x209   : > { %5600 = vst [vmem:[#allocation77_spill] sm:$0xff] %v4501_v7  ;;  %v823_v28 = vadd.f32 1.0, %v759_v45  ;;  %v1591_v11 = vmul.f32 %v1527_v34, %v3932_v32  ;;  %v697_v63 = vand.u32 2147483647, %v3934_v4  ;;  %3233 = vpow2.f32 %v1685_v26 }
 0x20a   : > { %v1394_v37 = vadd.f32 0.2548296, %v1330_v53  ;;  %v1139_v14 = vadd.f32 1.4214138, %v1075_v10  ;;  %v1013_v1 = vadd.f32 -1.4531521, %v949_v31  ;;  %v4516_v41 = vadd.f32 %v1846_v24, %v4494_v15 }
 0x20b   : > { %v4513_v7 = vpop.eup %3225  ;;  %3235 = vrcp.f32 %v823_v28  ;;  %v1847_v38 = vmul.f32 0.5, %v3932_v32  ;;  %v761_v6 = vmul.f32 0.23164189, %v697_v63  ;;  %v5604_v53 = vld [vmem:[#allocation12_spill] sm:$0xff]  ;;  %v1687_v10 = vmul.f32 1.442695, %v1591_v11 }
 0x20c   : > { %5602 = vst [vmem:[#allocation79_spill] sm:$0xff] %v4516_v41  ;;  %v4519_v46 = vpop.eup %3227  ;;  %v1203_v9 = vmul.f32 %v4481_v51, %v1139_v14  ;;  %v1077_v45 = vmul.f32 %v4497_v58, %v1013_v1  ;;  %v948_v34 = vmul.f32 1.0614054, %v4513_v7  ;;  %v1529_v28 = vmul.f32 -0.5, %v3934_v4 }
 0x20d   : > { %5603 = vst [vmem:[#allocation80_spill] sm:$0xff] %v4519_v46  ;;  %v4527_v31 = vadd.f32 %v1847_v38, %v4510_v12  ;;  %v825_v24 = vadd.f32 1.0, %v761_v6  ;;  %v1458_v32 = vmul.f32 %v4446_v39, %v1394_v37  ;;  %v4532_v1 = vmul.f32 0.5, %v697_v63 }
 0x20e   : > { %v1267_v41 = vadd.f32 -0.28449672, %v1203_v9  ;;  %v1141_v46 = vadd.f32 1.4214138, %v1077_v45  ;;  %v1012_v35 = vadd.f32 -1.4531521, %v948_v34  ;;  %v1593_v14 = vmul.f32 %v1529_v28, %v3934_v4 }
 0x20f   : > { %5605 = vst [vmem:[#allocation12_spill] sm:$0xff] %v4527_v31  ;;  %3237 = vrcp.f32 %v825_v24  ;;  %v696_v56 = vand.u32 2147483647, %v3973_v8  ;;  %v4535_v26 = vpop.eup %3229  ;;  %v1528_v39 = vmul.f32 -0.5, %v3973_v8  ;;  %v1849_v45 = vmul.f32 0.5, %v3934_v4 }
 0x210   : > { %5606 = vst [vmem:[#allocation81_spill] sm:$0xff] %v4535_v26  ;;  %v1331_v11 = vmul.f32 %v4481_v51, %v1267_v41  ;;  %v1205_v38 = vmul.f32 %v4497_v58, %v1141_v46  ;;  %v1076_v6 = vmul.f32 %v4513_v7, %v1012_v35  ;;  %3239 = vpow2.f32 %v1687_v10  ;;  %v4554_v10 = vpop.f32.mrb[28].mxu1 }
 0x211   : > { %v4541_v37 = vpop.eup %3231  ;;  %v1691_v9 = vmul.f32 1.442695, %v1593_v14  ;;  %v760_v63 = vmul.f32 0.23164189, %v696_v56  ;;  %v4545_v34 = vmul.f32 %v4391_v3, %v1458_v32  ;;  %v4549_v46 = vadd.f32 %v1849_v45, %v4532_v1 }
 0x212   : > { %v1395_v24 = vadd.f32 0.2548296, %v1331_v11  ;;  %v1269_v28 = vadd.f32 -0.28449672, %v1205_v38  ;;  %v1140_v31 = vadd.f32 1.4214138, %v1076_v6  ;;  %v1592_v26 = vmul.f32 %v1528_v39, %v3973_v8 }
 0x213   : > { %5607 = vst [vmem:[#allocation82_spill] sm:$0xff] %v4545_v34  ;;  %v950_v41 = vmul.f32 1.0614054, %v4541_v37  ;;  %5608 = vst [vmem:[#allocation83_spill] sm:$0xff] %v4549_v46  ;;  %v824_v35 = vadd.f32 1.0, %v760_v63  ;;  %v4556_v4 = vpop.eup %3233  ;;  %3241 = vpow2.f32 %v1691_v9  ;;  %v4560_v14 = vmul.f32 0.5, %v696_v56 }
 0x214   : > { %5609 = vst [vmem:[#allocation84_spill] sm:$0xff] %v4556_v4  ;;  %v1333_v3 = vmul.f32 %v4497_v58, %v1269_v28  ;;  %v1204_v32 = vmul.f32 %v4513_v7, %v1140_v31  ;;  %v1848_v6 = vmul.f32 0.5, %v3973_v8  ;;  %v698_v39 = vand.u32 2147483647, %v3985_v47 }
 0x215   : > { %v4562_v11 = vpop.eup %3235  ;;  %v1014_v38 = vadd.f32 -1.4531521, %v950_v41  ;;  %3243 = vrcp.f32 %v824_v35  ;;  %v1459_v45 = vmul.f32 %v4481_v51, %v1395_v24  ;;  %v1689_v31 = vmul.f32 1.442695, %v1592_v26 }
 0x216   : > { %v1397_v63 = vadd.f32 0.2548296, %v1333_v3  ;;  %v1268_v46 = vadd.f32 -0.28449672, %v1204_v32  ;;  %v951_v4 = vmul.f32 1.0614054, %v4562_v11  ;;  %v4573_v8 = vadd.f32 %v1848_v6, %v4560_v14 }
 0x217   : > { %v1078_v28 = vmul.f32 %v4541_v37, %v1014_v38  ;;  %v762_v9 = vmul.f32 0.23164189, %v698_v39  ;;  %v1530_v56 = vmul.f32 -0.5, %v3985_v47  ;;  %v4578_v32 = vmul.f32 0.5, %v698_v39 }
 0x218   : > { %v1461_v34 = vmul.f32 %v4497_v58, %v1397_v63  ;;  %v1332_v41 = vmul.f32 %v4513_v7, %v1268_v46  ;;  %v1015_v35 = vadd.f32 -1.4531521, %v951_v4  ;;  %5610 = vst [vmem:[#allocation85_spill] sm:$0xff] %v4573_v8  ;;  %v4581_v26 = vmul.f32 %v4425_v42, %v1459_v45 }
 0x219   : > { %v4575_v23 = vpop.eup %3237  ;;  %v1142_v51 = vadd.f32 1.4214138, %v1078_v28  ;;  %v826_v24 = vadd.f32 1.0, %v762_v9  ;;  %v1594_v3 = vmul.f32 %v1530_v56, %v3985_v47  ;;  %v1850_v28 = vmul.f32 0.5, %v3985_v47 }
 0x21a   : > { %5611 = vst [vmem:[#allocation86_spill] sm:$0xff] %v4581_v26  ;;  %v1396_v38 = vadd.f32 0.2548296, %v1332_v41  ;;  %v1079_v58 = vmul.f32 %v4562_v11, %v1015_v35  ;;  %v953_v46 = vmul.f32 1.0614054, %v4575_v23  ;;  %v4585_v4 = vpop.eup %3239  ;;  %v4591_v42 = vmul.f32 %v4444_v52, %v1461_v34 }
 0x21b   : > { %5612 = vst [vmem:[#allocation87_spill] sm:$0xff] %v4585_v4  ;;  %v1206_v6 = vmul.f32 %v4541_v37, %v1142_v51  ;;  %3245 = vrcp.f32 %v826_v24  ;;  %v1693_v63 = vmul.f32 1.442695, %v1594_v3  ;;  %v699_v39 = vand.u32 2147483647, %v4012_v29 }
 0x21c   : > { %v1143_v9 = vadd.f32 1.4214138, %v1079_v58  ;;  %v1017_v56 = vadd.f32 -1.4531521, %v953_v46  ;;  %3247 = vpow2.f32 %v1689_v31  ;;  %5613 = vst [vmem:[#allocation88_spill] sm:$0xff] %v4591_v42  ;;  %v4594_v41 = vadd.f32 %v1850_v28, %v4578_v32 }
 0x21d   : > { %v1270_v45 = vadd.f32 -0.28449672, %v1206_v6  ;;  %v1531_v35 = vmul.f32 -0.5, %v4012_v29  ;;  %v4597_v4 = vpop.eup %3241  ;;  %v1460_v51 = vmul.f32 %v4513_v7, %v1396_v38  ;;  %v763_v31 = vmul.f32 0.23164189, %v699_v39 }
 0x21e   : > { %5614 = vst [vmem:[#allocation89_spill] sm:$0xff] %v4594_v41  ;;  %5615 = vst [vmem:[#allocation90_spill] sm:$0xff] %v4597_v4  ;;  %v1207_v47 = vmul.f32 %v4562_v11, %v1143_v9  ;;  %v1081_v24 = vmul.f32 %v4575_v23, %v1017_v56  ;;  %v4606_v58 = vmul.f32 0.5, %v699_v39  ;;  %v701_v46 = vand.u32 2147483647, %v4033_v62 }
 0x21f   : > { %v4602_v3 = vpop.eup %3243  ;;  %v1334_v52 = vmul.f32 %v4541_v37, %v1270_v45  ;;  %v1595_v34 = vmul.f32 %v1531_v35, %v4012_v29  ;;  %3249 = vpow2.f32 %v1693_v63  ;;  %v827_v38 = vadd.f32 1.0, %v763_v31  ;;  %v4621_v31 = vpop.f32.mrb[29].mxu1 }
 0x220   : > { %v1271_v6 = vadd.f32 -0.28449672, %v1207_v47  ;;  %v1145_v28 = vadd.f32 1.4214138, %v1081_v24  ;;  %v952_v4 = vmul.f32 1.0614054, %v4602_v3  ;;  %v4614_v39 = vmul.f32 %v4470_v0, %v1460_v51 }
 0x221   : > { %v1398_v7 = vadd.f32 0.2548296, %v1334_v52  ;;  %v1695_v9 = vmul.f32 1.442695, %v1595_v34  ;;  %v1851_v56 = vmul.f32 0.5, %v4012_v29  ;;  %3251 = vrcp.f32 %v827_v38  ;;  %v5617_v24 = vld [vmem:[#allocation17_spill] sm:$0xff] }
 0x222   : > { %v1335_v41 = vmul.f32 %v4562_v11, %v1271_v6  ;;  %v1209_v45 = vmul.f32 %v4575_v23, %v1145_v28  ;;  %v1016_v8 = vadd.f32 -1.4531521, %v952_v4  ;;  %v765_v35 = vmul.f32 0.23164189, %v701_v46  ;;  %5616 = vst [vmem:[#allocation91_spill] sm:$0xff] %v4614_v39  ;;  %v4619_v52 = vpop.f32.mrb[29].mxu0 }
 0x223   : > { %v1533_v47 = vmul.f32 -0.5, %v4033_v62  ;;  %v4625_v4 = vadd.f32 %v1851_v56, %v4606_v58  ;;  %v4627_v28 = vpop.f32.mrb[30].mxu0  ;;  %v4629_v0 = vpop.f32.mrb[30].mxu1  ;;  %v1462_v38 = vmul.f32 %v4541_v37, %v1398_v7  ;;  %v4635_v26 = vmul.f32 0.5, %v701_v46 }
 0x224   : > { %v1399_v29 = vadd.f32 0.2548296, %v1335_v41  ;;  %v1273_v34 = vadd.f32 -0.28449672, %v1209_v45  ;;  %v1080_v6 = vmul.f32 %v4602_v3, %v1016_v8  ;;  %v829_v63 = vadd.f32 1.0, %v765_v35 }
 0x225   : > { %5618 = vst [vmem:[#allocation17_spill] sm:$0xff] %v4625_v4  ;;  %v4631_v51 = vpop.eup %3245  ;;  %v1597_v42 = vmul.f32 %v1533_v47, %v4033_v62  ;;  %3253 = vpow2.f32 %v1695_v9  ;;  %v4641_v4 = vpop.f32.mrb[31].mxu0  ;;  %v1853_v37 = vmul.f32 0.5, %v4033_v62  ;;  %v700_v7 = vand.u32 2147483647, %v4067_v59 }
 0x226   : > { %v4637_v41 = vpop.eup %3247  ;;  %v1337_v8 = vmul.f32 %v4575_v23, %v1273_v34  ;;  %v1144_v45 = vadd.f32 1.4214138, %v1080_v6  ;;  %v954_v56 = vmul.f32 1.0614054, %v4631_v51  ;;  %5620 = vst [vmem:[#allocation93_spill] sm:$0xff] %v4641_v4  ;;  %v1463_v39 = vmul.f32 %v4562_v11, %v1399_v29 }
 0x227   : > { %5619 = vst [vmem:[#allocation92_spill] sm:$0xff] %v4637_v41  ;;  %3255 = vrcp.f32 %v829_v63  ;;  %v1699_v41 = vmul.f32 1.442695, %v1597_v42  ;;  %v4648_v34 = vmul.f32 %v4494_v15, %v1462_v38  ;;  %v4651_v6 = vadd.f32 %v1853_v37, %v4635_v26 }
 0x228   : > { %v1401_v35 = vadd.f32 0.2548296, %v1337_v8  ;;  %v1208_v46 = vmul.f32 %v4602_v3, %v1144_v45  ;;  %v1018_v47 = vadd.f32 -1.4531521, %v954_v56  ;;  %v764_v9 = vmul.f32 0.23164189, %v700_v7 }
 0x229   : > { %5621 = vst [vmem:[#allocation94_spill] sm:$0xff] %v4651_v6  ;;  %v1532_v4 = vmul.f32 -0.5, %v4067_v59  ;;  %v4654_v11 = vpop.eup %3249  ;;  %v4658_v8 = vmul.f32 0.5, %v700_v7  ;;  %v702_v15 = vand.u32 2147483647, %v4089_v21  ;;  %v1534_v38 = vmul.f32 -0.5, %v4089_v21 }
 0x22a   : > { %5622 = vst [vmem:[#allocation95_spill] sm:$0xff] %v4654_v11  ;;  %v1465_v62 = vmul.f32 %v4575_v23, %v1401_v35  ;;  %v1272_v63 = vadd.f32 -0.28449672, %v1208_v46  ;;  %v1082_v29 = vmul.f32 %v4631_v51, %v1018_v47  ;;  %v828_v45 = vadd.f32 1.0, %v764_v9  ;;  %v4670_v47 = vpop.f32.mrb[31].mxu1 }
 0x22b   : > { %v1596_v42 = vmul.f32 %v1532_v4, %v4067_v59  ;;  %v4664_v56 = vmul.f32 %v4510_v12, %v1463_v39  ;;  %3257 = vpow2.f32 %v1699_v41  ;;  %v4667_v23 = vpop.eup %3251  ;;  %v1852_v7 = vmul.f32 0.5, %v4067_v59 }
 0x22c   : > { %v1336_v37 = vmul.f32 %v4602_v3, %v1272_v63  ;;  %v1146_v6 = vadd.f32 1.4214138, %v1082_v29  ;;  %3259 = vrcp.f32 %v828_v45  ;;  %v766_v46 = vmul.f32 0.23164189, %v702_v15 }
 0x22d   : > { %v1697_v35 = vmul.f32 1.442695, %v1596_v42  ;;  %v955_v11 = vmul.f32 1.0614054, %v4667_v23  ;;  %v1598_v12 = vmul.f32 %v1534_v38, %v4089_v21  ;;  %v4676_v39 = vmul.f32 %v4532_v1, %v1465_v62 }
 0x22e   : > { %v1400_v4 = vadd.f32 0.2548296, %v1336_v37  ;;  %v1210_v9 = vmul.f32 %v4631_v51, %v1146_v6  ;;  %v4679_v41 = vadd.f32 %v1852_v7, %v4658_v8  ;;  %v830_v63 = vadd.f32 1.0, %v766_v46 }
 0x22f   : > { %5623 = vst [vmem:[#allocation96_spill] sm:$0xff] %v4676_v39  ;;  %v4681_v29 = vmul.f32 0.5, %v702_v15  ;;  %v4683_v59 = vpop.eup %3253  ;;  %v1019_v42 = vadd.f32 -1.4531521, %v955_v11  ;;  %3261 = vpow2.f32 %v1697_v35  ;;  %v703_v6 = vand.u32 2147483647, %v4127_v13 }
 0x230   : > { %5624 = vst [vmem:[#allocation97_spill] sm:$0xff] %v4683_v59  ;;  %v1274_v45 = vadd.f32 -0.28449672, %v1210_v9  ;;  %v1464_v38 = vmul.f32 %v4602_v3, %v1400_v4  ;;  %3263 = vrcp.f32 %v830_v63  ;;  %v1854_v1 = vmul.f32 0.5, %v4089_v21 }
 0x231   : > { %v4686_v37 = vpop.eup %3255  ;;  %v1535_v62 = vmul.f32 -0.5, %v4127_v13  ;;  %v1083_v15 = vmul.f32 %v4667_v23, %v1019_v42  ;;  %v1701_v9 = vmul.f32 1.442695, %v1598_v12  ;;  %v767_v35 = vmul.f32 0.23164189, %v703_v6 }
 0x232   : > { %v1338_v7 = vmul.f32 %v4631_v51, %v1274_v45  ;;  %v957_v46 = vmul.f32 1.0614054, %v4686_v37  ;;  %v4695_v11 = vadd.f32 %v1854_v1, %v4681_v29  ;;  %v4698_v59 = vmul.f32 0.5, %v703_v6 }
 0x233   : > { %v1599_v39 = vmul.f32 %v1535_v62, %v4127_v13  ;;  %v1147_v4 = vadd.f32 1.4214138, %v1083_v15  ;;  %v5626_v63 = vsub.f32 %v5604_v53, %v4379_v40  ;;  %v5627_v45 = vsub.f32 %v5617_v24, %v4479_v57 }
 0x234   : > { %5625 = vst [vmem:[#allocation98_spill] sm:$0xff] %v4695_v11  ;;  %v1402_v3 = vadd.f32 0.2548296, %v1338_v7  ;;  %v1021_v21 = vadd.f32 -1.4531521, %v957_v46  ;;  %v4707_v12 = vmul.f32 %v4560_v14, %v1464_v38  ;;  %v831_v1 = vadd.f32 1.0, %v767_v35 }
 0x235   : > { %v2136_v42 = vpack.c.bf16 %v5627_v45, %v5626_v63  ;;  %v1855_v11 = vmul.f32 0.5, %v4127_v13  ;;  %v705_v62 = vand.u32 2147483647, %v4129_v48  ;;  %v4711_v6 = vpop.eup %3257  ;;  %v1211_v7 = vmul.f32 %v4667_v23, %v1147_v4 }
 0x236   : > { %5628 = vst [vmem:[#allocation99_spill] sm:$0xff] %v4711_v6  ;;  %v1085_v15 = vmul.f32 %v4686_v37, %v1021_v21  ;;  %3265 = vpow2.f32 %v1701_v9  ;;  %v1537_v40 = vmul.f32 -0.5, %v4129_v48  ;;  %v4716_v57 = vpop.eup %3259  ;;  %v1466_v53 = vmul.f32 %v4631_v51, %v1402_v3 }
 0x237   : > { %2455 = vmatprep.mubr.bf16.mxu0 %v2136_v42  ;;  %3267 = vrcp.f32 %v831_v1  ;;  %v1703_v14 = vmul.f32 1.442695, %v1599_v39  ;;  %v769_v24 = vmul.f32 0.23164189, %v705_v62  ;;  %v1275_v13 = vadd.f32 -0.28449672, %v1211_v7 }
 0x238   : > { %2456 = vmatmul.mubr.bf16.vlgmr.msra.gmra.mrb[32].mxu0 %v4004_v49  ;;  %v1149_v38 = vadd.f32 1.4214138, %v1085_v15  ;;  %v956_v46 = vmul.f32 1.0614054, %v4716_v57  ;;  %v4722_v35 = vadd.f32 %v1855_v11, %v4698_v59  ;;  %v1601_v4 = vmul.f32 %v1537_v40, %v4129_v48 }
 0x239   : > { %v833_v9 = vadd.f32 1.0, %v769_v24  ;;  %v4725_v21 = vmul.f32 0.5, %v705_v62  ;;  %v1857_v63 = vmul.f32 0.5, %v4129_v48  ;;  %v4728_v51 = vpop.eup %3261  ;;  %v1339_v39 = vmul.f32 %v4667_v23, %v1275_v13 }
 0x23a   : > { %5629 = vst [vmem:[#allocation100_spill] sm:$0xff] %v4722_v35  ;;  %v1213_v49 = vmul.f32 %v4686_v37, %v1149_v38  ;;  %v1020_v3 = vadd.f32 -1.4531521, %v956_v46  ;;  %v704_v45 = vand.u32 2147483647, %v4145_v61  ;;  %v4733_v42 = vpop.eup %3263  ;;  %v4736_v11 = vmul.f32 %v4578_v32, %v1466_v53 }
 0x23b   : > { %3269 = vrcp.f32 %v833_v9  ;;  %v1707_v1 = vmul.f32 1.442695, %v1601_v4  ;;  %v1536_v62 = vmul.f32 -0.5, %v4145_v61  ;;  %v1403_v7 = vadd.f32 0.2548296, %v1339_v39 }
 0x23c   : > { %v1277_v48 = vadd.f32 -0.28449672, %v1213_v49  ;;  %v1084_v15 = vmul.f32 %v4716_v57, %v1020_v3  ;;  %v958_v40 = vmul.f32 1.0614054, %v4733_v42  ;;  %3271 = vpow2.f32 %v1703_v14 }
 0x23d   : > { %v768_v24 = vmul.f32 0.23164189, %v704_v45  ;;  %v1600_v13 = vmul.f32 %v1536_v62, %v4145_v61  ;;  %v1856_v38 = vmul.f32 0.5, %v4145_v61  ;;  %v4744_v9 = vmul.f32 0.5, %v704_v45 }
 0x23e   : > { %v1341_v46 = vmul.f32 %v4686_v37, %v1277_v48  ;;  %v1148_v32 = vadd.f32 1.4214138, %v1084_v15  ;;  %v1022_v53 = vadd.f32 -1.4531521, %v958_v40  ;;  %v1467_v4 = vmul.f32 %v4667_v23, %v1403_v7 }
 0x23f   : > { %3273 = vpow2.f32 %v1707_v1  ;;  %v832_v39 = vadd.f32 1.0, %v768_v24  ;;  %v706_v49 = vand.u32 2147483647, %v4172_v27  ;;  %v1705_v61 = vmul.f32 1.442695, %v1600_v13 }
 0x240   : > { %v4748_v3 = vpop.eup %3265  ;;  %v1405_v14 = vadd.f32 0.2548296, %v1341_v46  ;;  %v1212_v35 = vmul.f32 %v4716_v57, %v1148_v32  ;;  %v1086_v62 = vmul.f32 %v4733_v42, %v1022_v53  ;;  %v4755_v48 = vadd.f32 %v1857_v63, %v4725_v21 }
 0x241   : > { %v4752_v6 = vpop.eup %3267  ;;  %3275 = vrcp.f32 %v832_v39  ;;  %v770_v45 = vmul.f32 0.23164189, %v706_v49  ;;  %v1538_v23 = vmul.f32 -0.5, %v4172_v27  ;;  %v4760_v40 = vadd.f32 %v1856_v38, %v4744_v9 }
 0x242   : > { %5630 = vst [vmem:[#allocation101_spill] sm:$0xff] %v4755_v48  ;;  %v1276_v1 = vadd.f32 -0.28449672, %v1212_v35  ;;  %v1150_v7 = vadd.f32 1.4214138, %v1086_v62  ;;  %v4763_v24 = vmul.f32 %v4606_v58, %v1467_v4  ;;  %v1469_v13 = vmul.f32 %v4686_v37, %v1405_v14 }
 0x243   : > { %v959_v15 = vmul.f32 1.0614054, %v4752_v6  ;;  %5631 = vst [vmem:[#allocation102_spill] sm:$0xff] %v4760_v40  ;;  %v834_v46 = vadd.f32 1.0, %v770_v45  ;;  %v1602_v63 = vmul.f32 %v1538_v23, %v4172_v27  ;;  %3277 = vpow2.f32 %v1705_v61 }
 0x244   : > { %v1340_v32 = vmul.f32 %v4716_v57, %v1276_v1  ;;  %v1214_v53 = vmul.f32 %v4733_v42, %v1150_v7  ;;  %v4771_v38 = vmul.f32 0.5, %v706_v49  ;;  %v707_v58 = vand.u32 2147483647, %v4198_v19 }
 0x245   : > { %v1023_v39 = vadd.f32 -1.4531521, %v959_v15  ;;  %v4769_v35 = vpop.eup %3269  ;;  %3279 = vrcp.f32 %v834_v46  ;;  %v1709_v62 = vmul.f32 1.442695, %v1602_v63  ;;  %v4779_v23 = vmul.f32 %v4635_v26, %v1469_v13 }
 0x246   : > { %v1404_v4 = vadd.f32 0.2548296, %v1340_v32  ;;  %v1278_v48 = vadd.f32 -0.28449672, %v1214_v53  ;;  %v961_v14 = vmul.f32 1.0614054, %v4769_v35  ;;  %v4776_v45 = vpop.eup %3271 }
 0x247   : > { %v1087_v37 = vmul.f32 %v4752_v6, %v1023_v39  ;;  %5632 = vst [vmem:[#allocation103_spill] sm:$0xff] %v4776_v45  ;;  %5633 = vst [vmem:[#allocation104_spill] sm:$0xff] %v4779_v23  ;;  %v1858_v61 = vmul.f32 0.5, %v4172_v27  ;;  %v771_v1 = vmul.f32 0.23164189, %v707_v58  ;;  %v1539_v7 = vmul.f32 -0.5, %v4198_v19 }
 0x248   : > { %v1468_v49 = vmul.f32 %v4716_v57, %v1404_v4  ;;  %v1342_v15 = vmul.f32 %v4733_v42, %v1278_v48  ;;  %v1025_v63 = vadd.f32 -1.4531521, %v961_v14  ;;  %v4788_v45 = vmul.f32 0.5, %v707_v58 }
 0x249   : > { %v1151_v46 = vadd.f32 1.4214138, %v1087_v37  ;;  %v4785_v32 = vpop.eup %3273  ;;  %v835_v53 = vadd.f32 1.0, %v771_v1  ;;  %v1603_v39 = vmul.f32 %v1539_v7, %v4198_v19  ;;  %v709_v26 = vand.u32 2147483647, %v4220_v5 }
 0x24a   : > { %5634 = vst [vmem:[#allocation105_spill] sm:$0xff] %v4785_v32  ;;  %v1406_v13 = vadd.f32 0.2548296, %v1342_v15  ;;  %v1089_v40 = vmul.f32 %v4769_v35, %v1025_v63  ;;  %3281 = vpow2.f32 %v1709_v62  ;;  %v4796_v48 = vadd.f32 %v1858_v61, %v4771_v38 }
 0x24b   : > { %v1215_v27 = vmul.f32 %v4752_v6, %v1151_v46  ;;  %v4793_v57 = vpop.eup %3275  ;;  %3283 = vrcp.f32 %v835_v53  ;;  %v1859_v4 = vmul.f32 0.5, %v4198_v19  ;;  %v773_v37 = vmul.f32 0.23164189, %v709_v26 }
 0x24c   : > { %5635 = vst [vmem:[#allocation106_spill] sm:$0xff] %v4796_v48  ;;  %v4800_v58 = vmul.f32 %v4658_v8, %v1468_v49  ;;  %v1153_v1 = vadd.f32 1.4214138, %v1089_v40  ;;  %v960_v7 = vmul.f32 1.0614054, %v4793_v57  ;;  %v1541_v63 = vmul.f32 -0.5, %v4220_v5 }
 0x24d   : > { %v1279_v14 = vadd.f32 -0.28449672, %v1215_v27  ;;  %v1711_v15 = vmul.f32 1.442695, %v1603_v39  ;;  %v4804_v46 = vadd.f32 %v1859_v4, %v4788_v45  ;;  %v837_v62 = vadd.f32 1.0, %v773_v37  ;;  %v4807_v61 = vpop.eup %3277 }
 0x24e   : > { %5637 = vst [vmem:[#allocation108_spill] sm:$0xff] %v4807_v61  ;;  %v1470_v53 = vmul.f32 %v4733_v42, %v1406_v13  ;;  %v1217_v8 = vmul.f32 %v4769_v35, %v1153_v1  ;;  %v1024_v49 = vadd.f32 -1.4531521, %v960_v7  ;;  %v1605_v40 = vmul.f32 %v1541_v63, %v4220_v5 }
 0x24f   : > { %5636 = vst [vmem:[#allocation107_spill] sm:$0xff] %v4804_v46  ;;  %v1343_v19 = vmul.f32 %v4752_v6, %v1279_v14  ;;  %v4812_v27 = vpop.eup %3279  ;;  %3285 = vrcp.f32 %v837_v62  ;;  %v4815_v39 = vmul.f32 0.5, %v709_v26  ;;  %v708_v4 = vand.u32 2147483647, %v4252_v50 }
 0x250   : > { %v1281_v46 = vadd.f32 -0.28449672, %v1217_v8  ;;  %v1088_v32 = vmul.f32 %v4793_v57, %v1024_v49  ;;  %v962_v42 = vmul.f32 1.0614054, %v4812_v27  ;;  %3287 = vpow2.f32 %v1711_v15 }
 0x251   : > { %v1407_v37 = vadd.f32 0.2548296, %v1343_v19  ;;  %v1861_v13 = vmul.f32 0.5, %v4220_v5  ;;  %v772_v14 = vmul.f32 0.23164189, %v708_v4  ;;  %v1540_v1 = vmul.f32 -0.5, %v4252_v50 }
 0x252   : > { %v1345_v7 = vmul.f32 %v4769_v35, %v1281_v46  ;;  %v1152_v62 = vadd.f32 1.4214138, %v1088_v32  ;;  %v1026_v63 = vadd.f32 -1.4531521, %v962_v42  ;;  %v1715_v26 = vmul.f32 1.442695, %v1605_v40 }
 0x253   : > { %v4824_v48 = vmul.f32 %v4681_v29, %v1470_v53  ;;  %v4827_v19 = vadd.f32 %v1861_v13, %v4815_v39  ;;  %v836_v8 = vadd.f32 1.0, %v772_v14  ;;  %v1604_v49 = vmul.f32 %v1540_v1, %v4252_v50 }
 0x254   : > { %v4830_v15 = vpop.eup %3281  ;;  %v1471_v5 = vmul.f32 %v4752_v6, %v1407_v37  ;;  %v1409_v61 = vadd.f32 0.2548296, %v1345_v7  ;;  %v1216_v23 = vmul.f32 %v4793_v57, %v1152_v62  ;;  %v1090_v32 = vmul.f32 %v4812_v27, %v1026_v63 }
 0x255   : > { %5638 = vst [vmem:[#allocation109_spill] sm:$0xff] %v4827_v19  ;;  %v4835_v46 = vpop.eup %3283  ;;  %3289 = vrcp.f32 %v836_v8  ;;  %v1713_v29 = vmul.f32 1.442695, %v1604_v49  ;;  %v4837_v53 = vmul.f32 0.5, %v708_v4  ;;  %v710_v40 = vand.u32 2147483647, %v4276_v17 }
 0x256   : > { %v1280_v42 = vadd.f32 -0.28449672, %v1216_v23  ;;  %v1154_v13 = vadd.f32 1.4214138, %v1090_v32  ;;  %v963_v14 = vmul.f32 1.0614054, %v4835_v46  ;;  %3291 = vpow2.f32 %v1715_v26 }
 0x257   : > { %v1473_v6 = vmul.f32 %v4769_v35, %v1409_v61  ;;  %v1860_v37 = vmul.f32 0.5, %v4252_v50  ;;  %v774_v1 = vmul.f32 0.23164189, %v710_v40  ;;  %v1542_v7 = vmul.f32 -0.5, %v4276_v17  ;;  %v5642_v19 = vld [vmem:[#allocation23_spill] sm:$0xff] }
 0x258   : > { %v4845_v62 = vmul.f32 %v4698_v59, %v1471_v5  ;;  %v1344_v4 = vmul.f32 %v4793_v57, %v1280_v42  ;;  %v1218_v63 = vmul.f32 %v4812_v27, %v1154_v13  ;;  %v1027_v8 = vadd.f32 -1.4531521, %v963_v14 }
 0x259   : > { %v4849_v23 = vpop.eup %3285  ;;  %3293 = vpow2.f32 %v1713_v29  ;;  %v4852_v26 = vadd.f32 %v1860_v37, %v4837_v53  ;;  %v838_v35 = vadd.f32 1.0, %v774_v1  ;;  %v1606_v50 = vmul.f32 %v1542_v7, %v4276_v17  ;;  %v5641_v29 = vld [vmem:[#allocation16_spill] sm:$0xff] }
 0x25a   : > { %v1408_v61 = vadd.f32 0.2548296, %v1344_v4  ;;  %v1282_v49 = vadd.f32 -0.28449672, %v1218_v63  ;;  %v1091_v32 = vmul.f32 %v4835_v46, %v1027_v8  ;;  %v965_v59 = vmul.f32 1.0614054, %v4849_v23  ;;  %v4857_v5 = vpop.eup %3287 }
 0x25b   : > { %5639 = vst [vmem:[#allocation110_spill] sm:$0xff] %v4857_v5  ;;  %v4860_v42 = vmul.f32 %v4725_v21, %v1473_v6  ;;  %3295 = vrcp.f32 %v838_v35  ;;  %v4862_v13 = vmul.f32 0.5, %v710_v40  ;;  %v2010_v14 = vmul.f32 %v5641_v29, %v4009_v30  ;;  %v5643_v30 = vld [vmem:[#allocation13_spill] sm:$0xff] }
 0x25c   : > { %v1346_v37 = vmul.f32 %v4812_v27, %v1282_v49  ;;  %v1155_v1 = vadd.f32 1.4214138, %v1091_v32  ;;  %v1029_v7 = vadd.f32 -1.4531521, %v965_v59  ;;  %v1862_v4 = vmul.f32 0.5, %v4276_v17  ;;  %v5644_v32 = vld [vmem:[#allocation22_spill] sm:$0xff] }
 0x25d   : > { %5640 = vst [vmem:[#allocation111_spill] sm:$0xff] %v4860_v42  ;;  %v1472_v63 = vmul.f32 %v4793_v57, %v1408_v61  ;;  %v1717_v8 = vmul.f32 1.442695, %v1606_v50  ;;  %v2014_v5 = vmul.f32 %v5642_v19, %v4041_v55  ;;  %v711_v21 = vand.u32 2147483647, %v4344_v16 }
 0x25e   : > { %v1410_v6 = vadd.f32 0.2548296, %v1346_v37  ;;  %v1219_v40 = vmul.f32 %v4835_v46, %v1155_v1  ;;  %v1093_v35 = vmul.f32 %v4849_v23, %v1029_v7  ;;  %v2074_v29 = vsub.f32 %v5643_v30, %v2010_v14 }
 0x25f   : > { %v4875_v49 = vpop.eup %3289  ;;  %v2078_v59 = vsub.f32 %v5644_v32, %v2014_v5  ;;  %v775_v17 = vmul.f32 0.23164189, %v711_v21  ;;  %v1543_v57 = vmul.f32 -0.5, %v4344_v16  ;;  %v4879_v50 = vmul.f32 0.5, %v711_v21 }
 0x260   : > { %v4881_v61 = vpop.eup %3291  ;;  %v1283_v55 = vadd.f32 -0.28449672, %v1219_v40  ;;  %v1157_v19 = vadd.f32 1.4214138, %v1093_v35  ;;  %v964_v37 = vmul.f32 1.0614054, %v4875_v49  ;;  %v4885_v1 = vadd.f32 %v1862_v4, %v4862_v13 }
 0x261   : > { %5645 = vst [vmem:[#allocation16_spill] sm:$0xff] %v4881_v61  ;;  %v1474_v14 = vmul.f32 %v4812_v27, %v1410_v6  ;;  %v2138_v7 = vpack.c.bf16 %v2078_v59, %v2074_v29  ;;  %v839_v30 = vadd.f32 1.0, %v775_v17  ;;  %v1607_v5 = vmul.f32 %v1543_v57, %v4344_v16  ;;  %v5647_v17 = vld [vmem:[#allocation27_spill] sm:$0xff] }
 0x262   : > { %5646 = vst [vmem:[#allocation23_spill] sm:$0xff] %v4885_v1  ;;  %v1347_v32 = vmul.f32 %v4835_v46, %v1283_v55  ;;  %v1221_v21 = vmul.f32 %v4849_v23, %v1157_v19  ;;  %v1028_v42 = vadd.f32 -1.4531521, %v964_v37  ;;  %3297 = vpow2.f32 %v1717_v8 }
 0x263   : > { %v4891_v61 = vpop.eup %3293  ;;  %v4894_v40 = vmul.f32 %v4744_v9, %v1472_v63  ;;  %2552 = vmatprep.mubr.bf16.mxu1 %v2138_v7  ;;  %3299 = vrcp.f32 %v839_v30  ;;  %v1863_v4 = vmul.f32 0.5, %v4344_v16  ;;  %v713_v27 = vand.u32 2147483647, %v4346_v36 }
 0x264   : > { %v1411_v6 = vadd.f32 0.2548296, %v1347_v32  ;;  %v1285_v35 = vadd.f32 -0.28449672, %v1221_v21  ;;  %v1092_v29 = vmul.f32 %v4875_v49, %v1028_v42  ;;  %v1545_v59 = vmul.f32 -0.5, %v4346_v36  ;;  %2553 = vmatmul.mubr.bf16.vlgmr.msra.gmra.mrb[32].mxu1 %v5647_v17 }
 0x265   : > { %v4901_v8 = vpop.eup %3295  ;;  %v4904_v57 = vmul.f32 %v4771_v38, %v1474_v14  ;;  %v1719_v9 = vmul.f32 1.442695, %v1607_v5  ;;  %v4907_v63 = vadd.f32 %v1863_v4, %v4879_v50  ;;  %v777_v16 = vmul.f32 0.23164189, %v713_v27 }
 0x266   : > { %v1349_v55 = vmul.f32 %v4849_v23, %v1285_v35  ;;  %v1156_v19 = vadd.f32 1.4214138, %v1092_v29  ;;  %v966_v37 = vmul.f32 1.0614054, %v4901_v8  ;;  %v4911_v42 = vmul.f32 0.5, %v713_v27 }
 0x267   : > { %5648 = vst [vmem:[#allocation13_spill] sm:$0xff] %v4907_v63  ;;  %v1475_v7 = vmul.f32 %v4835_v46, %v1411_v6  ;;  %v841_v30 = vadd.f32 1.0, %v777_v16  ;;  %v1609_v32 = vmul.f32 %v1545_v59, %v4346_v36  ;;  %v712_v38 = vand.u32 2147483647, %v4354_v25 }
 0x268   : > { %v1413_v14 = vadd.f32 0.2548296, %v1349_v55  ;;  %v1220_v5 = vmul.f32 %v4875_v49, %v1156_v19  ;;  %v1030_v21 = vadd.f32 -1.4531521, %v966_v37  ;;  %v1865_v4 = vmul.f32 0.5, %v4346_v36 }
 0x269   : > { %3301 = vrcp.f32 %v841_v30  ;;  %v1723_v35 = vmul.f32 1.442695, %v1609_v32  ;;  %v776_v29 = vmul.f32 0.23164189, %v712_v38  ;;  %v1544_v17 = vmul.f32 -0.5, %v4354_v25 }
 0x26a   : > { %v1284_v27 = vadd.f32 -0.28449672, %v1220_v5  ;;  %v1094_v63 = vmul.f32 %v4901_v8, %v1030_v21  ;;  %3303 = vpow2.f32 %v1719_v9  ;;  %v4921_v46 = vadd.f32 %v1865_v4, %v4911_v42 }
 0x26b   : > { %v4924_v6 = vmul.f32 %v4788_v45, %v1475_v7  ;;  %v1477_v59 = vmul.f32 %v4849_v23, %v1413_v14  ;;  %v840_v16 = vadd.f32 1.0, %v776_v29  ;;  %v1608_v36 = vmul.f32 %v1544_v17, %v4354_v25 }
 0x26c   : > { %5649 = vst [vmem:[#allocation22_spill] sm:$0xff] %v4921_v46  ;;  %v4928_v55 = vpop.eup %3297  ;;  %v1348_v19 = vmul.f32 %v4875_v49, %v1284_v27  ;;  %v1158_v37 = vadd.f32 1.4214138, %v1094_v63  ;;  %3305 = vpow2.f32 %v1723_v35  ;;  %v714_v30 = vand.u32 2147483647, %v4371_v2 }
 0x26d   : > { %v4932_v9 = vpop.eup %3299  ;;  %3307 = vrcp.f32 %v840_v16  ;;  %v4934_v32 = vmul.f32 0.5, %v712_v38  ;;  %v1864_v45 = vmul.f32 0.5, %v4354_v25  ;;  %v1546_v23 = vmul.f32 -0.5, %v4371_v2 }
 0x26e   : > { %v1412_v7 = vadd.f32 0.2548296, %v1348_v19  ;;  %v1222_v14 = vmul.f32 %v4901_v8, %v1158_v37  ;;  %v967_v5 = vmul.f32 1.0614054, %v4932_v9  ;;  %v778_v21 = vmul.f32 0.23164189, %v714_v30 }
 0x26f   : > { %v4941_v63 = vmul.f32 %v4815_v39, %v1477_v59  ;;  %v1721_v4 = vmul.f32 1.442695, %v1608_v36  ;;  %v1610_v35 = vmul.f32 %v1546_v23, %v4371_v2  ;;  %v4944_v29 = vmul.f32 0.5, %v714_v30 }
 0x270   : > { %v1476_v38 = vmul.f32 %v4875_v49, %v1412_v7  ;;  %v1286_v17 = vadd.f32 -0.28449672, %v1222_v14  ;;  %v1031_v25 = vadd.f32 -1.4531521, %v967_v5  ;;  %v842_v27 = vadd.f32 1.0, %v778_v21 }
 0x271   : > { %5650 = vst [vmem:[#allocation27_spill] sm:$0xff] %v4941_v63  ;;  %v4948_v16 = vadd.f32 %v1864_v45, %v4934_v32  ;;  %v1866_v19 = vmul.f32 0.5, %v4371_v2  ;;  %v715_v37 = vand.u32 2147483647, %v4393_v43  ;;  %v1547_v39 = vmul.f32 -0.5, %v4393_v43 }
 0x272   : > { %v1350_v59 = vmul.f32 %v4901_v8, %v1286_v17  ;;  %v1095_v36 = vmul.f32 %v4932_v9, %v1031_v25  ;;  %3309 = vrcp.f32 %v842_v27  ;;  %v1725_v30 = vmul.f32 1.442695, %v1610_v35 }
 0x273   : > { %5651 = vst [vmem:[#allocation112_spill] sm:$0xff] %v4948_v16  ;;  %v4955_v23 = vpop.eup %3301  ;;  %3311 = vpow2.f32 %v1721_v4  ;;  %v4958_v49 = vadd.f32 %v1866_v19, %v4944_v29  ;;  %v779_v45 = vmul.f32 0.23164189, %v715_v37  ;;  %v1611_v7 = vmul.f32 %v1547_v39, %v4393_v43 }
 0x274   : > { %v4961_v2 = vpop.eup %3303  ;;  %v4964_v14 = vmul.f32 %v4837_v53, %v1476_v38  ;;  %v1414_v5 = vadd.f32 0.2548296, %v1350_v59  ;;  %v1159_v21 = vadd.f32 1.4214138, %v1095_v36  ;;  %v969_v17 = vmul.f32 1.0614054, %v4955_v23 }
 0x275   : > { %5652 = vst [vmem:[#allocation113_spill] sm:$0xff] %v4958_v49  ;;  %5653 = vst [vmem:[#allocation114_spill] sm:$0xff] %v4961_v2  ;;  %v843_v25 = vadd.f32 1.0, %v779_v45  ;;  %v1727_v35 = vmul.f32 1.442695, %v1611_v7  ;;  %v4967_v27 = vmul.f32 0.5, %v715_v37  ;;  %3313 = vpow2.f32 %v1725_v30 }
 0x276   : > { %v717_v4 = vand.u32 2147483647, %v4422_v18  ;;  %v4970_v19 = vpop.eup %3305  ;;  %v1223_v46 = vmul.f32 %v4932_v9, %v1159_v21  ;;  %v1033_v39 = vadd.f32 -1.4531521, %v969_v17  ;;  %v1549_v2 = vmul.f32 -0.5, %v4422_v18 }
 0x277   : > { %5654 = vst [vmem:[#allocation115_spill] sm:$0xff] %v4970_v19  ;;  %v4974_v53 = vpop.eup %3307  ;;  %v1478_v38 = vmul.f32 %v4901_v8, %v1414_v5  ;;  %3315 = vrcp.f32 %v843_v25  ;;  %v1867_v59 = vmul.f32 0.5, %v4393_v43  ;;  %v5655_v19 = vld [vmem:[#allocation32_spill] sm:$0xff] }
 0x278   : > { %v781_v36 = vmul.f32 0.23164189, %v717_v4  ;;  %v1287_v37 = vadd.f32 -0.28449672, %v1223_v46  ;;  %v1097_v45 = vmul.f32 %v4955_v23, %v1033_v39  ;;  %v968_v7 = vmul.f32 1.0614054, %v4974_v53 }
 0x279   : > { %v4982_v21 = vmul.f32 %v5655_v19, %v4175_v20  ;;  %3317 = vpow2.f32 %v1727_v35  ;;  %v4985_v30 = vadd.f32 %v1867_v59, %v4967_v27  ;;  %v1613_v8 = vmul.f32 %v1549_v2, %v4422_v18 }
 0x27a   : > { %v845_v17 = vadd.f32 1.0, %v781_v36  ;;  %v1351_v5 = vmul.f32 %v4932_v9, %v1287_v37  ;;  %v1161_v43 = vadd.f32 1.4214138, %v1097_v45  ;;  %v1032_v25 = vadd.f32 -1.4531521, %v968_v7 }
 0x27b   : > { %5656 = vst [vmem:[#allocation32_spill] sm:$0xff] %v4985_v30  ;;  %v716_v46 = vand.u32 2147483647, %v4439_v33  ;;  %v4991_v39 = vmul.f32 %v4862_v13, %v1478_v38  ;;  %v4993_v49 = vmul.f32 0.5, %v717_v4  ;;  %v1548_v20 = vmul.f32 -0.5, %v4439_v33 }
 0x27c   : > { %3319 = vrcp.f32 %v845_v17  ;;  %v4996_v35 = vpop.eup %3309  ;;  %v1415_v19 = vadd.f32 0.2548296, %v1351_v5  ;;  %v1225_v59 = vmul.f32 %v4955_v23, %v1161_v43  ;;  %v1096_v2 = vmul.f32 %v4974_v53, %v1032_v25 }
 0x27d   : > { %v780_v36 = vmul.f32 0.23164189, %v716_v46  ;;  %v5000_v37 = vpop.eup %3311  ;;  %v970_v45 = vmul.f32 1.0614054, %v4996_v35  ;;  %v1731_v7 = vmul.f32 1.442695, %v1613_v8  ;;  %v1612_v4 = vmul.f32 %v1548_v20, %v4439_v33 }
 0x27e   : > { %5657 = vst [vmem:[#allocation116_spill] sm:$0xff] %v5000_v37  ;;  %v1869_v13 = vmul.f32 0.5, %v4422_v18  ;;  %v1479_v38 = vmul.f32 %v4932_v9, %v1415_v19  ;;  %v1289_v17 = vadd.f32 -0.28449672, %v1225_v59  ;;  %v1160_v30 = vadd.f32 1.4214138, %v1096_v2 }
 0x27f   : > { %v844_v16 = vadd.f32 1.0, %v780_v36  ;;  %v1034_v5 = vadd.f32 -1.4531521, %v970_v45  ;;  %v1729_v25 = vmul.f32 1.442695, %v1612_v4  ;;  %v5009_v63 = vmul.f32 0.5, %v716_v46  ;;  %v5011_v37 = vpop.eup %3313 }
 0x280   : > { %v5007_v43 = vadd.f32 %v1869_v13, %v4993_v49  ;;  %5659 = vst [vmem:[#allocation118_spill] sm:$0xff] %v5011_v37  ;;  %v1353_v8 = vmul.f32 %v4955_v23, %v1289_v17  ;;  %v1224_v18 = vmul.f32 %v4974_v53, %v1160_v30  ;;  %v1550_v20 = vmul.f32 -0.5, %v4465_v22 }
 0x281   : > { %3321 = vrcp.f32 %v844_v16  ;;  %v5016_v9 = vpop.eup %3315  ;;  %v1098_v19 = vmul.f32 %v4996_v35, %v1034_v5  ;;  %v1868_v59 = vmul.f32 0.5, %v4439_v33  ;;  %v718_v2 = vand.u32 2147483647, %v4465_v22 }
 0x282   : > { %5658 = vst [vmem:[#allocation117_spill] sm:$0xff] %v5007_v43  ;;  %3323 = vpow2.f32 %v1731_v7  ;;  %v5022_v46 = vmul.f32 %v4879_v50, %v1479_v38  ;;  %v1417_v36 = vadd.f32 0.2548296, %v1353_v8  ;;  %v1288_v45 = vadd.f32 -0.28449672, %v1224_v18 }
 0x283   : > { %v971_v13 = vmul.f32 1.0614054, %v5016_v9  ;;  %v5025_v30 = vpop.eup %3317  ;;  %v1162_v16 = vadd.f32 1.4214138, %v1098_v19  ;;  %3325 = vpow2.f32 %v1729_v25  ;;  %v5028_v4 = vadd.f32 %v1868_v59, %v5009_v63  ;;  %v5663_v25 = vld [vmem:[#allocation42_spill] sm:$0xff] }
 0x284   : > { %5660 = vst [vmem:[#allocation119_spill] sm:$0xff] %v5022_v46  ;;  %5661 = vst [vmem:[#allocation120_spill] sm:$0xff] %v5025_v30  ;;  %v782_v17 = vmul.f32 0.23164189, %v718_v2  ;;  %v1352_v7 = vmul.f32 %v4974_v53, %v1288_v45  ;;  %v1614_v5 = vmul.f32 %v1550_v20, %v4465_v22  ;;  %v5032_v43 = vmul.f32 0.5, %v718_v2  ;;  %v5664_v2 = vld [vmem:[#allocation28_spill] sm:$0xff] }
 0x285   : > { %5662 = vst [vmem:[#allocation121_spill] sm:$0xff] %v5028_v4  ;;  %v1035_v33 = vadd.f32 -1.4531521, %v971_v13  ;;  %v1226_v38 = vmul.f32 %v4996_v35, %v1162_v16  ;;  %v1870_v18 = vmul.f32 0.5, %v4465_v22  ;;  %v2020_v19 = vmul.f32 %v5663_v25, %v4232_v44  ;;  %v5665_v4 = vld [vmem:[#allocation35_spill] sm:$0xff] }
 0x286   : > { %v5034_v50 = vpop.eup %3319  ;;  %v846_v8 = vadd.f32 1.0, %v782_v17  ;;  %v1481_v59 = vmul.f32 %v4955_v23, %v1417_v36  ;;  %v1416_v30 = vadd.f32 0.2548296, %v1352_v7  ;;  %v2080_v46 = vsub.f32 %v5664_v2, %v4982_v21  ;;  %v5667_v36 = vld [vmem:[#allocation36_spill] sm:$0xff] }
 0x287   : > { %v1099_v45 = vmul.f32 %v5016_v9, %v1035_v33  ;;  %v973_v13 = vmul.f32 1.0614054, %v5034_v50  ;;  %v1290_v20 = vadd.f32 -0.28449672, %v1226_v38  ;;  %v2084_v16 = vsub.f32 %v5665_v4, %v2020_v19  ;;  %v5668_v33 = vld [vmem:[#allocation51_spill] sm:$0xff] }
 0x288   : > { %3327 = vrcp.f32 %v846_v8  ;;  %v1733_v22 = vmul.f32 1.442695, %v1614_v5  ;;  %v5047_v1 = vadd.f32 %v1870_v18, %v5032_v43  ;;  %v2018_v7 = vmul.f32 %v5667_v36, %v4195_v60  ;;  %v5669_v38 = vld [vmem:[#allocation43_spill] sm:$0xff]  ;;  %v5671_v60 = vld [vmem:[#allocation29_spill] sm:$0xff] }
 0x289   : > { %v1163_v17 = vadd.f32 1.4214138, %v1099_v45  ;;  %v1037_v37 = vadd.f32 -1.4531521, %v973_v13  ;;  %v1354_v44 = vmul.f32 %v4996_v35, %v1290_v20  ;;  %v2140_v23 = vpack.c.bf16 %v2084_v16, %v2080_v46  ;;  %v5672_v20 = vld [vmem:[#allocation39_spill] sm:$0xff] }
 0x28a   : > { %5666 = vst [vmem:[#allocation42_spill] sm:$0xff] %v5047_v1  ;;  %v2022_v8 = vmul.f32 %v5669_v38, %v5668_v33  ;;  %v1480_v21 = vmul.f32 %v4974_v53, %v1416_v30  ;;  %v719_v18 = vand.u32 2147483647, %v4552_v54  ;;  %v2082_v13 = vsub.f32 %v5671_v60, %v2018_v7 }
 0x28b   : > { %v5054_v25 = vpop.eup %3321  ;;  %v1227_v4 = vmul.f32 %v5016_v9, %v1163_v17  ;;  %v1101_v5 = vmul.f32 %v5034_v50, %v1037_v37  ;;  %v1418_v45 = vadd.f32 0.2548296, %v1354_v44  ;;  %2463 = vmatprep.mubr.bf16.mxu0 %v2140_v23  ;;  %v5066_v16 = vmul.f32 %v4911_v42, %v1481_v59 }
 0x28c   : > { %v5060_v19 = vpop.eup %3323  ;;  %v972_v46 = vmul.f32 1.0614054, %v5054_v25  ;;  %v2086_v2 = vsub.f32 %v5672_v20, %v2022_v8  ;;  %v783_v17 = vmul.f32 0.23164189, %v719_v18  ;;  %3329 = vpow2.f32 %v1733_v22 }
 0x28d   : > { %5670 = vst [vmem:[#allocation28_spill] sm:$0xff] %v5060_v19  ;;  %5673 = vst [vmem:[#allocation35_spill] sm:$0xff] %v5066_v16  ;;  %v1291_v53 = vadd.f32 -0.28449672, %v1227_v4  ;;  %v1165_v30 = vadd.f32 1.4214138, %v1101_v5  ;;  %v5068_v36 = vpop.eup %3325  ;;  %v5072_v38 = vmul.f32 %v4934_v32, %v1480_v21  ;;  %v1482_v42 = vmul.f32 %v4996_v35, %v1418_v45 }
 0x28e   : > { %v1036_v37 = vadd.f32 -1.4531521, %v972_v46  ;;  %v2142_v33 = vpack.c.bf16 %v2086_v2, %v2082_v13  ;;  %v1551_v44 = vmul.f32 -0.5, %v4552_v54  ;;  %v847_v8 = vadd.f32 1.0, %v783_v17 }
 0x28f   : > { %v1355_v23 = vmul.f32 %v5016_v9, %v1291_v53  ;;  %v1229_v7 = vmul.f32 %v5034_v50, %v1165_v30  ;;  %v5079_v5 = vmul.f32 0.5, %v719_v18  ;;  %v721_v32 = vand.u32 2147483647, %v4554_v10 }
 0x290   : > { %v1100_v59 = vmul.f32 %v5054_v25, %v1036_v37  ;;  %2560 = vmatprep.mubr.bf16.mxu1 %v2142_v33  ;;  %v1615_v4 = vmul.f32 %v1551_v44, %v4552_v54  ;;  %3331 = vrcp.f32 %v847_v8  ;;  %v1871_v20 = vmul.f32 0.5, %v4552_v54  ;;  %v5674_v33 = vld [vmem:[#allocation30_spill] sm:$0xff]  ;;  %v5675_v44 = vld [vmem:[#allocation24_spill] sm:$0xff] }
 0x291   : > { %v1419_v22 = vadd.f32 0.2548296, %v1355_v23  ;;  %v1293_v46 = vadd.f32 -0.28449672, %v1229_v7  ;;  %v1553_v35 = vmul.f32 -0.5, %v4554_v10  ;;  %v5090_v30 = vmul.f32 %v4944_v29, %v1482_v42  ;;  %v5679_v29 = vld [vmem:[#allocation37_spill] sm:$0xff] }
 0x292   : > { %v5082_v21 = vpop.eup %3327  ;;  %v1164_v60 = vadd.f32 1.4214138, %v1100_v59  ;;  %v1735_v13 = vmul.f32 1.442695, %v1615_v4  ;;  %v785_v53 = vmul.f32 0.23164189, %v721_v32  ;;  %v2015_v23 = vmul.f32 %v5675_v44, %v5674_v33 }
 0x293   : > { %v1483_v45 = vmul.f32 %v5016_v9, %v1419_v22  ;;  %v1357_v2 = vmul.f32 %v5034_v50, %v1293_v46  ;;  %v974_v18 = vmul.f32 1.0614054, %v5082_v21  ;;  %v1617_v37 = vmul.f32 %v1553_v35, %v4554_v10  ;;  %v5678_v22 = vld [vmem:[#allocation45_spill] sm:$0xff] }
 0x294   : > { %v1228_v17 = vmul.f32 %v5054_v25, %v1164_v60  ;;  %v5097_v8 = vadd.f32 %v1871_v20, %v5079_v5  ;;  %v849_v9 = vadd.f32 1.0, %v785_v53  ;;  %3333 = vpow2.f32 %v1735_v13  ;;  %v5681_v13 = vld [vmem:[#allocation25_spill] sm:$0xff] }
 0x295   : > { %v1421_v54 = vadd.f32 0.2548296, %v1357_v2  ;;  %v1038_v7 = vadd.f32 -1.4531521, %v974_v18  ;;  %v5099_v4 = vmul.f32 0.5, %v721_v32  ;;  %v2019_v42 = vmul.f32 %v5679_v29, %v5678_v22  ;;  %v5682_v53 = vld [vmem:[#allocation33_spill] sm:$0xff] }
 0x296   : > { %5676 = vst [vmem:[#allocation36_spill] sm:$0xff] %v5097_v8  ;;  %v1292_v59 = vadd.f32 -0.28449672, %v1228_v17  ;;  %v5104_v46 = vmul.f32 %v4967_v27, %v1483_v45  ;;  %3335 = vrcp.f32 %v849_v9  ;;  %v1739_v35 = vmul.f32 1.442695, %v1617_v37  ;;  %v5107_v2 = vpop.eup %3329  ;;  %v5683_v27 = vld [vmem:[#allocation40_spill] sm:$0xff] }
 0x297   : > { %5677 = vst [vmem:[#allocation51_spill] sm:$0xff] %v5099_v4  ;;  %v1102_v60 = vmul.f32 %v5082_v21, %v1038_v7  ;;  %v5111_v18 = vmul.f32 0.5, %v4554_v10  ;;  %v2079_v32 = vsub.f32 %v5681_v13, %v2015_v23  ;;  %v2083_v17 = vsub.f32 %v5682_v53, %v2019_v42  ;;  %v5684_v45 = vld [vmem:[#allocation31_spill] sm:$0xff]  ;;  %v5685_v7 = vld [vmem:[#allocation46_spill] sm:$0xff] }
 0x298   : > { %v1356_v20 = vmul.f32 %v5054_v25, %v1292_v59  ;;  %v1485_v33 = vmul.f32 %v5034_v50, %v1421_v54  ;;  %v2017_v22 = vmul.f32 %v5684_v45, %v5683_v27  ;;  %v5686_v9 = vld [vmem:[#allocation38_spill] sm:$0xff]  ;;  %v720_v59 = vand.u32 2147483647, %v4619_v52 }
 0x299   : > { %5680 = vst [vmem:[#allocation43_spill] sm:$0xff] %v5111_v18  ;;  %v1166_v44 = vadd.f32 1.4214138, %v1102_v60  ;;  %v2021_v37 = vmul.f32 %v5686_v9, %v5685_v7  ;;  %v2139_v8 = vpack.c.bf16 %v2083_v17, %v2079_v32  ;;  %v1552_v10 = vmul.f32 -0.5, %v4619_v52  ;;  %v5687_v42 = vld [vmem:[#allocation26_spill] sm:$0xff] }
 0x29a   : > { %v1420_v29 = vadd.f32 0.2548296, %v1356_v20  ;;  %v5122_v18 = vpop.eup %3331  ;;  %3337 = vpow2.f32 %v1739_v35  ;;  %v2081_v50 = vsub.f32 %v5687_v42, %v2017_v22  ;;  %v5688_v54 = vld [vmem:[#allocation34_spill] sm:$0xff]  ;;  %v784_v20 = vmul.f32 0.23164189, %v720_v59 }
 0x29b   : > { %v1230_v23 = vmul.f32 %v5082_v21, %v1166_v44  ;;  %v2085_v60 = vsub.f32 %v5688_v54, %v2021_v37  ;;  %v975_v53 = vmul.f32 1.0614054, %v5122_v18  ;;  %2464 = vmatmul.mubr.bf16.gmra.mrb[36].mxu0 %v2139_v8  ;;  %v1616_v32 = vmul.f32 %v1552_v10, %v4619_v52 }
 0x29c   : > { %v1484_v13 = vmul.f32 %v5054_v25, %v1420_v29  ;;  %v5131_v17 = vmul.f32 %v4993_v49, %v1485_v33  ;;  %v722_v44 = vand.u32 2147483647, %v4621_v31  ;;  %v848_v7 = vadd.f32 1.0, %v784_v20 }
 0x29d   : > { %v1294_v27 = vadd.f32 -0.28449672, %v1230_v23  ;;  %v2141_v45 = vpack.c.bf16 %v2085_v60, %v2081_v50  ;;  %v1039_v35 = vadd.f32 -1.4531521, %v975_v53  ;;  %v5134_v22 = vmul.f32 0.5, %v720_v59 }
 0x29e   : > { %5689 = vst [vmem:[#allocation29_spill] sm:$0xff] %v5131_v17  ;;  %v1872_v9 = vmul.f32 0.5, %v4619_v52  ;;  %v5138_v25 = vmul.f32 %v5009_v63, %v1484_v13  ;;  %v786_v37 = vmul.f32 0.23164189, %v722_v44  ;;  %v1554_v49 = vmul.f32 -0.5, %v4621_v31  ;;  %v5142_v33 = vpop.eup %3333 }
 0x29f   : > { %v1358_v8 = vmul.f32 %v5082_v21, %v1294_v27  ;;  %2561 = vmatmul.mubr.bf16.gmra.mrb[36].mxu1 %v2141_v45  ;;  %5690 = vst [vmem:[#allocation39_spill] sm:$0xff] %v5142_v33  ;;  %v1103_v29 = vmul.f32 %v5122_v18, %v1039_v35  ;;  %3339 = vrcp.f32 %v848_v7  ;;  %v1737_v10 = vmul.f32 1.442695, %v1616_v32 }
 0x2a0   : > { %v5145_v23 = vmul.f32 0.5, %v722_v44  ;;  %v5147_v59 = vpop.eup %3335  ;;  %v850_v42 = vadd.f32 1.0, %v786_v37  ;;  %v1618_v63 = vmul.f32 %v1554_v49, %v4621_v31  ;;  %v1874_v50 = vmul.f32 0.5, %v4621_v31 }
 0x2a1   : > { %v1422_v52 = vadd.f32 0.2548296, %v1358_v8  ;;  %v1167_v54 = vadd.f32 1.4214138, %v1103_v29  ;;  %v977_v60 = vmul.f32 1.0614054, %v5147_v59  ;;  %v5153_v13 = vadd.f32 %v1872_v9, %v5134_v22 }
 0x2a2   : > { %v723_v53 = vand.u32 2147483647, %v4627_v28  ;;  %3341 = vrcp.f32 %v850_v42  ;;  %v1741_v32 = vmul.f32 1.442695, %v1618_v63  ;;  %v1555_v27 = vmul.f32 -0.5, %v4627_v28 }
 0x2a3   : > { %5691 = vst [vmem:[#allocation30_spill] sm:$0xff] %v5153_v13  ;;  %v1486_v20 = vmul.f32 %v5082_v21, %v1422_v52  ;;  %v1231_v45 = vmul.f32 %v5122_v18, %v1167_v54  ;;  %v1041_v44 = vadd.f32 -1.4531521, %v977_v60  ;;  %3343 = vpow2.f32 %v1737_v10 }
 0x2a4   : > { %v787_v35 = vmul.f32 0.23164189, %v723_v53  ;;  %v5159_v31 = vpop.eup %3337  ;;  %v5165_v9 = vadd.f32 %v1874_v50, %v5145_v23  ;;  %v1619_v8 = vmul.f32 %v1555_v27, %v4627_v28  ;;  %v5168_v21 = vmul.f32 0.5, %v723_v53  ;;  %v5695_v27 = vld [vmem:[#allocation93_spill] sm:$0xff] }
 0x2a5   : > { %5692 = vst [vmem:[#allocation24_spill] sm:$0xff] %v5159_v31  ;;  %v5162_v7 = vmul.f32 %v5032_v43, %v1486_v20  ;;  %v1295_v37 = vadd.f32 -0.28449672, %v1231_v45  ;;  %v1105_v49 = vmul.f32 %v5147_v59, %v1041_v44  ;;  %v725_v52 = vand.u32 2147483647, %v4629_v0 }
 0x2a6   : > { %5693 = vst [vmem:[#allocation45_spill] sm:$0xff] %v5165_v9  ;;  %v851_v29 = vadd.f32 1.0, %v787_v35  ;;  %3345 = vpow2.f32 %v1741_v32  ;;  %v1743_v10 = vmul.f32 1.442695, %v1619_v8  ;;  %v1875_v42 = vmul.f32 0.5, %v4627_v28 }
 0x2a7   : > { %v1557_v43 = vmul.f32 -0.5, %v4629_v0  ;;  %v1359_v63 = vmul.f32 %v5122_v18, %v1295_v37  ;;  %v1169_v50 = vadd.f32 1.4214138, %v1105_v49  ;;  %v789_v54 = vmul.f32 0.23164189, %v725_v52 }
 0x2a8   : > { %3347 = vrcp.f32 %v851_v29  ;;  %v5176_v60 = vadd.f32 %v1875_v42, %v5168_v21  ;;  %v5179_v20 = vmul.f32 0.5, %v725_v52  ;;  %v724_v45 = vand.u32 2147483647, %v5695_v27 }
 0x2a9   : > { %v1621_v53 = vmul.f32 %v1557_v43, %v4629_v0  ;;  %v5182_v32 = vpop.eup %3339  ;;  %v1423_v44 = vadd.f32 0.2548296, %v1359_v63  ;;  %v1233_v28 = vmul.f32 %v5147_v59, %v1169_v50  ;;  %v853_v35 = vadd.f32 1.0, %v789_v54 }
 0x2aa   : > { %5694 = vst [vmem:[#allocation37_spill] sm:$0xff] %v5176_v60  ;;  %v1556_v8 = vmul.f32 -0.5, %v5695_v27  ;;  %v976_v37 = vmul.f32 1.0614054, %v5182_v32  ;;  %3349 = vpow2.f32 %v1743_v10  ;;  %v788_v29 = vmul.f32 0.23164189, %v724_v45 }
 0x2ab   : > { %v1747_v49 = vmul.f32 1.442695, %v1621_v53  ;;  %v1487_v42 = vmul.f32 %v5122_v18, %v1423_v44  ;;  %v1297_v43 = vadd.f32 -0.28449672, %v1233_v28  ;;  %3351 = vrcp.f32 %v853_v35 }
 0x2ac   : > { %v1620_v52 = vmul.f32 %v1556_v8, %v5695_v27  ;;  %v5189_v60 = vpop.eup %3341  ;;  %v1040_v31 = vadd.f32 -1.4531521, %v976_v37  ;;  %v852_v63 = vadd.f32 1.0, %v788_v29  ;;  %v5191_v50 = vmul.f32 0.5, %v724_v45 }
 0x2ad   : > { %3353 = vpow2.f32 %v1747_v49  ;;  %v5193_v54 = vpop.eup %3343  ;;  %v5196_v33 = vmul.f32 %v5079_v5, %v1487_v42  ;;  %v1361_v10 = vmul.f32 %v5147_v59, %v1297_v43  ;;  %v978_v18 = vmul.f32 1.0614054, %v5189_v60 }
 0x2ae   : > { %5696 = vst [vmem:[#allocation25_spill] sm:$0xff] %v5193_v54  ;;  %v1745_v53 = vmul.f32 1.442695, %v1620_v52  ;;  %v1104_v44 = vmul.f32 %v5182_v32, %v1040_v31  ;;  %3355 = vrcp.f32 %v852_v63  ;;  %v1876_v28 = vmul.f32 0.5, %v5695_v27 }
 0x2af   : > { %5697 = vst [vmem:[#allocation33_spill] sm:$0xff] %v5196_v33  ;;  %v726_v35 = vand.u32 2147483647, %v4670_v47  ;;  %v1425_v8 = vadd.f32 0.2548296, %v1361_v10  ;;  %v1558_v37 = vmul.f32 -0.5, %v4670_v47 }
 0x2b0   : > { %v1042_v45 = vadd.f32 -1.4531521, %v978_v18  ;;  %3357 = vpow2.f32 %v1745_v53  ;;  %v5204_v49 = vpop.eup %3345  ;;  %v1168_v5 = vadd.f32 1.4214138, %v1104_v44  ;;  %v5207_v29 = vadd.f32 %v1876_v28, %v5191_v50  ;;  %v5700_v28 = vld [vmem:[#allocation63_spill] sm:$0xff]  ;;  %v5701_v33 = vld [vmem:[#allocation53_spill] sm:$0xff] }
 0x2b1   : > { %5698 = vst [vmem:[#allocation40_spill] sm:$0xff] %v5204_v49  ;;  %v790_v42 = vmul.f32 0.23164189, %v726_v35  ;;  %v5209_v43 = vmul.f32 0.5, %v726_v35  ;;  %v1489_v27 = vmul.f32 %v5147_v59, %v1425_v8  ;;  %v1622_v63 = vmul.f32 %v1558_v37, %v4670_v47  ;;  %v5705_v37 = vld [vmem:[#allocation71_spill] sm:$0xff] }
 0x2b2   : > { %5699 = vst [vmem:[#allocation31_spill] sm:$0xff] %v5207_v29  ;;  %v5211_v31 = vpop.eup %3347  ;;  %v1106_v52 = vmul.f32 %v5189_v60, %v1042_v45  ;;  %v1878_v10 = vmul.f32 0.5, %v4670_v47  ;;  %v1232_v18 = vmul.f32 %v5182_v32, %v1168_v5  ;;  %v2024_v9 = vmul.f32 %v5701_v33, %v5700_v28  ;;  %v5706_v5 = vld [vmem:[#allocation64_spill] sm:$0xff] }
 0x2b3   : > { %v979_v53 = vmul.f32 1.0614054, %v5211_v31  ;;  %v854_v44 = vadd.f32 1.0, %v790_v42  ;;  %v5222_v35 = vmul.f32 %v5099_v4, %v1489_v27  ;;  %v1749_v13 = vmul.f32 1.442695, %v1622_v63  ;;  %v5707_v27 = vld [vmem:[#allocation48_spill] sm:$0xff] }
 0x2b4   : > { %v1170_v29 = vadd.f32 1.4214138, %v1106_v52  ;;  %v5225_v59 = vadd.f32 %v1878_v10, %v5209_v43  ;;  %v5227_v8 = vpop.eup %3349  ;;  %v1296_v45 = vadd.f32 -0.28449672, %v1232_v18  ;;  %v2028_v49 = vmul.f32 %v5706_v5, %v5705_v37  ;;  %v5708_v52 = vld [vmem:[#allocation67_spill] sm:$0xff]  ;;  %v5709_v63 = vld [vmem:[#allocation56_spill] sm:$0xff] }
 0x2b5   : > { %5702 = vst [vmem:[#allocation46_spill] sm:$0xff] %v5222_v35  ;;  %5704 = vst [vmem:[#allocation26_spill] sm:$0xff] %v5227_v8  ;;  %v1043_v47 = vadd.f32 -1.4531521, %v979_v53  ;;  %3359 = vrcp.f32 %v854_v44  ;;  %v5231_v42 = vpop.eup %3351  ;;  %v2088_v28 = vsub.f32 %v5707_v27, %v2024_v9  ;;  %v2026_v4 = vmul.f32 %v5709_v63, %v5708_v52  ;;  %v5711_v44 = vld [vmem:[#allocation57_spill] sm:$0xff]  ;;  %v5712_v8 = vld [vmem:[#allocation20_spill] sm:$0xff] }
 0x2b6   : > { %5703 = vst [vmem:[#allocation38_spill] sm:$0xff] %v5225_v59  ;;  %v1234_v33 = vmul.f32 %v5189_v60, %v1170_v29  ;;  %3361 = vpow2.f32 %v1749_v13  ;;  %v1360_v35 = vmul.f32 %v5182_v32, %v1296_v45  ;;  %v981_v53 = vmul.f32 1.0614054, %v5231_v42  ;;  %v5713_v59 = vld [vmem:[#allocation65_spill] sm:$0xff]  ;;  %v5714_v13 = vld [vmem:[#allocation50_spill] sm:$0xff]  ;;  %v5716_v27 = vld [vmem:[#allocation47_spill] sm:$0xff] }
 0x2b7   : > { %v5237_v10 = vpop.eup %3353  ;;  %v1107_v18 = vmul.f32 %v5211_v31, %v1043_v47  ;;  %v2092_v37 = vsub.f32 %v5711_v44, %v2028_v49  ;;  %v2030_v29 = vmul.f32 %v5713_v59, %v5712_v8  ;;  %v2090_v54 = vsub.f32 %v5714_v13, %v2026_v4  ;;  %v5715_v9 = vld [vmem:[#allocation54_spill] sm:$0xff]  ;;  %v5719_v59 = vld [vmem:[#allocation15_spill] sm:$0xff]  ;;  %v5720_v8 = vld [vmem:[#allocation60_spill] sm:$0xff] }
 0x2b8   : > { %5710 = vst [vmem:[#allocation34_spill] sm:$0xff] %v5237_v10  ;;  %v1298_v5 = vadd.f32 -0.28449672, %v1234_v33  ;;  %v2023_v1 = vmul.f32 %v5716_v27, %v5715_v9  ;;  %v5248_v52 = vpop.eup %3355  ;;  %v1424_v63 = vadd.f32 0.2548296, %v1360_v35  ;;  %v5718_v33 = vld [vmem:[#allocation59_spill] sm:$0xff]  ;;  %v2027_v4 = vmul.f32 %v5720_v8, %v5719_v59 }
 0x2b9   : > { %v1171_v10 = vadd.f32 1.4214138, %v1107_v18  ;;  %v1045_v45 = vadd.f32 -1.4531521, %v981_v53  ;;  %v2144_v19 = vpack.c.bf16 %v2092_v37, %v2088_v28  ;;  %v980_v49 = vmul.f32 1.0614054, %v5248_v52 }
 0x2ba   : > { %v5250_v47 = vpop.eup %3357  ;;  %v1362_v17 = vmul.f32 %v5189_v60, %v1298_v5  ;;  %v2094_v44 = vsub.f32 %v5718_v33, %v2030_v29  ;;  %v1488_v13 = vmul.f32 %v5182_v32, %v1424_v63  ;;  %v5721_v18 = vld [vmem:[#allocation41_spill] sm:$0xff]  ;;  %v5722_v5 = vld [vmem:[#allocation52_spill] sm:$0xff]  ;;  %v5723_v59 = vld [vmem:[#allocation58_spill] sm:$0xff] }
 0x2bb   : > { %5717 = vst [vmem:[#allocation93_spill] sm:$0xff] %v5250_v47  ;;  %v1235_v9 = vmul.f32 %v5211_v31, %v1171_v10  ;;  %v1109_v35 = vmul.f32 %v5231_v42, %v1045_v45  ;;  %2471 = vmatprep.mubr.bf16.mxu0 %v2144_v19  ;;  %v2087_v28 = vsub.f32 %v5721_v18, %v2023_v1  ;;  %v1044_v37 = vadd.f32 -1.4531521, %v980_v49  ;;  %v5724_v8 = vld [vmem:[#allocation49_spill] sm:$0xff] }
 0x2bc   : > { %v1426_v53 = vadd.f32 0.2548296, %v1362_v17  ;;  %v2146_v27 = vpack.c.bf16 %v2094_v44, %v2090_v54  ;;  %v2091_v47 = vsub.f32 %v5722_v5, %v2027_v4  ;;  %v5263_v16 = vmul.f32 %v5134_v22, %v1488_v13  ;;  %v5725_v1 = vld [vmem:[#allocation69_spill] sm:$0xff]  ;;  %v5727_v44 = vld [vmem:[#allocation44_spill] sm:$0xff]  ;;  %v5728_v13 = vld [vmem:[#allocation78_spill] sm:$0xff] }
 0x2bd   : > { %v1299_v29 = vadd.f32 -0.28449672, %v1235_v9  ;;  %v1173_v33 = vadd.f32 1.4214138, %v1109_v35  ;;  %v2025_v32 = vmul.f32 %v5724_v8, %v5723_v59  ;;  %v1108_v63 = vmul.f32 %v5248_v52, %v1044_v37  ;;  %v5726_v17 = vld [vmem:[#allocation61_spill] sm:$0xff]  ;;  %v5729_v9 = vld [vmem:[#allocation19_spill] sm:$0xff] }
 0x2be   : > { %v1490_v10 = vmul.f32 %v5189_v60, %v1426_v53  ;;  %2568 = vmatprep.mubr.bf16.mxu1 %v2146_v27  ;;  %v2143_v19 = vpack.c.bf16 %v2091_v47, %v2087_v28  ;;  %v2029_v45 = vmul.f32 %v5726_v17, %v5725_v1  ;;  %v2032_v35 = vmul.f32 %v5729_v9, %v5728_v13  ;;  %v5730_v53 = vld [vmem:[#allocation55_spill] sm:$0xff]  ;;  %v5733_v8 = vld [vmem:[#allocation68_spill] sm:$0xff]  ;;  %v5734_v13 = vld [vmem:[#allocation82_spill] sm:$0xff] }
 0x2bf   : > { %v5271_v54 = vpop.eup %3359  ;;  %v1363_v49 = vmul.f32 %v5211_v31, %v1299_v29  ;;  %v1237_v22 = vmul.f32 %v5231_v42, %v1173_v33  ;;  %v2089_v4 = vsub.f32 %v5727_v44, %v2025_v32  ;;  %v1172_v47 = vadd.f32 1.4214138, %v1108_v63  ;;  %v5731_v29 = vld [vmem:[#allocation91_spill] sm:$0xff]  ;;  %v5732_v33 = vld [vmem:[#allocation81_spill] sm:$0xff]  ;;  %v5736_v9 = vld [vmem:[#allocation76_spill] sm:$0xff] }
 0x2c0   : > { %v5278_v18 = vpop.eup %3361  ;;  %v5281_v60 = vmul.f32 %v5145_v23, %v1490_v10  ;;  %v982_v28 = vmul.f32 1.0614054, %v5271_v54  ;;  %2472 = vmatmul.mubr.bf16.gmra.mrb[40].mxu0 %v2143_v19  ;;  %v2093_v37 = vsub.f32 %v5730_v53, %v2029_v45  ;;  %v2036_v59 = vmul.f32 %v5732_v33, %v5731_v29  ;;  %v5735_v23 = vld [vmem:[#allocation75_spill] sm:$0xff] }
 0x2c1   : > { %v1427_v27 = vadd.f32 0.2548296, %v1363_v49  ;;  %v1301_v5 = vadd.f32 -0.28449672, %v1237_v22  ;;  %v2096_v32 = vsub.f32 %v5733_v8, %v2032_v35  ;;  %v1236_v1 = vmul.f32 %v5248_v52, %v1172_v47  ;;  %v5737_v49 = vld [vmem:[#allocation84_spill] sm:$0xff]  ;;  %v5738_v35 = vld [vmem:[#allocation18_spill] sm:$0xff] }
 0x2c2   : > { %v1046_v17 = vadd.f32 -1.4531521, %v982_v28  ;;  %v2145_v44 = vpack.c.bf16 %v2093_v37, %v2089_v4  ;;  %v2034_v10 = vmul.f32 %v5735_v23, %v5734_v13  ;;  %v2100_v45 = vsub.f32 %v5736_v9, %v2036_v59  ;;  %v5739_v28 = vld [vmem:[#allocation73_spill] sm:$0xff]  ;;  %v5740_v4 = vld [vmem:[#allocation14_spill] sm:$0xff] }
 0x2c3   : > { %v1491_v63 = vmul.f32 %v5211_v31, %v1427_v27  ;;  %v1365_v19 = vmul.f32 %v5231_v42, %v1301_v5  ;;  %v2038_v22 = vmul.f32 %v5737_v49, %v4648_v34  ;;  %v1300_v53 = vadd.f32 -0.28449672, %v1236_v1  ;;  %v5741_v5 = vld [vmem:[#allocation79_spill] sm:$0xff]  ;;  %v5742_v34 = vld [vmem:[#allocation86_spill] sm:$0xff]  ;;  %v5743_v1 = vld [vmem:[#allocation77_spill] sm:$0xff] }
 0x2c4   : > { %v1110_v29 = vmul.f32 %v5271_v54, %v1046_v17  ;;  %2569 = vmatmul.mubr.bf16.gmra.mrb[40].mxu1 %v2145_v44  ;;  %v2098_v47 = vsub.f32 %v5738_v35, %v2034_v10  ;;  %v2031_v37 = vmul.f32 %v5740_v4, %v5739_v28  ;;  %v2148_v27 = vpack.c.bf16 %v2100_v45, %v2096_v32  ;;  %v5744_v17 = vld [vmem:[#allocation62_spill] sm:$0xff]  ;;  %v5745_v49 = vld [vmem:[#allocation21_spill] sm:$0xff]  ;;  %v5750_v28 = vld [vmem:[#allocation92_spill] sm:$0xff] }
 0x2c5   : > { %v5301_v33 = vmul.f32 %v5168_v21, %v1491_v63  ;;  %v1429_v31 = vadd.f32 0.2548296, %v1365_v19  ;;  %v2102_v8 = vsub.f32 %v5741_v5, %v2038_v22  ;;  %v1364_v59 = vmul.f32 %v5248_v52, %v1300_v53  ;;  %v5746_v35 = vld [vmem:[#allocation70_spill] sm:$0xff]  ;;  %v5747_v63 = vld [vmem:[#allocation88_spill] sm:$0xff] }
 0x2c6   : > { %v1174_v13 = vadd.f32 1.4214138, %v1110_v29  ;;  %v2035_v23 = vmul.f32 %v5743_v1, %v5742_v34  ;;  %v2095_v44 = vsub.f32 %v5744_v17, %v2031_v37  ;;  %2479 = vmatprep.mubr.bf16.mxu0 %v2148_v27  ;;  %v2033_v21 = vmul.f32 %v5746_v35, %v5745_v49  ;;  %v5748_v19 = vld [vmem:[#allocation80_spill] sm:$0xff]  ;;  %v5753_v34 = vld [vmem:[#allocation85_spill] sm:$0xff]  ;;  %v5754_v17 = vld [vmem:[#allocation95_spill] sm:$0xff] }
 0x2c7   : > { %v1493_v10 = vmul.f32 %v5231_v42, %v1429_v31  ;;  %v2150_v9 = vpack.c.bf16 %v2102_v8, %v2098_v47  ;;  %v2037_v32 = vmul.f32 %v5748_v19, %v5747_v63  ;;  %v1428_v45 = vadd.f32 0.2548296, %v1364_v59  ;;  %v5749_v53 = vld [vmem:[#allocation72_spill] sm:$0xff]  ;;  %v5751_v42 = vld [vmem:[#allocation66_spill] sm:$0xff] }
 0x2c8   : > { %v1238_v22 = vmul.f32 %v5271_v54, %v1174_v13  ;;  %v2099_v29 = vsub.f32 %v5749_v53, %v2035_v23  ;;  %v2040_v4 = vmul.f32 %v5750_v28, %v4707_v12  ;;  %v2097_v47 = vsub.f32 %v5751_v42, %v2033_v21  ;;  %v5752_v31 = vld [vmem:[#allocation74_spill] sm:$0xff]  ;;  %v5757_v21 = vld [vmem:[#allocation89_spill] sm:$0xff]  ;;  %v5763_v28 = vld [vmem:[#allocation104_spill] sm:$0xff] }
 0x2c9   : > { %v5318_v37 = vmul.f32 %v5179_v20, %v1493_v10  ;;  %2576 = vmatprep.mubr.bf16.mxu1 %v2150_v9  ;;  %v2101_v27 = vsub.f32 %v5752_v31, %v2037_v32  ;;  %v2044_v5 = vmul.f32 %v4728_v51, %v4800_v58  ;;  %v1492_v8 = vmul.f32 %v5248_v52, %v1428_v45  ;;  %v5755_v58 = vld [vmem:[#allocation87_spill] sm:$0xff]  ;;  %v5759_v32 = vld [vmem:[#allocation96_spill] sm:$0xff]  ;;  %v5762_v53 = vld [vmem:[#allocation17_spill] sm:$0xff] }
 0x2ca   : > { %v1302_v59 = vadd.f32 -0.28449672, %v1238_v22  ;;  %v2147_v13 = vpack.c.bf16 %v2099_v29, %v2095_v44  ;;  %v2104_v1 = vsub.f32 %v5753_v34, %v2040_v4  ;;  %v2042_v10 = vmul.f32 %v5754_v17, %v4736_v11  ;;  %v5756_v44 = vld [vmem:[#allocation97_spill] sm:$0xff]  ;;  %v5758_v11 = vld [vmem:[#allocation98_spill] sm:$0xff]  ;;  %v5761_v45 = vld [vmem:[#allocation12_spill] sm:$0xff] }
 0x2cb   : > { %v2149_v23 = vpack.c.bf16 %v2101_v27, %v2097_v47  ;;  %v2108_v12 = vsub.f32 %v4679_v41, %v2044_v5  ;;  %v2046_v9 = vmul.f32 %v4748_v3, %v4824_v48  ;;  %v5332_v49 = vmul.f32 %v5191_v50, %v1492_v8  ;;  %v5760_v3 = vld [vmem:[#allocation90_spill] sm:$0xff]  ;;  %v5764_v4 = vld [vmem:[#allocation99_spill] sm:$0xff]  ;;  %v5766_v31 = vld [vmem:[#allocation108_spill] sm:$0xff] }
 0x2cc   : > { %v1366_v51 = vmul.f32 %v5271_v54, %v1302_v59  ;;  %2480 = vmatmul.mubr.bf16.gmra.mrb[44].mxu0 %v2147_v13  ;;  %v2039_v52 = vmul.f32 %v5755_v58, %v4664_v56  ;;  %v2043_v35 = vmul.f32 %v5756_v44, %v4763_v24  ;;  %v2106_v63 = vsub.f32 %v5757_v21, %v2042_v10  ;;  %v5765_v24 = vld [vmem:[#allocation83_spill] sm:$0xff]  ;;  %v5767_v13 = vld [vmem:[#allocation94_spill] sm:$0xff]  ;;  %v5775_v21 = vld [vmem:[#allocation105_spill] sm:$0xff] }
 0x2cd   : > { %2577 = vmatmul.mubr.bf16.gmra.mrb[44].mxu1 %v2149_v23  ;;  %v2152_v41 = vpack.c.bf16 %v2108_v12, %v2104_v1  ;;  %v2110_v19 = vsub.f32 %v5758_v11, %v2046_v9  ;;  %v2041_v48 = vmul.f32 %v5760_v3, %v5759_v32  ;;  %v2045_v56 = vmul.f32 %v5764_v4, %v5763_v28  ;;  %v5768_v23 = vld [vmem:[#allocation102_spill] sm:$0xff]  ;;  %v5778_v11 = vld [vmem:[#allocation16_spill] sm:$0xff]  ;;  %v5782_v28 = vld [vmem:[#allocation109_spill] sm:$0xff] }
 0x2ce   : > { %v1430_v50 = vadd.f32 0.2548296, %v1366_v51  ;;  %v2103_v22 = vsub.f32 %v5761_v45, %v2039_v52  ;;  %v2107_v29 = vsub.f32 %v5762_v53, %v2043_v35  ;;  %v2048_v27 = vmul.f32 %v5766_v31, %v4894_v40  ;;  %v5769_v40 = vld [vmem:[#allocation103_spill] sm:$0xff]  ;;  %v5771_v58 = vld [vmem:[#allocation110_spill] sm:$0xff]  ;;  %v5773_v35 = vld [vmem:[#allocation100_spill] sm:$0xff] }
 0x2cf   : > { %2487 = vmatprep.mubr.bf16.mxu0 %v2152_v41  ;;  %v2154_v42 = vpack.c.bf16 %v2110_v19, %v2106_v63  ;;  %v2105_v47 = vsub.f32 %v5765_v24, %v2041_v48  ;;  %v2052_v5 = vmul.f32 %v4891_v61, %v4964_v14  ;;  %v2109_v34 = vsub.f32 %v5767_v13, %v2045_v56  ;;  %v5779_v19 = vld [vmem:[#allocation116_spill] sm:$0xff]  ;;  %v5784_v24 = vld [vmem:[#allocation121_spill] sm:$0xff]  ;;  %v5787_v31 = vld [vmem:[#allocation114_spill] sm:$0xff] }
 0x2d0   : > { %v1494_v8 = vmul.f32 %v5271_v54, %v1430_v50  ;;  %v2151_v59 = vpack.c.bf16 %v2107_v29, %v2103_v22  ;;  %v2050_v1 = vmul.f32 %v4830_v15, %v4904_v57  ;;  %v2112_v12 = vsub.f32 %v5768_v23, %v2048_v27  ;;  %v5770_v54 = vld [vmem:[#allocation106_spill] sm:$0xff]  ;;  %v5772_v57 = vld [vmem:[#allocation23_spill] sm:$0xff]  ;;  %v5780_v50 = vld [vmem:[#allocation101_spill] sm:$0xff] }
 0x2d1   : > { %2584 = vmatprep.mubr.bf16.mxu1 %v2154_v42  ;;  %v2116_v17 = vsub.f32 %v4852_v26, %v2052_v5  ;;  %v2054_v10 = vmul.f32 %v4928_v55, %v4991_v39  ;;  %v2047_v9 = vmul.f32 %v5769_v40, %v4845_v62  ;;  %v2153_v14 = vpack.c.bf16 %v2109_v34, %v2105_v47  ;;  %v5774_v26 = vld [vmem:[#allocation111_spill] sm:$0xff]  ;;  %v5781_v22 = vld [vmem:[#allocation118_spill] sm:$0xff]  ;;  %v5783_v56 = vld [vmem:[#allocation112_spill] sm:$0xff] }
 0x2d2   : > { %v2006_v61 = vmul.f32 %v5209_v43, %v1494_v8  ;;  %v2114_v51 = vsub.f32 %v5770_v54, %v2050_v1  ;;  %v2051_v52 = vmul.f32 %v5771_v58, %v4924_v6  ;;  %v2049_v63 = vmul.f32 %v5775_v21, %v5774_v26  ;;  %v5776_v55 = vld [vmem:[#allocation107_spill] sm:$0xff]  ;;  %v5788_v5 = vld [vmem:[#allocation120_spill] sm:$0xff]  ;;  %v5791_v23 = vld [vmem:[#allocation29_spill] sm:$0xff] }
 0x2d3   : > { %v2156_v15 = vpack.c.bf16 %v2116_v17, %v2112_v12  ;;  %v2118_v44 = vsub.f32 %v5772_v57, %v2054_v10  ;;  %v2111_v41 = vsub.f32 %v5773_v35, %v2047_v9  ;;  %v5777_v62 = vld [vmem:[#allocation27_spill] sm:$0xff]  ;;  %v2056_v32 = vmul.f32 %v5779_v19, %v5072_v38  ;;  %v5792_v12 = vld [vmem:[#allocation28_spill] sm:$0xff]  ;;  %v5793_v10 = vld [vmem:[#allocation42_spill] sm:$0xff] }
 0x2d4   : > { %2488 = vmatmul.mubr.bf16.gmra.mrb[48].mxu0 %v2151_v59  ;;  %v2115_v39 = vsub.f32 %v5776_v55, %v2051_v52  ;;  %v2053_v43 = vmul.f32 %v5778_v11, %v5777_v62  ;;  %v2060_v6 = vmul.f32 %v5068_v36, %v5138_v25  ;;  %v1877_v3 = vmul.f32 0.5, %v4629_v0  ;;  %v5785_v0 = vld [vmem:[#allocation113_spill] sm:$0xff]  ;;  %v5786_v47 = vld [vmem:[#allocation119_spill] sm:$0xff]  ;;  %v5797_v58 = vld [vmem:[#allocation22_spill] sm:$0xff] }
 0x2d5   : > { %2585 = vmatmul.mubr.bf16.gmra.mrb[48].mxu1 %v2153_v14  ;;  %2495 = vmatprep.mubr.bf16.mxu0 %v2156_v15  ;;  %v2158_v48 = vpack.c.bf16 %v2118_v44, %v2114_v51  ;;  %v2113_v45 = vsub.f32 %v5780_v50, %v2049_v63  ;;  %v2058_v53 = vmul.f32 %v5781_v22, %v5090_v30  ;;  %v5789_v13 = vld [vmem:[#allocation35_spill] sm:$0xff]  ;;  %v5794_v9 = vld [vmem:[#allocation13_spill] sm:$0xff]  ;;  %v5800_v35 = vld [vmem:[#allocation40_spill] sm:$0xff] }
 0x2d6   : > { %v2155_v29 = vpack.c.bf16 %v2115_v39, %v2111_v41  ;;  %v2117_v4 = vsub.f32 %v5782_v28, %v2053_v43  ;;  %v2120_v42 = vsub.f32 %v5783_v56, %v2056_v32  ;;  %v2124_v38 = vsub.f32 %v5784_v24, %v2060_v6  ;;  %v5790_v34 = vld [vmem:[#allocation115_spill] sm:$0xff]  ;;  %v5796_v54 = vld [vmem:[#allocation25_spill] sm:$0xff]  ;;  %v5801_v63 = vld [vmem:[#allocation30_spill] sm:$0xff] }
 0x2d7   : > { %2592 = vmatprep.mubr.bf16.mxu1 %v2158_v48  ;;  %v2062_v36 = vmul.f32 %v5107_v2, %v5162_v7  ;;  %v2122_v25 = vsub.f32 %v5785_v0, %v2058_v53  ;;  %v2055_v27 = vmul.f32 %v5787_v31, %v5786_v47  ;;  %v2059_v8 = vmul.f32 %v5788_v5, %v5104_v46  ;;  %v5795_v7 = vld [vmem:[#allocation32_spill] sm:$0xff]  ;;  %v5798_v46 = vld [vmem:[#allocation117_spill] sm:$0xff]  ;;  %v5802_v11 = vld [vmem:[#allocation31_spill] sm:$0xff] }
 0x2d8   : > { %v2157_v30 = vpack.c.bf16 %v2117_v4, %v2113_v45  ;;  %v2160_v59 = vpack.c.bf16 %v2124_v38, %v2120_v42  ;;  %v2057_v1 = vmul.f32 %v5790_v34, %v5789_v13  ;;  %v2061_v17 = vmul.f32 %v5792_v12, %v5791_v23  ;;  %v5799_v57 = vld [vmem:[#allocation93_spill] sm:$0xff]  ;;  %v5805_v6 = vld [vmem:[#allocation39_spill] sm:$0xff]  ;;  %v5808_v22 = vld [vmem:[#allocation46_spill] sm:$0xff] }
 0x2d9   : > { %v2126_v40 = vsub.f32 %v5793_v10, %v2062_v36  ;;  %v2119_v2 = vsub.f32 %v5794_v9, %v2055_v27  ;;  %v2123_v14 = vsub.f32 %v5795_v7, %v2059_v8  ;;  %v2064_v51 = vmul.f32 %v5796_v54, %v5263_v16  ;;  %v5803_v43 = vld [vmem:[#allocation45_spill] sm:$0xff]  ;;  %v5809_v53 = vld [vmem:[#allocation24_spill] sm:$0xff]  ;;  %v5812_v42 = vld [vmem:[#allocation34_spill] sm:$0xff] }
 0x2da   : > { %v2121_v52 = vsub.f32 %v5797_v58, %v2057_v1  ;;  %v2125_v15 = vsub.f32 %v5798_v46, %v2061_v17  ;;  %v2068_v44 = vmul.f32 %v5799_v57, %v5332_v49  ;;  %v2066_v41 = vmul.f32 %v5800_v35, %v5281_v60  ;;  %v5804_v32 = vld [vmem:[#allocation33_spill] sm:$0xff]  ;;  %v5806_v49 = vld [vmem:[#allocation38_spill] sm:$0xff]  ;;  %v5813_v36 = vld [vmem:[#allocation36_spill] sm:$0xff] }
 0x2db   : > { %v2162_v26 = vpack.c.bf16 %v2126_v40, %v2122_v25  ;;  %v2159_v21 = vpack.c.bf16 %v2123_v14, %v2119_v2  ;;  %v2128_v55 = vsub.f32 %v5801_v63, %v2064_v51  ;;  %v2070_v39 = vmul.f32 %v5278_v18, %v2006_v61  ;;  %v5807_v60 = vld [vmem:[#allocation26_spill] sm:$0xff]  ;;  %v5810_v18 = vld [vmem:[#allocation51_spill] sm:$0xff]  ;;  %v5814_v25 = vld [vmem:[#allocation37_spill] sm:$0xff] }
 0x2dc   : > { %2496 = vmatmul.mubr.bf16.gmra.mrb[52].mxu0 %v2155_v29  ;;  %v2161_v62 = vpack.c.bf16 %v2125_v15, %v2121_v52  ;;  %v2132_v16 = vsub.f32 %v5802_v11, %v2068_v44  ;;  %v2130_v19 = vsub.f32 %v5803_v43, %v2066_v41  ;;  %v2063_v48 = vmul.f32 %v5805_v6, %v5804_v32  ;;  %v5811_v61 = vld [vmem:[#allocation43_spill] sm:$0xff] }
 0x2dd   : > { %2593 = vmatmul.mubr.bf16.gmra.mrb[52].mxu1 %v2157_v30  ;;  %2503 = vmatprep.mubr.bf16.mxu0 %v2160_v59  ;;  %v2134_v50 = vsub.f32 %v5806_v49, %v2070_v39  ;;  %v2067_v45 = vmul.f32 %v5807_v60, %v5301_v33  ;;  %v2065_v28 = vmul.f32 %v5809_v53, %v5808_v22 }
 0x2de   : > { %v1937_v29 = vadd.f32 %v5811_v61, %v5810_v18  ;;  %v1941_v4 = vadd.f32 %v1877_v3, %v5179_v20  ;;  %2600 = vmatprep.mubr.bf16.mxu1 %v2162_v26  ;;  %v2164_v56 = vpack.c.bf16 %v2132_v16, %v2128_v55  ;;  %v2069_v24 = vmul.f32 %v5812_v42, %v5318_v37 }
 0x2df   : > { %v2166_v38 = vpack.c.bf16 %v2134_v50, %v2130_v19  ;;  %v2127_v0 = vsub.f32 %v5813_v36, %v2063_v48  ;;  %v2131_v47 = vsub.f32 %v5814_v25, %v2067_v45 }
 0x2e0   : > { %v2129_v31 = vsub.f32 %v1937_v29, %v2065_v28  ;;  %v2133_v33 = vsub.f32 %v1941_v4, %v2069_v24 }
 0x2e1   : > { %v2163_v27 = vpack.c.bf16 %v2131_v47, %v2127_v0 }
 0x2e2   : > { %v2165_v5 = vpack.c.bf16 %v2133_v33, %v2129_v31 }
 0x2e4   : > { %2504 = vmatmul.mubr.bf16.gmra.mrb[56].mxu0 %v2159_v21 }
 0x2e5   : > { %2601 = vmatmul.mubr.bf16.gmra.mrb[56].mxu1 %v2161_v62  ;;  %2511 = vmatprep.mubr.bf16.mxu0 %v2164_v56 }
 0x2e6   : > { %2608 = vmatprep.mubr.bf16.mxu1 %v2166_v38 }
 0x2ec   : > { %2512 = vmatmul.mubr.bf16.gmra.mrb[60].mxu0 %v2163_v27 }
 0x2ed   : > { %2609 = vmatmul.mubr.bf16.gmra.mrb[60].mxu1 %v2165_v5 }
 0x30b   : > { %v2839_v20 = vpop.f32.mrb[32].mxu0 }
 0x30c   : > { %v2840_v3 = vpop.f32.mrb[33].mxu0 }
 0x30d   : > { %v2841_v8 = vadd.f32 %v2840_v3, %v2839_v20  ;;  %v2842_v37 = vpop.f32.mrb[34].mxu0 }
 0x30e   : > { %v2843_v30 = vpop.f32.mrb[35].mxu0 }
 0x30f   : > { %v2844_v59 = vadd.f32 %v2843_v30, %v2842_v37 }
 0x337   : > { %v2903_v13 = vpop.f32.mrb[32].mxu1 }
 0x338   : > { %v2904_v34 = vpop.f32.mrb[33].mxu1 }
 0x339   : > { %v2905_v1 = vadd.f32 %v2904_v34, %v2903_v13  ;;  %v2906_v23 = vpop.f32.mrb[34].mxu1 }
 0x33a   : > { %v2907_v12 = vpop.f32.mrb[35].mxu1 }
 0x33b   : > { %v2555_v17 = vadd.f32 %v2905_v1, %v2841_v8  ;;  %v2908_v10 = vadd.f32 %v2907_v12, %v2906_v23 }
 0x33d   : > { %2617 = vst [vmem:[%s5426_s18] sm:$0xff] %v2555_v17  ;;  %v2558_v40 = vadd.f32 %v2908_v10, %v2844_v59 }
 0x33f   : > { %2618 = vst [vmem:[%s5426_s18 + $0x8] sm:$0xff] %v2558_v40 }
 0x36e   : > { %v2845_v9 = vpop.f32.mrb[36].mxu0 }
 0x36f   : > { %v2846_v2 = vpop.f32.mrb[37].mxu0 }
 0x370   : > { %v2847_v7 = vadd.f32 %v2846_v2, %v2845_v9  ;;  %v2848_v14 = vpop.f32.mrb[38].mxu0 }
 0x371   : > { %v2849_v51 = vpop.f32.mrb[39].mxu0 }
 0x372   : > { %v2909_v54 = vpop.f32.mrb[36].mxu1  ;;  %v2850_v52 = vadd.f32 %v2849_v51, %v2848_v14 }
 0x373   : > { %v2910_v58 = vpop.f32.mrb[37].mxu1 }
 0x374   : > { %v2911_v46 = vadd.f32 %v2910_v58, %v2909_v54  ;;  %v2912_v15 = vpop.f32.mrb[38].mxu1 }
 0x375   : > { %v2913_v57 = vpop.f32.mrb[39].mxu1 }
 0x376   : > { %v2563_v44 = vadd.f32 %v2911_v46, %v2847_v7  ;;  %v2914_v35 = vadd.f32 %v2913_v57, %v2912_v15 }
 0x378   : > { %2619 = vst [vmem:[%s5426_s18 + $0x10] sm:$0xff] %v2563_v44  ;;  %v2566_v41 = vadd.f32 %v2914_v35, %v2850_v52 }
 0x37a   : > { %2620 = vst [vmem:[%s5426_s18 + $0x18] sm:$0xff] %v2566_v41 }
 0x393   : > { %v2851_v26 = vpop.f32.mrb[40].mxu0 }
 0x394   : > { %v2852_v21 = vpop.f32.mrb[41].mxu0 }
 0x395   : > { %v2853_v63 = vadd.f32 %v2852_v21, %v2851_v26  ;;  %v2854_v55 = vpop.f32.mrb[42].mxu0 }
 0x396   : > { %v2855_v39 = vpop.f32.mrb[43].mxu0 }
 0x397   : > { %v2915_v62 = vpop.f32.mrb[40].mxu1  ;;  %v2856_v11 = vadd.f32 %v2855_v39, %v2854_v55 }
 0x398   : > { %v2916_v16 = vpop.f32.mrb[41].mxu1 }
 0x399   : > { %v2917_v43 = vadd.f32 %v2916_v16, %v2915_v62  ;;  %v2918_v19 = vpop.f32.mrb[42].mxu1 }
 0x39a   : > { %v2919_v32 = vpop.f32.mrb[43].mxu1 }
 0x39b   : > { %v2571_v6 = vadd.f32 %v2917_v43, %v2853_v63  ;;  %v2920_v48 = vadd.f32 %v2919_v32, %v2918_v19 }
 0x39d   : > { %2621 = vst [vmem:[%s5426_s18 + $0x20] sm:$0xff] %v2571_v6  ;;  %v2574_v49 = vadd.f32 %v2920_v48, %v2856_v11 }
 0x39f   : > { %2622 = vst [vmem:[%s5426_s18 + $0x28] sm:$0xff] %v2574_v49  ;;  %v2857_v50 = vpop.f32.mrb[44].mxu0 }
 0x3a0   : > { %v2921_v60 = vpop.f32.mrb[44].mxu1  ;;  %v2858_v45 = vpop.f32.mrb[45].mxu0 }
 0x3a1   : > { %v2859_v22 = vadd.f32 %v2858_v45, %v2857_v50  ;;  %v2922_v53 = vpop.f32.mrb[45].mxu1  ;;  %v2860_v28 = vpop.f32.mrb[46].mxu0 }
 0x3a2   : > { %v2923_v18 = vadd.f32 %v2922_v53, %v2921_v60  ;;  %v2924_v61 = vpop.f32.mrb[46].mxu1  ;;  %v2861_v29 = vpop.f32.mrb[47].mxu0 }
 0x3a3   : > { %v2862_v4 = vadd.f32 %v2861_v29, %v2860_v28  ;;  %v2925_v56 = vpop.f32.mrb[47].mxu1 }
 0x3a4   : > { %v2579_v42 = vadd.f32 %v2923_v18, %v2859_v22  ;;  %v2926_v24 = vadd.f32 %v2925_v56, %v2924_v61 }
 0x3a6   : > { %2623 = vst [vmem:[%s5426_s18 + $0x30] sm:$0xff] %v2579_v42  ;;  %v2582_v38 = vadd.f32 %v2926_v24, %v2862_v4 }
 0x3a7   : > { %v2863_v36 = vpop.f32.mrb[48].mxu0 }
 0x3a8   : > { %2624 = vst [vmem:[%s5426_s18 + $0x38] sm:$0xff] %v2582_v38  ;;  %v2927_v0 = vpop.f32.mrb[48].mxu1  ;;  %v2864_v25 = vpop.f32.mrb[49].mxu0 }
 0x3a9   : > { %v2865_v47 = vadd.f32 %v2864_v25, %v2863_v36  ;;  %v2928_v31 = vpop.f32.mrb[49].mxu1  ;;  %v2866_v33 = vpop.f32.mrb[50].mxu0 }
 0x3aa   : > { %v2929_v27 = vadd.f32 %v2928_v31, %v2927_v0  ;;  %v2930_v5 = vpop.f32.mrb[50].mxu1  ;;  %v2867_v20 = vpop.f32.mrb[51].mxu0 }
 0x3ab   : > { %v2868_v3 = vadd.f32 %v2867_v20, %v2866_v33  ;;  %v2931_v8 = vpop.f32.mrb[51].mxu1 }
 0x3ac   : > { %v2587_v37 = vadd.f32 %v2929_v27, %v2865_v47  ;;  %v2932_v30 = vadd.f32 %v2931_v8, %v2930_v5 }
 0x3ae   : > { %2625 = vst [vmem:[%s5426_s18 + $0x40] sm:$0xff] %v2587_v37  ;;  %v2590_v59 = vadd.f32 %v2932_v30, %v2868_v3 }
 0x3af   : > { %v2869_v13 = vpop.f32.mrb[52].mxu0 }
 0x3b0   : > { %2626 = vst [vmem:[%s5426_s18 + $0x48] sm:$0xff] %v2590_v59  ;;  %v2933_v34 = vpop.f32.mrb[52].mxu1  ;;  %v2870_v1 = vpop.f32.mrb[53].mxu0 }
 0x3b1   : > { %v2871_v23 = vadd.f32 %v2870_v1, %v2869_v13  ;;  %v2934_v12 = vpop.f32.mrb[53].mxu1  ;;  %v2872_v17 = vpop.f32.mrb[54].mxu0 }
 0x3b2   : > { %v2935_v10 = vadd.f32 %v2934_v12, %v2933_v34  ;;  %v2936_v40 = vpop.f32.mrb[54].mxu1  ;;  %v2873_v9 = vpop.f32.mrb[55].mxu0 }
 0x3b3   : > { %v2874_v2 = vadd.f32 %v2873_v9, %v2872_v17  ;;  %v2937_v7 = vpop.f32.mrb[55].mxu1 }
 0x3b4   : > { %v2595_v14 = vadd.f32 %v2935_v10, %v2871_v23  ;;  %v2938_v54 = vadd.f32 %v2937_v7, %v2936_v40 }
 0x3b6   : > { %2627 = vst [vmem:[%s5426_s18 + $0x50] sm:$0xff] %v2595_v14  ;;  %v2598_v51 = vadd.f32 %v2938_v54, %v2874_v2 }
 0x3b7   : > { %v2875_v58 = vpop.f32.mrb[56].mxu0 }
 0x3b8   : > { %2628 = vst [vmem:[%s5426_s18 + $0x58] sm:$0xff] %v2598_v51  ;;  %v2939_v52 = vpop.f32.mrb[56].mxu1  ;;  %v2876_v46 = vpop.f32.mrb[57].mxu0 }
 0x3b9   : > { %v2877_v15 = vadd.f32 %v2876_v46, %v2875_v58  ;;  %v2940_v57 = vpop.f32.mrb[57].mxu1  ;;  %v2878_v44 = vpop.f32.mrb[58].mxu0 }
 0x3ba   : > { %v2941_v35 = vadd.f32 %v2940_v57, %v2939_v52  ;;  %v2942_v41 = vpop.f32.mrb[58].mxu1  ;;  %v2879_v26 = vpop.f32.mrb[59].mxu0 }
 0x3bb   : > { %v2880_v21 = vadd.f32 %v2879_v26, %v2878_v44  ;;  %v2943_v63 = vpop.f32.mrb[59].mxu1 }
 0x3bc   : > { %v2603_v55 = vadd.f32 %v2941_v35, %v2877_v15  ;;  %v2944_v39 = vadd.f32 %v2943_v63, %v2942_v41 }
 0x3be   : > { %2629 = vst [vmem:[%s5426_s18 + $0x60] sm:$0xff] %v2603_v55  ;;  %v2606_v62 = vadd.f32 %v2944_v39, %v2880_v21 }
 0x3bf   : > { %v2881_v11 = vpop.f32.mrb[60].mxu0 }
 0x3c0   : > { %2630 = vst [vmem:[%s5426_s18 + $0x68] sm:$0xff] %v2606_v62  ;;  %v2945_v16 = vpop.f32.mrb[60].mxu1  ;;  %v2882_v43 = vpop.f32.mrb[61].mxu0 }
 0x3c1   : > { %v2883_v19 = vadd.f32 %v2882_v43, %v2881_v11  ;;  %v2946_v32 = vpop.f32.mrb[61].mxu1  ;;  %v2884_v6 = vpop.f32.mrb[62].mxu0 }
 0x3c2   : > { %v2947_v48 = vadd.f32 %v2946_v32, %v2945_v16  ;;  %v2948_v49 = vpop.f32.mrb[62].mxu1  ;;  %v2885_v50 = vpop.f32.mrb[63].mxu0 }
 0x3c3   : > { %v2886_v60 = vadd.f32 %v2885_v50, %v2884_v6  ;;  %v2949_v45 = vpop.f32.mrb[63].mxu1 }
 0x3c4   : > { %v2611_v22 = vadd.f32 %v2947_v48, %v2883_v19  ;;  %v2950_v53 = vadd.f32 %v2949_v45, %v2948_v49 }
 0x3c6   : > { %2631 = vst [vmem:[%s5426_s18 + $0x70] sm:$0xff] %v2611_v22  ;;  %v2614_v28 = vadd.f32 %v2950_v53, %v2886_v60 }
 0x3c8   : > { %2632 = vst [vmem:[%s5426_s18 + $0x78] sm:$0xff] %v2614_v28 }
 0x3c9   : > { %3462 = shalt.err (!%p3459_p2)
}
 0x3ca   : > { %s3463_s25 = scalar_lea.hbm %s5447_s22, 2048  ;;  %s3467_s26 = scalar_lea.hbm %s5498_s3, 4096 }
 0x3cb   : > { %p3464_p13 = scmp.ne.s32.totalorder %s5447_s22, %s3463_s25  ;;  %p3468_p4 = scmp.lt.u32.totalorder %s5447_s22, %s5498_s3 }
 0x3cc   : > { %p3469_p7 = scmp.lt.u32.totalorder %s3467_s26, %s3463_s25  ;;  %p3471_p11 = scmp.lt.u32.totalorder %s3463_s25, %s5447_s22 }
 0x3cd   : > { %p3465_p6 = pnand %p3464_p13, %p5815_p0 }
 0x3ce   : > { %p3470_p8 = por %p3469_p7, %p3468_p4 }
 0x3cf   : > { %p3466_p10 = pneg %p3465_p6 }
 0x3d0   : > { %p3472_p1 = por %p3471_p11, %p3470_p8 }
 0x3d2   : > { %p3473_p3 = pnand %p3472_p1, %p3466_p10 }
 0x3d4   : > { %3476 = shalt.err (!%p3473_p3)
}
 0x3d5   : > { %s3532_s5 = smov 128   ;;  %s3533_s18 = smov 8  }
 0x3d6   : > { %2961 = dma.vmem_to_hbm [thread:$0]  (%p5815_p0), %s5449_s24, 2048, %s5447_s22, %s2634_s7, %s3532_s5, %s3532_s5, %s3533_s18  }
 0x3d7 PF: > { %s2662_s20 = sand.u32 1, %s3507_s12   ;;  %p5816_p5 = scmp.ne.s32.totalorder %s5513_s19, 0 }
 0x3d8   : > { %p5817_p9 = scmp.ge.s32.totalorder %s3519_s15, 2  ;;  %s2663_s27 = scalar_lea.sflag [#allocation4], %s2662_s20 }
 0x3da   : > { %p2975_p12 = pnand %p5817_p9, %p5816_p5 }
 0x3dc   : > { %3502 = dma.done.wait (!%p2975_p12), %s2663_s27, 2048  }
 0x3dd   : > { %3504 = vsyncadd (!%p2975_p12), %s2663_s27, 4294965248  ;;  %p17_p2 = scmp.ge.s32.totalorder %s3664_s6, 4   ;;  %s5818_s12 = smov %s3511_s13 }
 0x3de   : > { %s5819_s13 = smov %s3515_s14  ;;  %s5820_s14 = smov %s3673_s9 }
 0x3df   : > { %s5821_s15 = smov %s3664_s6  ;;  %19 = sbr.rel (!%p17_p2) target bundleno = 6 (0x6), region = 85 }
 0x3e6   :  { %2668 = vsyncpa [#allocation3], 1 }
 0x3e7   :  { %2670 = vsyncpa [#allocation3 + $0x1], 1 }
 0x3e8   :  { %2671 = vsyncpa [#allocation6], 1 }
 0x3e9   :  { %2672 = vsyncpa [#allocation4], 1 }
 0x3ea   :  { %2674 = vsyncpa [#allocation4 + $0x1], 1 }

</bundles_post_ra>
